<compile_context>
chip_gen: v7x
topology: tpu7x:2x2x1
jax: 0.10.0
libtpu: 0.0.40
codegen_flags: <defaults>
</compile_context>

<pallas_src>
import jax
import jax.numpy as jnp
from jax.experimental import pallas as pl
from jax.experimental.pallas import tpu as pltpu


PADW = 8   # W-halo width: the interior starts at sublane offset 8 (aligned),
           # only the innermost halo column on each side is ever read.


# ----------------------------------------------------------------------------
# Fused encoder kernel (one grid step == one image)
# ----------------------------------------------------------------------------
def _encoder_fused_kernel(x_ref, w1_ref, w2_ref, o_ref, buf1, buf2, cols):
    """x_ref : (1, H, W, Cin)            input image (NHWC)
       w1_ref: (L1, C1, K)               packed conv1 weights (taps + bias row)
       w2_ref: (L2, C2, K)               packed conv2 weights
       o_ref : (1, H//2, W//2, C2)       output (NHWC)
       buf1  : (H+2,  W+2*PADW, CB)      zero-halo conv1 activation buffer
       buf2  : (H//2+2, W//2+2*PADW, CB) zero-halo conv2 activation buffer
       cols  : (H*W, K)                  im2col staging (dense taps + bias col)
    """
    _, H, W, C_in = x_ref.shape
    L1, C1, K = w1_ref.shape
    L2, C2, _ = w2_ref.shape
    CB = buf1.shape[-1]            # activation-buffer channel width (== C1)
    K9 = 9 * CB                    # dense tap span; lane K9 is the bias column
    Ho, Wo = H // 2, W // 2
    HW = H * W

    # ---- per-image init -----------------------------------------------------
    # Kept per image (not hoisted under program_id == 0): with
    # dimension_semantics=("parallel",) each core has its own scratch on v7x,
    # so a pid==0-only init would leave the second core's halos uninitialised.
    # After the dense-K repack this is only ~50 KiB of stores per image.
    buf1[...] = jnp.zeros_like(buf1)
    buf2[...] = jnp.zeros_like(buf2)
    # Bias column (ones) + zero padding lanes of the im2col matrix.  The tap
    # lanes [0, 9*CB) are fully rewritten by every layer before being read.
    cols[:, K9:] = jnp.zeros((HW, K - K9), jnp.float32)
    cols[:, K9:K9 + 1] = jnp.ones((HW, 1), jnp.float32)

    # Stage the input into the interior of buf1 (channels [0, C_in); the rest
    # of the channels are true zeros, so conv1 layer 0 needs no special case).
    buf1[1:1 + H, PADW:PADW + W, 0:C_in] = x_ref[0].astype(jnp.float32)

    def conv3x3_relu(src, rows, width, w):
        """3x3 'same' conv + bias + ReLU over the zero-halo buffer `src` as a
        single MXU matmul: im2col with a dense contraction dim (tap k ->
        lanes [k*CB, (k+1)*CB)) plus the folded bias column at lane 9*CB."""
        rb = rows * width
        for k in range(9):
            dy, dx = k // 3, k % 3
            tap = src[dy:dy + rows, PADW - 1 + dx:PADW - 1 + dx + width, :]
            cols[0:rb, k * CB:(k + 1) * CB] = tap.reshape(rb, CB)
        # (rb, K) x (cout, K)^T -> (rb, cout); weights are lane-dense (K last).
        y = jax.lax.dot_general(
            cols[0:rb, :], w,
            dimension_numbers=(((1,), (1,)), ((), ())),
            preferred_element_type=jnp.float32)
        return jnp.maximum(y, 0.0)

    # ---- conv1: L1 x (3x3 conv + ReLU), C1 output channels ------------------
    def conv1_body(i, carry):
        y = conv3x3_relu(buf1, H, W, w1_ref[i])            # (H*W, C1)
        buf1[1:1 + H, PADW:PADW + W, 0:C1] = y.reshape(H, W, C1)
        return carry

    jax.lax.fori_loop(0, L1, conv1_body, 0)

    # ---- 2x2 max pool, stride 2: strided reads straight out of buf1 ---------
    p00 = buf1[pl.ds(1, Ho, 2), pl.ds(PADW, Wo, 2), :]      # x[2h,   2w]
    p01 = buf1[pl.ds(1, Ho, 2), pl.ds(PADW + 1, Wo, 2), :]  # x[2h,   2w+1]
    p10 = buf1[pl.ds(2, Ho, 2), pl.ds(PADW, Wo, 2), :]      # x[2h+1, 2w]
    p11 = buf1[pl.ds(2, Ho, 2), pl.ds(PADW + 1, Wo, 2), :]  # x[2h+1, 2w+1]
    pooled = jnp.maximum(jnp.maximum(p00, p01), jnp.maximum(p10, p11))
    buf2[1:1 + Ho, PADW:PADW + Wo, :] = pooled               # (Ho, Wo, CB)

    # ---- conv2: L2 x (3x3 conv + ReLU), C2 output channels ------------------
    # NOTE: after layer 0, buf2 channels [C2, CB) still hold the (finite)
    # pooled activations; they are neutralised by the zero-padded cin rows of
    # the packed weights of layers >= 1.
    def conv2_body(i, carry):
        y = conv3x3_relu(buf2, Ho, Wo, w2_ref[i])          # (Ho*Wo, C2)
        buf2[1:1 + Ho, PADW:PADW + Wo, 0:C2] = y.reshape(Ho, Wo, C2)
        return carry

    jax.lax.fori_loop(0, L2, conv2_body, 0)

    o_ref[...] = (buf2[1:1 + Ho, PADW:PADW + Wo, 0:C2]
                  .reshape(1, Ho, Wo, C2).astype(o_ref.dtype))


# ----------------------------------------------------------------------------
# Host-side parameter packing (once, outside the hot path)
# ----------------------------------------------------------------------------
def pack_encoder_params(params):
    """Pack per-layer HWIO (3,3,cin,cout) weights + biases into (L, cout, K):
         K index = (dy*3 + dx)*CB + c   for the 9 taps (cin zero-padded to CB)
         K index = 9*CB                 folded bias row
         K index > 9*CB                 zeros, K rounded up to a lane multiple
       Keeping the long K dim last keeps the packed weights lane-dense in VMEM
       (cout = 16/8 would otherwise be padded to 128 lanes)."""
    CB = int(params["conv1"][0][0].shape[3])     # conv1 width (= buffer width)
    K9 = 9 * CB
    K = -(-(K9 + 1) // 128) * 128                # round up to 128 lanes

    def pack_layer(w, b):
        cin, cout = int(w.shape[2]), int(w.shape[3])
        wp = jnp.pad(w.astype(jnp.float32),
                     ((0, 0), (0, 0), (0, CB - cin), (0, 0)))   # (3,3,CB,cout)
        wp = wp.reshape(K9, cout)
        wp = jnp.concatenate(
            [wp,
             b.astype(jnp.float32).reshape(1, cout),             # bias row
             jnp.zeros((K - K9 - 1, cout), jnp.float32)], axis=0)
        return wp.T                                              # (cout, K)

    w1 = jnp.stack([pack_layer(w, b) for (w, b) in params["conv1"]])
    w2 = jnp.stack([pack_layer(w, b) for (w, b) in params["conv2"]])
    return {"w1": w1, "w2": w2}


# ----------------------------------------------------------------------------
# Encoder forward (NCHW in / NCHW out, matching the PyTorch module)
# ----------------------------------------------------------------------------
def encoder_forward(packed, x_nchw):
    x = jnp.transpose(x_nchw, (0, 2, 3, 1)).astype(jnp.float32)  # NCHW -> NHWC
    N, H, W, C_in = x.shape
    assert H % 2 == 0 and W % 2 == 0, "MaxPool2d(2,2) requires even H and W"

    w1, w2 = packed["w1"], packed["w2"]
    L1, C1, K = w1.shape
    L2, C2, _ = w2.shape
    CB = C1                         # activation-buffer channel width
    assert C_in <= CB and C2 <= CB and CB <= 128 and w2.shape[2] == K
    Ho, Wo = H // 2, W // 2

    out = pl.pallas_call(
        _encoder_fused_kernel,
        out_shape=jax.ShapeDtypeStruct((N, Ho, Wo, C2), jnp.float32),
        grid=(N,),
        in_specs=[
            pl.BlockSpec((1, H, W, C_in), lambda n: (n, 0, 0, 0)),
            pl.BlockSpec((L1, C1, K), lambda n: (0, 0, 0)),
            pl.BlockSpec((L2, C2, K), lambda n: (0, 0, 0)),
        ],
        out_specs=pl.BlockSpec((1, Ho, Wo, C2), lambda n: (n, 0, 0, 0)),
        scratch_shapes=[
            pltpu.VMEM((H + 2, W + 2 * PADW, CB), jnp.float32),    # buf1
            pltpu.VMEM((Ho + 2, Wo + 2 * PADW, CB), jnp.float32),  # buf2
            pltpu.VMEM((H * W, K), jnp.float32),                   # im2col
        ],
        compiler_params=pltpu.CompilerParams(
            dimension_semantics=("parallel",)),   # v7x: one image per core
    )(x, w1, w2)
    return jnp.transpose(out, (0, 3, 1, 2))       # NHWC -> NCHW


# ----------------------------------------------------------------------------
# Parameter init (deterministic synthetic, mirroring the PyTorch __init__)
# ----------------------------------------------------------------------------
def init_encoder_params(key, input_channel, layersize=6, numoffilters=8):
    def conv_layer(k, c_in, c_out):
        k1, k2 = jax.random.split(k)
        w = jax.random.normal(k1, (3, 3, c_in, c_out), jnp.float32)
        w = w * jnp.sqrt(2.0 / (9.0 * c_in))       # He init keeps scales O(1)
        b = 0.01 * jax.random.normal(k2, (c_out,), jnp.float32)
        return w, b

    conv1, conv2 = [], []
    c_in = input_channel
    for _ in range(layersize * 4):
        key, sub = jax.random.split(key)
        conv1.append(conv_layer(sub, c_in, numoffilters * 2))
        c_in = numoffilters * 2
    for _ in range(layersize * 2):
        key, sub = jax.random.split(key)
        conv2.append(conv_layer(sub, c_in, numoffilters))
        c_in = numoffilters
    return {"conv1": conv1, "conv2": conv2}


# ----------------------------------------------------------------------------
# Pure-JAX reference for validation
# ----------------------------------------------------------------------------
def _ref_conv3x3_relu(x, w, b):
    y = jax.lax.conv_general_dilated(
        x, w, window_strides=(1, 1), padding="SAME",
        dimension_numbers=("NHWC", "HWIO", "NHWC"),
        precision=jax.lax.Precision.HIGHEST)
    return jnp.maximum(y + b.reshape(1, 1, 1, -1), 0.0)


def _ref_forward(params, x_nchw):
    x = jnp.transpose(x_nchw, (0, 2, 3, 1))
    for w, b in params["conv1"]:
        x = _ref_conv3x3_relu(x, w, b)
    N, H, W, C = x.shape
    x = jnp.max(x.reshape(N, H // 2, 2, W // 2, 2, C), axis=(2, 4))
    for w, b in params["conv2"]:
        x = _ref_conv3x3_relu(x, w, b)
    return jnp.transpose(x, (0, 3, 1, 2))


# ----------------------------------------------------------------------------
if __name__ == "__main__":
    key = jax.random.PRNGKey(0)
    k_param, k_x = jax.random.split(key)

    input_channel = 4
    layersize = 6
    numoffilters = 8

    params = init_encoder_params(k_param, input_channel, layersize, numoffilters)
    packed = pack_encoder_params(params)
    x = jax.random.normal(k_x, (2, input_channel, 16, 16), jnp.float32)  # NCHW

    fwd = jax.jit(encoder_forward)
    out = jax.block_until_ready(fwd(packed, x))

    expected_shape = (2, numoffilters, 8, 8)
    assert out.shape == expected_shape, (out.shape, expected_shape)

    ref = jax.block_until_ready(_ref_forward(params, x))
    max_err = float(jnp.max(jnp.abs(out - ref)))
    # Tolerance note: operands are kept fp32 (no bf16 demotion); the margin
    # only covers the backend-default f32 matmul rounding accumulated across
    # the 36 chained conv layers.
    assert jnp.allclose(out, ref, rtol=2e-2, atol=2e-3), max_err

    print("KERNEL_OK")
</pallas_src>

<mosaic_0001>
module attributes {stable_mosaic.version = 11 : i64} {
  func.func @_encoder_fused_kernel(%arg0: i32, %arg1: memref<1x16x16x4xf32, #tpu.memory_space<vmem>>, %arg2: memref<24x16x256xf32, #tpu.memory_space<vmem>>, %arg3: memref<12x8x256xf32, #tpu.memory_space<vmem>>, %arg4: memref<1x8x8x8xf32, #tpu.memory_space<vmem>>, %arg5: memref<18x32x16xf32, #tpu.memory_space<vmem>>, %arg6: memref<10x24x16xf32, #tpu.memory_space<vmem>>, %arg7: memref<256x256xf32, #tpu.memory_space<vmem>>) attributes {dimension_semantics = [#tpu.dimension_semantics<parallel>], iteration_bounds = array<i64: 2>, scalar_prefetch = 0 : i64, scratch_operands = 3 : i64, tpu.core_type = #tpu.core_type<tc>, window_params = [{transform_indices = @transform_0, window_bounds = array<i64: 1, 16, 16, 4>}, {pipeline_mode = #tpu.pipeline_mode<synchronous>, transform_indices = @transform_1, window_bounds = array<i64: 24, 16, 256>}, {pipeline_mode = #tpu.pipeline_mode<synchronous>, transform_indices = @transform_2, window_bounds = array<i64: 12, 8, 256>}, {transform_indices = @transform_3, window_bounds = array<i64: 1, 8, 8, 8>}]} {
    %cst = arith.constant 0.000000e+00 : f32
    %0 = vector.broadcast %cst : f32 to vector<18x32x16xf32>
    %c0 = arith.constant 0 : index
    %c0_0 = arith.constant 0 : index
    %c0_1 = arith.constant 0 : index
    %1 = vector.load %arg5[%c0, %c0_0, %c0_1] : memref<18x32x16xf32, #tpu.memory_space<vmem>>, vector<18x32x16xf32>
    tpu.vector_store %arg5[%c0, %c0_0, %c0_1], %0 {strides = array<i32>} : memref<18x32x16xf32, #tpu.memory_space<vmem>>, vector<18x32x16xf32>,
    %cst_2 = arith.constant 0.000000e+00 : f32
    %2 = vector.broadcast %cst_2 : f32 to vector<10x24x16xf32>
    %c0_3 = arith.constant 0 : index
    %c0_4 = arith.constant 0 : index
    %c0_5 = arith.constant 0 : index
    %3 = vector.load %arg6[%c0_3, %c0_4, %c0_5] : memref<10x24x16xf32, #tpu.memory_space<vmem>>, vector<10x24x16xf32>
    tpu.vector_store %arg6[%c0_3, %c0_4, %c0_5], %2 {strides = array<i32>} : memref<10x24x16xf32, #tpu.memory_space<vmem>>, vector<10x24x16xf32>,
    %cst_6 = arith.constant 0.000000e+00 : f32
    %4 = vector.broadcast %cst_6 : f32 to vector<256x112xf32>
    %c0_7 = arith.constant 0 : index
    %c144 = arith.constant 144 : index
    %5 = vector.load %arg7[%c0_7, %c144] : memref<256x256xf32, #tpu.memory_space<vmem>>, vector<256x112xf32>
    tpu.vector_store %arg7[%c0_7, %c144], %4 {strides = array<i32>} : memref<256x256xf32, #tpu.memory_space<vmem>>, vector<256x112xf32>,
    %cst_8 = arith.constant 1.000000e+00 : f32
    %6 = vector.broadcast %cst_8 : f32 to vector<256x1xf32>
    %c0_9 = arith.constant 0 : index
    %c144_10 = arith.constant 144 : index
    %7 = vector.load %arg7[%c0_9, %c144_10] : memref<256x256xf32, #tpu.memory_space<vmem>>, vector<256x1xf32>
    tpu.vector_store %arg7[%c0_9, %c144_10], %6 {strides = array<i32>} : memref<256x256xf32, #tpu.memory_space<vmem>>, vector<256x1xf32>,
    %c0_11 = arith.constant 0 : index
    %c0_12 = arith.constant 0 : index
    %c0_13 = arith.constant 0 : index
    %c0_14 = arith.constant 0 : index
    %8 = vector.load %arg1[%c0_11, %c0_12, %c0_13, %c0_14] : memref<1x16x16x4xf32, #tpu.memory_space<vmem>>, vector<1x16x16x4xf32>
    %9 = vector.shape_cast %8 : vector<1x16x16x4xf32> to vector<16x16x4xf32>
    %c1 = arith.constant 1 : index
    %c8 = arith.constant 8 : index
    %c0_15 = arith.constant 0 : index
    %10 = vector.load %arg5[%c1, %c8, %c0_15] : memref<18x32x16xf32, #tpu.memory_space<vmem>>, vector<16x16x4xf32>
    tpu.vector_store %arg5[%c1, %c8, %c0_15], %9 {strides = array<i32>} : memref<18x32x16xf32, #tpu.memory_space<vmem>>, vector<16x16x4xf32>,
    %c0_i32 = arith.constant 0 : i32
    %c24_i32 = arith.constant 24 : i32
    %11 = arith.addi %c0_i32, %c24_i32 : i32
    %c1_i32 = arith.constant 1 : i32
    scf.for %arg8 = %c0_i32 to %11 step %c1_i32  : i32 {
      %24 = arith.index_cast %arg8 : i32 to index
      %c0_40 = arith.constant 0 : index
      %c0_41 = arith.constant 0 : index
      %25 = vector.load %arg2[%24, %c0_40, %c0_41] : memref<24x16x256xf32, #tpu.memory_space<vmem>>, vector<1x16x256xf32>
      %26 = vector.shape_cast %25 : vector<1x16x256xf32> to vector<16x256xf32>
      %c0_42 = arith.constant 0 : index
      %c7 = arith.constant 7 : index
      %c0_43 = arith.constant 0 : index
      %27 = vector.load %arg5[%c0_42, %c7, %c0_43] : memref<18x32x16xf32, #tpu.memory_space<vmem>>, vector<16x16x16xf32>
      %28 = vector.shape_cast %27 : vector<16x16x16xf32> to vector<256x16xf32>
      %c0_44 = arith.constant 0 : index
      %c0_45 = arith.constant 0 : index
      %29 = vector.load %arg7[%c0_44, %c0_45] : memref<256x256xf32, #tpu.memory_space<vmem>>, vector<256x16xf32>
      tpu.vector_store %arg7[%c0_44, %c0_45], %28 {strides = array<i32>} : memref<256x256xf32, #tpu.memory_space<vmem>>, vector<256x16xf32>,
      %c0_46 = arith.constant 0 : index
      %c8_47 = arith.constant 8 : index
      %c0_48 = arith.constant 0 : index
      %30 = vector.load %arg5[%c0_46, %c8_47, %c0_48] : memref<18x32x16xf32, #tpu.memory_space<vmem>>, vector<16x16x16xf32>
      %31 = vector.shape_cast %30 : vector<16x16x16xf32> to vector<256x16xf32>
      %c0_49 = arith.constant 0 : index
      %c16 = arith.constant 16 : index
      %32 = vector.load %arg7[%c0_49, %c16] : memref<256x256xf32, #tpu.memory_space<vmem>>, vector<256x16xf32>
      tpu.vector_store %arg7[%c0_49, %c16], %31 {strides = array<i32>} : memref<256x256xf32, #tpu.memory_space<vmem>>, vector<256x16xf32>,
      %c0_50 = arith.constant 0 : index
      %c9_51 = arith.constant 9 : index
      %c0_52 = arith.constant 0 : index
      %33 = vector.load %arg5[%c0_50, %c9_51, %c0_52] : memref<18x32x16xf32, #tpu.memory_space<vmem>>, vector<16x16x16xf32>
      %34 = vector.shape_cast %33 : vector<16x16x16xf32> to vector<256x16xf32>
      %c0_53 = arith.constant 0 : index
      %c32 = arith.constant 32 : index
      %35 = vector.load %arg7[%c0_53, %c32] : memref<256x256xf32, #tpu.memory_space<vmem>>, vector<256x16xf32>
      tpu.vector_store %arg7[%c0_53, %c32], %34 {strides = array<i32>} : memref<256x256xf32, #tpu.memory_space<vmem>>, vector<256x16xf32>,
      %c1_54 = arith.constant 1 : index
      %c7_55 = arith.constant 7 : index
      %c0_56 = arith.constant 0 : index
      %36 = vector.load %arg5[%c1_54, %c7_55, %c0_56] : memref<18x32x16xf32, #tpu.memory_space<vmem>>, vector<16x16x16xf32>
      %37 = vector.shape_cast %36 : vector<16x16x16xf32> to vector<256x16xf32>
      %c0_57 = arith.constant 0 : index
      %c48 = arith.constant 48 : index
      %38 = vector.load %arg7[%c0_57, %c48] : memref<256x256xf32, #tpu.memory_space<vmem>>, vector<256x16xf32>
      tpu.vector_store %arg7[%c0_57, %c48], %37 {strides = array<i32>} : memref<256x256xf32, #tpu.memory_space<vmem>>, vector<256x16xf32>,
      %c1_58 = arith.constant 1 : index
      %c8_59 = arith.constant 8 : index
      %c0_60 = arith.constant 0 : index
      %39 = vector.load %arg5[%c1_58, %c8_59, %c0_60] : memref<18x32x16xf32, #tpu.memory_space<vmem>>, vector<16x16x16xf32>
      %40 = vector.shape_cast %39 : vector<16x16x16xf32> to vector<256x16xf32>
      %c0_61 = arith.constant 0 : index
      %c64 = arith.constant 64 : index
      %41 = vector.load %arg7[%c0_61, %c64] : memref<256x256xf32, #tpu.memory_space<vmem>>, vector<256x16xf32>
      tpu.vector_store %arg7[%c0_61, %c64], %40 {strides = array<i32>} : memref<256x256xf32, #tpu.memory_space<vmem>>, vector<256x16xf32>,
      %c1_62 = arith.constant 1 : index
      %c9_63 = arith.constant 9 : index
      %c0_64 = arith.constant 0 : index
      %42 = vector.load %arg5[%c1_62, %c9_63, %c0_64] : memref<18x32x16xf32, #tpu.memory_space<vmem>>, vector<16x16x16xf32>
      %43 = vector.shape_cast %42 : vector<16x16x16xf32> to vector<256x16xf32>
      %c0_65 = arith.constant 0 : index
      %c80 = arith.constant 80 : index
      %44 = vector.load %arg7[%c0_65, %c80] : memref<256x256xf32, #tpu.memory_space<vmem>>, vector<256x16xf32>
      tpu.vector_store %arg7[%c0_65, %c80], %43 {strides = array<i32>} : memref<256x256xf32, #tpu.memory_space<vmem>>, vector<256x16xf32>,
      %c2_66 = arith.constant 2 : index
      %c7_67 = arith.constant 7 : index
      %c0_68 = arith.constant 0 : index
      %45 = vector.load %arg5[%c2_66, %c7_67, %c0_68] : memref<18x32x16xf32, #tpu.memory_space<vmem>>, vector<16x16x16xf32>
      %46 = vector.shape_cast %45 : vector<16x16x16xf32> to vector<256x16xf32>
      %c0_69 = arith.constant 0 : index
      %c96 = arith.constant 96 : index
      %47 = vector.load %arg7[%c0_69, %c96] : memref<256x256xf32, #tpu.memory_space<vmem>>, vector<256x16xf32>
      tpu.vector_store %arg7[%c0_69, %c96], %46 {strides = array<i32>} : memref<256x256xf32, #tpu.memory_space<vmem>>, vector<256x16xf32>,
      %c2_70 = arith.constant 2 : index
      %c8_71 = arith.constant 8 : index
      %c0_72 = arith.constant 0 : index
      %48 = vector.load %arg5[%c2_70, %c8_71, %c0_72] : memref<18x32x16xf32, #tpu.memory_space<vmem>>, vector<16x16x16xf32>
      %49 = vector.shape_cast %48 : vector<16x16x16xf32> to vector<256x16xf32>
      %c0_73 = arith.constant 0 : index
      %c112 = arith.constant 112 : index
      %50 = vector.load %arg7[%c0_73, %c112] : memref<256x256xf32, #tpu.memory_space<vmem>>, vector<256x16xf32>
      tpu.vector_store %arg7[%c0_73, %c112], %49 {strides = array<i32>} : memref<256x256xf32, #tpu.memory_space<vmem>>, vector<256x16xf32>,
      %c2_74 = arith.constant 2 : index
      %c9_75 = arith.constant 9 : index
      %c0_76 = arith.constant 0 : index
      %51 = vector.load %arg5[%c2_74, %c9_75, %c0_76] : memref<18x32x16xf32, #tpu.memory_space<vmem>>, vector<16x16x16xf32>
      %52 = vector.shape_cast %51 : vector<16x16x16xf32> to vector<256x16xf32>
      %c0_77 = arith.constant 0 : index
      %c128 = arith.constant 128 : index
      %53 = vector.load %arg7[%c0_77, %c128] : memref<256x256xf32, #tpu.memory_space<vmem>>, vector<256x16xf32>
      tpu.vector_store %arg7[%c0_77, %c128], %52 {strides = array<i32>} : memref<256x256xf32, #tpu.memory_space<vmem>>, vector<256x16xf32>,
      %c0_78 = arith.constant 0 : index
      %c0_79 = arith.constant 0 : index
      %54 = vector.load %arg7[%c0_78, %c0_79] : memref<256x256xf32, #tpu.memory_space<vmem>>, vector<256x256xf32>
      %cst_80 = arith.constant dense<0.000000e+00> : vector<256x16xf32>
      %55 = tpu.matmul %54, %26, %cst_80 {dimension_numbers = #tpu.dot_dimension_numbers<[1], [1], [0], [0], [0, 0, 1, 0], [], []>} : vector<256x256xf32>, vector<16x256xf32>, vector<256x16xf32> -> vector<256x16xf32>
      %cst_81 = arith.constant 0.000000e+00 : f32
      %56 = vector.broadcast %cst_81 : f32 to vector<256x16xf32>
      %57 = arith.maximumf %55, %56 : vector<256x16xf32>
      %58 = vector.shape_cast %57 : vector<256x16xf32> to vector<16x16x16xf32>
      %c1_82 = arith.constant 1 : index
      %c8_83 = arith.constant 8 : index
      %c0_84 = arith.constant 0 : index
      %59 = vector.load %arg5[%c1_82, %c8_83, %c0_84] : memref<18x32x16xf32, #tpu.memory_space<vmem>>, vector<16x16x16xf32>
      tpu.vector_store %arg5[%c1_82, %c8_83, %c0_84], %58 {strides = array<i32>} : memref<18x32x16xf32, #tpu.memory_space<vmem>>, vector<16x16x16xf32>,
    }
    %c24_i32_16 = arith.constant 24 : i32
    %c1_17 = arith.constant 1 : index
    %c8_18 = arith.constant 8 : index
    %c0_19 = arith.constant 0 : index
    %12 = tpu.strided_load %arg5[%c1_17, %c8_18, %c0_19] {strides = array<i32: 2, 2, 1>} : memref<18x32x16xf32, #tpu.memory_space<vmem>>, vector<8x8x16xf32>
    %c1_20 = arith.constant 1 : index
    %c9 = arith.constant 9 : index
    %c0_21 = arith.constant 0 : index
    %13 = tpu.strided_load %arg5[%c1_20, %c9, %c0_21] {strides = array<i32: 2, 2, 1>} : memref<18x32x16xf32, #tpu.memory_space<vmem>>, vector<8x8x16xf32>
    %c2 = arith.constant 2 : index
    %c8_22 = arith.constant 8 : index
    %c0_23 = arith.constant 0 : index
    %14 = tpu.strided_load %arg5[%c2, %c8_22, %c0_23] {strides = array<i32: 2, 2, 1>} : memref<18x32x16xf32, #tpu.memory_space<vmem>>, vector<8x8x16xf32>
    %c2_24 = arith.constant 2 : index
    %c9_25 = arith.constant 9 : index
    %c0_26 = arith.constant 0 : index
    %15 = tpu.strided_load %arg5[%c2_24, %c9_25, %c0_26] {strides = array<i32: 2, 2, 1>} : memref<18x32x16xf32, #tpu.memory_space<vmem>>, vector<8x8x16xf32>
    %16 = arith.maximumf %12, %13 : vector<8x8x16xf32>
    %17 = arith.maximumf %14, %15 : vector<8x8x16xf32>
    %18 = arith.maximumf %16, %17 : vector<8x8x16xf32>
    %c1_27 = arith.constant 1 : index
    %c8_28 = arith.constant 8 : index
    %c0_29 = arith.constant 0 : index
    %19 = vector.load %arg6[%c1_27, %c8_28, %c0_29] : memref<10x24x16xf32, #tpu.memory_space<vmem>>, vector<8x8x16xf32>
    tpu.vector_store %arg6[%c1_27, %c8_28, %c0_29], %18 {strides = array<i32>} : memref<10x24x16xf32, #tpu.memory_space<vmem>>, vector<8x8x16xf32>,
    %c0_i32_30 = arith.constant 0 : i32
    %c12_i32 = arith.constant 12 : i32
    %20 = arith.addi %c0_i32_30, %c12_i32 : i32
    %c1_i32_31 = arith.constant 1 : i32
    scf.for %arg8 = %c0_i32_30 to %20 step %c1_i32_31  : i32 {
      %24 = arith.index_cast %arg8 : i32 to index
      %c0_40 = arith.constant 0 : index
      %c0_41 = arith.constant 0 : index
      %25 = vector.load %arg3[%24, %c0_40, %c0_41] : memref<12x8x256xf32, #tpu.memory_space<vmem>>, vector<1x8x256xf32>
      %26 = vector.shape_cast %25 : vector<1x8x256xf32> to vector<8x256xf32>
      %c0_42 = arith.constant 0 : index
      %c7 = arith.constant 7 : index
      %c0_43 = arith.constant 0 : index
      %27 = vector.load %arg6[%c0_42, %c7, %c0_43] : memref<10x24x16xf32, #tpu.memory_space<vmem>>, vector<8x8x16xf32>
      %28 = vector.shape_cast %27 : vector<8x8x16xf32> to vector<64x16xf32>
      %c0_44 = arith.constant 0 : index
      %c0_45 = arith.constant 0 : index
      %29 = vector.load %arg7[%c0_44, %c0_45] : memref<256x256xf32, #tpu.memory_space<vmem>>, vector<64x16xf32>
      tpu.vector_store %arg7[%c0_44, %c0_45], %28 {strides = array<i32>} : memref<256x256xf32, #tpu.memory_space<vmem>>, vector<64x16xf32>,
      %c0_46 = arith.constant 0 : index
      %c8_47 = arith.constant 8 : index
      %c0_48 = arith.constant 0 : index
      %30 = vector.load %arg6[%c0_46, %c8_47, %c0_48] : memref<10x24x16xf32, #tpu.memory_space<vmem>>, vector<8x8x16xf32>
      %31 = vector.shape_cast %30 : vector<8x8x16xf32> to vector<64x16xf32>
      %c0_49 = arith.constant 0 : index
      %c16 = arith.constant 16 : index
      %32 = vector.load %arg7[%c0_49, %c16] : memref<256x256xf32, #tpu.memory_space<vmem>>, vector<64x16xf32>
      tpu.vector_store %arg7[%c0_49, %c16], %31 {strides = array<i32>} : memref<256x256xf32, #tpu.memory_space<vmem>>, vector<64x16xf32>,
      %c0_50 = arith.constant 0 : index
      %c9_51 = arith.constant 9 : index
      %c0_52 = arith.constant 0 : index
      %33 = vector.load %arg6[%c0_50, %c9_51, %c0_52] : memref<10x24x16xf32, #tpu.memory_space<vmem>>, vector<8x8x16xf32>
      %34 = vector.shape_cast %33 : vector<8x8x16xf32> to vector<64x16xf32>
      %c0_53 = arith.constant 0 : index
      %c32 = arith.constant 32 : index
      %35 = vector.load %arg7[%c0_53, %c32] : memref<256x256xf32, #tpu.memory_space<vmem>>, vector<64x16xf32>
      tpu.vector_store %arg7[%c0_53, %c32], %34 {strides = array<i32>} : memref<256x256xf32, #tpu.memory_space<vmem>>, vector<64x16xf32>,
      %c1_54 = arith.constant 1 : index
      %c7_55 = arith.constant 7 : index
      %c0_56 = arith.constant 0 : index
      %36 = vector.load %arg6[%c1_54, %c7_55, %c0_56] : memref<10x24x16xf32, #tpu.memory_space<vmem>>, vector<8x8x16xf32>
      %37 = vector.shape_cast %36 : vector<8x8x16xf32> to vector<64x16xf32>
      %c0_57 = arith.constant 0 : index
      %c48 = arith.constant 48 : index
      %38 = vector.load %arg7[%c0_57, %c48] : memref<256x256xf32, #tpu.memory_space<vmem>>, vector<64x16xf32>
      tpu.vector_store %arg7[%c0_57, %c48], %37 {strides = array<i32>} : memref<256x256xf32, #tpu.memory_space<vmem>>, vector<64x16xf32>,
      %c1_58 = arith.constant 1 : index
      %c8_59 = arith.constant 8 : index
      %c0_60 = arith.constant 0 : index
      %39 = vector.load %arg6[%c1_58, %c8_59, %c0_60] : memref<10x24x16xf32, #tpu.memory_space<vmem>>, vector<8x8x16xf32>
      %40 = vector.shape_cast %39 : vector<8x8x16xf32> to vector<64x16xf32>
      %c0_61 = arith.constant 0 : index
      %c64 = arith.constant 64 : index
      %41 = vector.load %arg7[%c0_61, %c64] : memref<256x256xf32, #tpu.memory_space<vmem>>, vector<64x16xf32>
      tpu.vector_store %arg7[%c0_61, %c64], %40 {strides = array<i32>} : memref<256x256xf32, #tpu.memory_space<vmem>>, vector<64x16xf32>,
      %c1_62 = arith.constant 1 : index
      %c9_63 = arith.constant 9 : index
      %c0_64 = arith.constant 0 : index
      %42 = vector.load %arg6[%c1_62, %c9_63, %c0_64] : memref<10x24x16xf32, #tpu.memory_space<vmem>>, vector<8x8x16xf32>
      %43 = vector.shape_cast %42 : vector<8x8x16xf32> to vector<64x16xf32>
      %c0_65 = arith.constant 0 : index
      %c80 = arith.constant 80 : index
      %44 = vector.load %arg7[%c0_65, %c80] : memref<256x256xf32, #tpu.memory_space<vmem>>, vector<64x16xf32>
      tpu.vector_store %arg7[%c0_65, %c80], %43 {strides = array<i32>} : memref<256x256xf32, #tpu.memory_space<vmem>>, vector<64x16xf32>,
      %c2_66 = arith.constant 2 : index
      %c7_67 = arith.constant 7 : index
      %c0_68 = arith.constant 0 : index
      %45 = vector.load %arg6[%c2_66, %c7_67, %c0_68] : memref<10x24x16xf32, #tpu.memory_space<vmem>>, vector<8x8x16xf32>
      %46 = vector.shape_cast %45 : vector<8x8x16xf32> to vector<64x16xf32>
      %c0_69 = arith.constant 0 : index
      %c96 = arith.constant 96 : index
      %47 = vector.load %arg7[%c0_69, %c96] : memref<256x256xf32, #tpu.memory_space<vmem>>, vector<64x16xf32>
      tpu.vector_store %arg7[%c0_69, %c96], %46 {strides = array<i32>} : memref<256x256xf32, #tpu.memory_space<vmem>>, vector<64x16xf32>,
      %c2_70 = arith.constant 2 : index
      %c8_71 = arith.constant 8 : index
      %c0_72 = arith.constant 0 : index
      %48 = vector.load %arg6[%c2_70, %c8_71, %c0_72] : memref<10x24x16xf32, #tpu.memory_space<vmem>>, vector<8x8x16xf32>
      %49 = vector.shape_cast %48 : vector<8x8x16xf32> to vector<64x16xf32>
      %c0_73 = arith.constant 0 : index
      %c112 = arith.constant 112 : index
      %50 = vector.load %arg7[%c0_73, %c112] : memref<256x256xf32, #tpu.memory_space<vmem>>, vector<64x16xf32>
      tpu.vector_store %arg7[%c0_73, %c112], %49 {strides = array<i32>} : memref<256x256xf32, #tpu.memory_space<vmem>>, vector<64x16xf32>,
      %c2_74 = arith.constant 2 : index
      %c9_75 = arith.constant 9 : index
      %c0_76 = arith.constant 0 : index
      %51 = vector.load %arg6[%c2_74, %c9_75, %c0_76] : memref<10x24x16xf32, #tpu.memory_space<vmem>>, vector<8x8x16xf32>
      %52 = vector.shape_cast %51 : vector<8x8x16xf32> to vector<64x16xf32>
      %c0_77 = arith.constant 0 : index
      %c128 = arith.constant 128 : index
      %53 = vector.load %arg7[%c0_77, %c128] : memref<256x256xf32, #tpu.memory_space<vmem>>, vector<64x16xf32>
      tpu.vector_store %arg7[%c0_77, %c128], %52 {strides = array<i32>} : memref<256x256xf32, #tpu.memory_space<vmem>>, vector<64x16xf32>,
      %c0_78 = arith.constant 0 : index
      %c0_79 = arith.constant 0 : index
      %54 = vector.load %arg7[%c0_78, %c0_79] : memref<256x256xf32, #tpu.memory_space<vmem>>, vector<64x256xf32>
      %cst_80 = arith.constant dense<0.000000e+00> : vector<64x8xf32>
      %55 = tpu.matmul %54, %26, %cst_80 {dimension_numbers = #tpu.dot_dimension_numbers<[1], [1], [0], [0], [0, 0, 1, 0], [], []>} : vector<64x256xf32>, vector<8x256xf32>, vector<64x8xf32> -> vector<64x8xf32>
      %cst_81 = arith.constant 0.000000e+00 : f32
      %56 = vector.broadcast %cst_81 : f32 to vector<64x8xf32>
      %57 = arith.maximumf %55, %56 : vector<64x8xf32>
      %58 = vector.shape_cast %57 : vector<64x8xf32> to vector<8x8x8xf32>
      %c1_82 = arith.constant 1 : index
      %c8_83 = arith.constant 8 : index
      %c0_84 = arith.constant 0 : index
      %59 = vector.load %arg6[%c1_82, %c8_83, %c0_84] : memref<10x24x16xf32, #tpu.memory_space<vmem>>, vector<8x8x8xf32>
      tpu.vector_store %arg6[%c1_82, %c8_83, %c0_84], %58 {strides = array<i32>} : memref<10x24x16xf32, #tpu.memory_space<vmem>>, vector<8x8x8xf32>,
    }
    %c12_i32_32 = arith.constant 12 : i32
    %c1_33 = arith.constant 1 : index
    %c8_34 = arith.constant 8 : index
    %c0_35 = arith.constant 0 : index
    %21 = vector.load %arg6[%c1_33, %c8_34, %c0_35] : memref<10x24x16xf32, #tpu.memory_space<vmem>>, vector<8x8x8xf32>
    %22 = vector.shape_cast %21 : vector<8x8x8xf32> to vector<1x8x8x8xf32>
    %c0_36 = arith.constant 0 : index
    %c0_37 = arith.constant 0 : index
    %c0_38 = arith.constant 0 : index
    %c0_39 = arith.constant 0 : index
    %23 = vector.load %arg4[%c0_36, %c0_37, %c0_38, %c0_39] : memref<1x8x8x8xf32, #tpu.memory_space<vmem>>, vector<1x8x8x8xf32>
    tpu.vector_store %arg4[%c0_36, %c0_37, %c0_38, %c0_39], %22 {strides = array<i32>} : memref<1x8x8x8xf32, #tpu.memory_space<vmem>>, vector<1x8x8x8xf32>,
    return
  }
  func.func @transform_0(%arg0: i32) -> (i32, i32, i32, i32) {
    %c0_i32 = arith.constant 0 : i32
    %c0_i32_0 = arith.constant 0 : i32
    %c0_i32_1 = arith.constant 0 : i32
    %c0_i32_2 = arith.constant 0 : i32
    return %arg0, %c0_i32, %c0_i32_0, %c0_i32_1 : i32, i32, i32, i32
  }
  func.func @transform_1(%arg0: i32) -> (i32, i32, i32) {
    %c0_i32 = arith.constant 0 : i32
    %c0_i32_0 = arith.constant 0 : i32
    %c0_i32_1 = arith.constant 0 : i32
    %c0_i32_2 = arith.constant 0 : i32
    return %c0_i32, %c0_i32_0, %c0_i32_1 : i32, i32, i32
  }
  func.func @transform_2(%arg0: i32) -> (i32, i32, i32) {
    %c0_i32 = arith.constant 0 : i32
    %c0_i32_0 = arith.constant 0 : i32
    %c0_i32_1 = arith.constant 0 : i32
    %c0_i32_2 = arith.constant 0 : i32
    return %c0_i32, %c0_i32_0, %c0_i32_1 : i32, i32, i32
  }
  func.func @transform_3(%arg0: i32) -> (i32, i32, i32, i32) {
    %c0_i32 = arith.constant 0 : i32
    %c0_i32_0 = arith.constant 0 : i32
    %c0_i32_1 = arith.constant 0 : i32
    %c0_i32_2 = arith.constant 0 : i32
    return %arg0, %c0_i32, %c0_i32_0, %c0_i32_1 : i32, i32, i32, i32
  }
}

</mosaic_0001>

<bundles_post_ra>
// kernel: encoder_forward.1
= control target key start
LH: loop header
LB: loop body
LE: loop exit
PB: predicated region body
PF: predicated region fallthrough
CT: control target
= control target key end

     0   :  { %8 = vsyncpa [#allocation6], 0  ;;  %s3197_s12 = smov 0   ;;  %s4774_s0 = inlined_call_operand.vmem [shape: f32[2,16,16,4], index: 0, kind: input, shape index: {}]   ;;  %s4775_s1 = inlined_call_operand.hbm [shape: f32[24,16,256], index: 1, kind: input, shape index: {}]   ;;  %s4776_s2 = inlined_call_operand.vmem [shape: f32[12,8,256], index: 2, kind: input, shape index: {}]   ;;  %s4777_s3 = inlined_call_operand.vmem [shape: f32[2,8,8,8], index: 3, kind: output, shape index: {}]  }
   0x1 LB: > { %s3203_s13 = sadd.s32 4294967295, %s3148_s12   ;;  %p3022_p0 = scmp.ge.s32.totalorder %s3148_s12, 1  ;;  %s3148_s12 = sphi %s3197_s12, %s14_s12  }
   0x2   : > { %p113_p1 = scmp.lt.s32.totalorder %s3148_s12, 3  ;;  %s3158_s14 = smov [#allocation5]  }
   0x3   : > { %s125_s15 = sshll.u32 %s3158_s14, 4  ;;  %p4778_p3 = scmp.eq.s32.totalorder %s3203_s13, 0  ;;  %s126_s15 = int_to_ptr.vmem [resolvable:$true] %s125_s15 }
   0x4   : > { %p3207_p2 = pnand %p3022_p0, %p113_p1  ;;  %s3102_s20 = scalar_lea.hbm %s4775_s1, 12288 }
   0x5   : > { %p3103_p6 = scmp.ne.s32.totalorder %s4775_s1, %s3102_s20  ;;  %p3109_p10 = scmp.lt.u32.totalorder %s3102_s20, %s4775_s1 }
   0x6   : > { %s4784_s16 = scalar_select %p3207_p2, 1, 0 }
   0x7   : > { %p3053_p4 = pneg %p3207_p2 }
   0x9   : > { %p3216_p5 = pnand %p4778_p3, %p3053_p4 }
   0xb   : > { %p3104_p7 = pneg %p3216_p5 }
   0xd   : > { %p3105_p8 = pnand %p3104_p7, %p3103_p6 }
   0xf   : > { %p3106_p9 = pneg %p3105_p8 }
  0x11   : > { %p3111_p11 = pnand %p3109_p10, %p3106_p9 }
  0x13   : > { %3114 = shalt.err (!%p3111_p11)
}
  0x14   : > { %s3115_s25 = scalar_lea.vmem %s126_s15, 12288  ;;  %p3123_p1 = scmp.lt.s32.totalorder %s126_s15, %s126_s15 }
  0x15   : > { %p3116_p12 = scmp.ne.s32.totalorder %s126_s15, %s3115_s25  ;;  %p3124_p4 = scmp.lt.s32.totalorder %s3115_s25, %s3115_s25 }
  0x17   : > { %p3118_p13 = pnand %p3116_p12, %p3104_p7  ;;  %p3125_p3 = por %p3124_p4, %p3123_p1 }
  0x19   : > { %p3119_p0 = pneg %p3118_p13 }
  0x1b   : > { %p3126_p2 = pnand %p3125_p3, %p3119_p0 }
  0x1d   : > { %3129 = shalt.err (!%p3126_p2)
}
  0x1e   : > { %s3159_s26 = smov 256   ;;  %s3160_s27 = smov 16  }
  0x1f   : > { %3056 = dma.hbm_to_vmem [thread:$0]  (!%p3216_p5), %s4775_s1, 12288, %s126_s15, [#allocation6], %s3159_s26, %s3159_s26, %s3160_s27  }
  0x20   : > { %p4786_p6 = scmp.ne.s32.totalorder %s4784_s16, 0 }
  0x21   : > { %p4787_p8 = scmp.eq.s32.totalorder (!%p4786_p6), %s3203_s13, 0 }
  0x22   : > { %152 = sbr.rel (%p4786_p6) target bundleno = 1397 (0x575), region = 32 }
  0x29   : > { %3143 = dma.done.wait (%p4787_p8), [#allocation6], 12288   ;;  %p4788_p7 = pmov %p4787_p8 }
  0x2a   : > { %vm186_vm0 = vcmask 130048   ;;  %vm289_vm1 = vcmask 1047680   ;;  %vm322_vm2 = vcmask 138368   ;;  %v3161_v0 = vmov 0.0   ;;  %p176_p2 = scmp.lt.s32.totalorder %s3203_s13, 1  ;;  %s3620_s11 = smov 0  }
  0x2b   : > { %3145 = vsyncadd (%p4788_p7), [#allocation6], 4294955008  ;;  %192 = vst.msk [vmem:[#allocation2 + $0x28] sm:$0xff] %vm186_vm0, %v3161_v0  ;;  %v3162_v1 = vmov 1.0   ;;  %vm388_vm3 = vcmask 31744  }
  0x2c   : > { %187 = vst.msk [vmem:[#allocation2] sm:$0xff] %vm186_vm0, %v3161_v0  ;;  %188 = vst.msk [vmem:[#allocation2 + $0x8] sm:$0xff] %vm186_vm0, %v3161_v0  ;;  %s4796_s13 = smov (!%p176_p2, %s3203_s13), 1 }
  0x2d   : > { %189 = vst.msk [vmem:[#allocation2 + $0x10] sm:$0xff] %vm186_vm0, %v3161_v0  ;;  %190 = vst.msk [vmem:[#allocation2 + $0x18] sm:$0xff] %vm186_vm0, %v3161_v0  ;;  %s3037_s30 = sshll.u32 %s4796_s13, 8  ;;  %s3038_s4 = sshll.u32 %s4796_s13, 6 }
  0x2e   : > { %191 = vst.msk [vmem:[#allocation2 + $0x20] sm:$0xff] %vm186_vm0, %v3161_v0  ;;  %193 = vst.msk [vmem:[#allocation2 + $0x30] sm:$0xff] %vm186_vm0, %v3161_v0  ;;  %s3549_s7 = scalar_lea.vmem %s4774_s0, %s3037_s30  ;;  %s3554_s10 = scalar_lea.vmem %s4777_s3, %s3038_s4 }
  0x2f   : > { %194 = vst.msk [vmem:[#allocation2 + $0x38] sm:$0xff] %vm186_vm0, %v3161_v0  ;;  %195 = vst.msk [vmem:[#allocation2 + $0x40] sm:$0xff] %vm186_vm0, %v3161_v0  ;;  %v355_v2 = vld [vmem:[%s3549_s7] sm:$0xff]  ;;  %v356_v3 = vld [vmem:[%s3549_s7 + $0x8] sm:$0xff] }
  0x30   : > { %196 = vst.msk [vmem:[#allocation2 + $0x48] sm:$0xff] %vm186_vm0, %v3161_v0  ;;  %197 = vst.msk [vmem:[#allocation2 + $0x50] sm:$0xff] %vm186_vm0, %v3161_v0  ;;  %v357_v4 = vld [vmem:[%s3549_s7 + $0x10] sm:$0xff]  ;;  %v358_v5 = vld [vmem:[%s3549_s7 + $0x18] sm:$0xff] }
  0x31   : > { %198 = vst.msk [vmem:[#allocation2 + $0x58] sm:$0xff] %vm186_vm0, %v3161_v0  ;;  %199 = vst.msk [vmem:[#allocation2 + $0x60] sm:$0xff] %vm186_vm0, %v3161_v0  ;;  %v359_v6 = vld [vmem:[%s3549_s7 + $0x20] sm:$0xff]  ;;  %v360_v7 = vld [vmem:[%s3549_s7 + $0x28] sm:$0xff] }
  0x32   : > { %200 = vst.msk [vmem:[#allocation2 + $0x68] sm:$0xff] %vm186_vm0, %v3161_v0  ;;  %201 = vst.msk [vmem:[#allocation2 + $0x70] sm:$0xff] %vm186_vm0, %v3161_v0  ;;  %v361_v8 = vld [vmem:[%s3549_s7 + $0x30] sm:$0xff]  ;;  %v362_v9 = vld [vmem:[%s3549_s7 + $0x38] sm:$0xff] }
  0x33   : > { %202 = vst.msk [vmem:[#allocation2 + $0x78] sm:$0xff] %vm186_vm0, %v3161_v0  ;;  %203 = vst.msk [vmem:[#allocation2 + $0x80] sm:$0xff] %vm186_vm0, %v3161_v0  ;;  %v363_v10 = vld [vmem:[%s3549_s7 + $0x40] sm:$0xff]  ;;  %v364_v11 = vld [vmem:[%s3549_s7 + $0x48] sm:$0xff] }
  0x34   : > { %204 = vst.msk [vmem:[#allocation2 + $0x88] sm:$0xff] %vm186_vm0, %v3161_v0  ;;  %205 = vst.msk [vmem:[#allocation2 + $0x90] sm:$0xff] %vm186_vm0, %v3161_v0  ;;  %v365_v12 = vld [vmem:[%s3549_s7 + $0x50] sm:$0xff]  ;;  %v366_v13 = vld [vmem:[%s3549_s7 + $0x58] sm:$0xff] }
  0x35   : > { %206 = vst.msk [vmem:[#allocation2 + $0x98] sm:$0xff] %vm186_vm0, %v3161_v0  ;;  %207 = vst.msk [vmem:[#allocation2 + $0xa0] sm:$0xff] %vm186_vm0, %v3161_v0  ;;  %v367_v14 = vld [vmem:[%s3549_s7 + $0x60] sm:$0xff]  ;;  %v368_v15 = vld [vmem:[%s3549_s7 + $0x68] sm:$0xff] }
  0x36   : > { %208 = vst.msk [vmem:[#allocation2 + $0xa8] sm:$0xff] %vm186_vm0, %v3161_v0  ;;  %209 = vst.msk [vmem:[#allocation2 + $0xb0] sm:$0xff] %vm186_vm0, %v3161_v0  ;;  %v369_v16 = vld [vmem:[%s3549_s7 + $0x70] sm:$0xff]  ;;  %v370_v17 = vld [vmem:[%s3549_s7 + $0x78] sm:$0xff] }
  0x37   : > { %210 = vst.msk [vmem:[#allocation2 + $0xb8] sm:$0xff] %vm186_vm0, %v3161_v0  ;;  %211 = vst.msk [vmem:[#allocation2 + $0xc0] sm:$0xff] %vm186_vm0, %v3161_v0  ;;  %v371_v18 = vld [vmem:[%s3549_s7 + $0x80] sm:$0xff]  ;;  %v372_v19 = vld [vmem:[%s3549_s7 + $0x88] sm:$0xff] }
  0x38   : > { %212 = vst.msk [vmem:[#allocation2 + $0xc8] sm:$0xff] %vm186_vm0, %v3161_v0  ;;  %213 = vst.msk [vmem:[#allocation2 + $0xd0] sm:$0xff] %vm186_vm0, %v3161_v0  ;;  %v373_v20 = vld [vmem:[%s3549_s7 + $0x90] sm:$0xff]  ;;  %v374_v21 = vld [vmem:[%s3549_s7 + $0x98] sm:$0xff] }
  0x39   : > { %214 = vst.msk [vmem:[#allocation2 + $0xd8] sm:$0xff] %vm186_vm0, %v3161_v0  ;;  %215 = vst.msk [vmem:[#allocation2 + $0xe0] sm:$0xff] %vm186_vm0, %v3161_v0  ;;  %v375_v22 = vld [vmem:[%s3549_s7 + $0xa0] sm:$0xff]  ;;  %v376_v23 = vld [vmem:[%s3549_s7 + $0xa8] sm:$0xff] }
  0x3a   : > { %216 = vst.msk [vmem:[#allocation2 + $0xe8] sm:$0xff] %vm186_vm0, %v3161_v0  ;;  %217 = vst.msk [vmem:[#allocation2 + $0xf0] sm:$0xff] %vm186_vm0, %v3161_v0  ;;  %v377_v24 = vld [vmem:[%s3549_s7 + $0xb0] sm:$0xff]  ;;  %v378_v25 = vld [vmem:[%s3549_s7 + $0xb8] sm:$0xff] }
  0x3b   : > { %218 = vst.msk [vmem:[#allocation2 + $0xf8] sm:$0xff] %vm186_vm0, %v3161_v0  ;;  %219 = vst.msk [vmem:[#allocation2 + $0x100] sm:$0xff] %vm186_vm0, %v3161_v0  ;;  %v379_v26 = vld [vmem:[%s3549_s7 + $0xc0] sm:$0xff]  ;;  %v380_v27 = vld [vmem:[%s3549_s7 + $0xc8] sm:$0xff] }
  0x3c   : > { %220 = vst.msk [vmem:[#allocation2 + $0x108] sm:$0xff] %vm186_vm0, %v3161_v0  ;;  %221 = vst.msk [vmem:[#allocation2 + $0x110] sm:$0xff] %vm186_vm0, %v3161_v0  ;;  %v381_v28 = vld [vmem:[%s3549_s7 + $0xd0] sm:$0xff]  ;;  %v382_v29 = vld [vmem:[%s3549_s7 + $0xd8] sm:$0xff] }
  0x3d   : > { %222 = vst.msk [vmem:[#allocation2 + $0x118] sm:$0xff] %vm186_vm0, %v3161_v0  ;;  %223 = vst.msk [vmem:[#allocation2 + $0x120] sm:$0xff] %vm186_vm0, %v3161_v0  ;;  %v383_v30 = vld [vmem:[%s3549_s7 + $0xe0] sm:$0xff]  ;;  %v384_v31 = vld [vmem:[%s3549_s7 + $0xe8] sm:$0xff] }
  0x3e   : > { %224 = vst.msk [vmem:[#allocation2 + $0x128] sm:$0xff] %vm186_vm0, %v3161_v0  ;;  %225 = vst.msk [vmem:[#allocation2 + $0x130] sm:$0xff] %vm186_vm0, %v3161_v0  ;;  %v385_v32 = vld [vmem:[%s3549_s7 + $0xf0] sm:$0xff]  ;;  %v386_v33 = vld [vmem:[%s3549_s7 + $0xf8] sm:$0xff] }
  0x3f   : > { %226 = vst.msk [vmem:[#allocation2 + $0x138] sm:$0xff] %vm186_vm0, %v3161_v0  ;;  %227 = vst.msk [vmem:[#allocation2 + $0x140] sm:$0xff] %vm186_vm0, %v3161_v0 }
  0x40   : > { %228 = vst.msk [vmem:[#allocation2 + $0x148] sm:$0xff] %vm186_vm0, %v3161_v0  ;;  %229 = vst.msk [vmem:[#allocation2 + $0x150] sm:$0xff] %vm186_vm0, %v3161_v0 }
  0x41   : > { %230 = vst.msk [vmem:[#allocation2 + $0x158] sm:$0xff] %vm186_vm0, %v3161_v0  ;;  %231 = vst.msk [vmem:[#allocation2 + $0x160] sm:$0xff] %vm186_vm0, %v3161_v0 }
  0x42   : > { %232 = vst.msk [vmem:[#allocation2 + $0x168] sm:$0xff] %vm186_vm0, %v3161_v0  ;;  %233 = vst.msk [vmem:[#allocation2 + $0x170] sm:$0xff] %vm186_vm0, %v3161_v0 }
  0x43   : > { %234 = vst.msk [vmem:[#allocation2 + $0x178] sm:$0xff] %vm186_vm0, %v3161_v0  ;;  %235 = vst.msk [vmem:[#allocation2 + $0x180] sm:$0xff] %vm186_vm0, %v3161_v0 }
  0x44   : > { %236 = vst.msk [vmem:[#allocation2 + $0x188] sm:$0xff] %vm186_vm0, %v3161_v0  ;;  %237 = vst.msk [vmem:[#allocation2 + $0x190] sm:$0xff] %vm186_vm0, %v3161_v0 }
  0x45   : > { %238 = vst.msk [vmem:[#allocation2 + $0x198] sm:$0xff] %vm186_vm0, %v3161_v0  ;;  %239 = vst.msk [vmem:[#allocation2 + $0x1a0] sm:$0xff] %vm186_vm0, %v3161_v0 }
  0x46   : > { %240 = vst.msk [vmem:[#allocation2 + $0x1a8] sm:$0xff] %vm186_vm0, %v3161_v0  ;;  %241 = vst.msk [vmem:[#allocation2 + $0x1b0] sm:$0xff] %vm186_vm0, %v3161_v0 }
  0x47   : > { %242 = vst.msk [vmem:[#allocation2 + $0x1b8] sm:$0xff] %vm186_vm0, %v3161_v0  ;;  %243 = vst.msk [vmem:[#allocation2 + $0x1c0] sm:$0xff] %vm186_vm0, %v3161_v0 }
  0x48   : > { %244 = vst.msk [vmem:[#allocation2 + $0x1c8] sm:$0xff] %vm186_vm0, %v3161_v0  ;;  %245 = vst.msk [vmem:[#allocation2 + $0x1d0] sm:$0xff] %vm186_vm0, %v3161_v0 }
  0x49   : > { %246 = vst.msk [vmem:[#allocation2 + $0x1d8] sm:$0xff] %vm186_vm0, %v3161_v0  ;;  %247 = vst.msk [vmem:[#allocation2 + $0x1e0] sm:$0xff] %vm186_vm0, %v3161_v0 }
  0x4a   : > { %248 = vst.msk [vmem:[#allocation2 + $0x1e8] sm:$0xff] %vm186_vm0, %v3161_v0  ;;  %249 = vst.msk [vmem:[#allocation2 + $0x1f0] sm:$0xff] %vm186_vm0, %v3161_v0 }
  0x4b   : > { %250 = vst.msk [vmem:[#allocation2 + $0x1f8] sm:$0xff] %vm186_vm0, %v3161_v0  ;;  %251 = vst.msk [vmem:[#allocation2 + $0x200] sm:$0xff] %vm186_vm0, %v3161_v0 }
  0x4c   : > { %252 = vst.msk [vmem:[#allocation2 + $0x208] sm:$0xff] %vm186_vm0, %v3161_v0  ;;  %253 = vst.msk [vmem:[#allocation2 + $0x210] sm:$0xff] %vm186_vm0, %v3161_v0 }
  0x4d   : > { %254 = vst.msk [vmem:[#allocation2 + $0x218] sm:$0xff] %vm186_vm0, %v3161_v0  ;;  %255 = vst.msk [vmem:[#allocation2 + $0x220] sm:$0xff] %vm186_vm0, %v3161_v0 }
  0x4e   : > { %256 = vst.msk [vmem:[#allocation2 + $0x228] sm:$0xff] %vm186_vm0, %v3161_v0  ;;  %257 = vst.msk [vmem:[#allocation2 + $0x230] sm:$0xff] %vm186_vm0, %v3161_v0 }
  0x4f   : > { %258 = vst.msk [vmem:[#allocation2 + $0x238] sm:$0xff] %vm186_vm0, %v3161_v0  ;;  %259 = vst.msk [vmem:[#allocation3] sm:$0xff] %vm186_vm0, %v3161_v0 }
  0x50   : > { %260 = vst.msk [vmem:[#allocation3 + $0x8] sm:$0xff] %vm186_vm0, %v3161_v0  ;;  %261 = vst.msk [vmem:[#allocation3 + $0x10] sm:$0xff] %vm186_vm0, %v3161_v0 }
  0x51   : > { %262 = vst.msk [vmem:[#allocation3 + $0x18] sm:$0xff] %vm186_vm0, %v3161_v0  ;;  %263 = vst.msk [vmem:[#allocation3 + $0x20] sm:$0xff] %vm186_vm0, %v3161_v0 }
  0x52   : > { %264 = vst.msk [vmem:[#allocation3 + $0x28] sm:$0xff] %vm186_vm0, %v3161_v0  ;;  %265 = vst.msk [vmem:[#allocation3 + $0x30] sm:$0xff] %vm186_vm0, %v3161_v0 }
  0x53   : > { %266 = vst.msk [vmem:[#allocation3 + $0x38] sm:$0xff] %vm186_vm0, %v3161_v0  ;;  %267 = vst.msk [vmem:[#allocation3 + $0x40] sm:$0xff] %vm186_vm0, %v3161_v0 }
  0x54   : > { %268 = vst.msk [vmem:[#allocation3 + $0x48] sm:$0xff] %vm186_vm0, %v3161_v0  ;;  %269 = vst.msk [vmem:[#allocation3 + $0x50] sm:$0xff] %vm186_vm0, %v3161_v0 }
  0x55   : > { %270 = vst.msk [vmem:[#allocation3 + $0x58] sm:$0xff] %vm186_vm0, %v3161_v0  ;;  %271 = vst.msk [vmem:[#allocation3 + $0x60] sm:$0xff] %vm186_vm0, %v3161_v0 }
  0x56   : > { %272 = vst.msk [vmem:[#allocation3 + $0x68] sm:$0xff] %vm186_vm0, %v3161_v0  ;;  %273 = vst.msk [vmem:[#allocation3 + $0x70] sm:$0xff] %vm186_vm0, %v3161_v0 }
  0x57   : > { %274 = vst.msk [vmem:[#allocation3 + $0x78] sm:$0xff] %vm186_vm0, %v3161_v0  ;;  %275 = vst.msk [vmem:[#allocation3 + $0x80] sm:$0xff] %vm186_vm0, %v3161_v0 }
  0x58   : > { %276 = vst.msk [vmem:[#allocation3 + $0x88] sm:$0xff] %vm186_vm0, %v3161_v0  ;;  %277 = vst.msk [vmem:[#allocation3 + $0x90] sm:$0xff] %vm186_vm0, %v3161_v0 }
  0x59   : > { %278 = vst.msk [vmem:[#allocation3 + $0x98] sm:$0xff] %vm186_vm0, %v3161_v0  ;;  %279 = vst.msk [vmem:[#allocation3 + $0xa0] sm:$0xff] %vm186_vm0, %v3161_v0 }
  0x5a   : > { %280 = vst.msk [vmem:[#allocation3 + $0xa8] sm:$0xff] %vm186_vm0, %v3161_v0  ;;  %281 = vst.msk [vmem:[#allocation3 + $0xb0] sm:$0xff] %vm186_vm0, %v3161_v0 }
  0x5b   : > { %282 = vst.msk [vmem:[#allocation3 + $0xb8] sm:$0xff] %vm186_vm0, %v3161_v0  ;;  %283 = vst.msk [vmem:[#allocation3 + $0xc0] sm:$0xff] %vm186_vm0, %v3161_v0 }
  0x5c   : > { %284 = vst.msk [vmem:[#allocation3 + $0xc8] sm:$0xff] %vm186_vm0, %v3161_v0  ;;  %285 = vst.msk [vmem:[#allocation3 + $0xd0] sm:$0xff] %vm186_vm0, %v3161_v0 }
  0x5d   : > { %286 = vst.msk [vmem:[#allocation3 + $0xd8] sm:$0xff] %vm186_vm0, %v3161_v0  ;;  %287 = vst.msk [vmem:[#allocation3 + $0xe0] sm:$0xff] %vm186_vm0, %v3161_v0 }
  0x5e   : > { %288 = vst.msk [vmem:[#allocation3 + $0xe8] sm:$0xff] %vm186_vm0, %v3161_v0 }
  0x5f   : > { %290 = vst.msk [vmem:[#allocation4 + $0x8] sm:$0xff] %vm289_vm1, %v3161_v0  ;;  %291 = vst.msk [vmem:[#allocation4 + $0x18] sm:$0xff] %vm289_vm1, %v3161_v0 }
  0x60   : > { %292 = vst.msk [vmem:[#allocation4 + $0x28] sm:$0xff] %vm289_vm1, %v3161_v0  ;;  %293 = vst.msk [vmem:[#allocation4 + $0x38] sm:$0xff] %vm289_vm1, %v3161_v0 }
  0x61   : > { %294 = vst.msk [vmem:[#allocation4 + $0x48] sm:$0xff] %vm289_vm1, %v3161_v0  ;;  %295 = vst.msk [vmem:[#allocation4 + $0x58] sm:$0xff] %vm289_vm1, %v3161_v0 }
  0x62   : > { %296 = vst.msk [vmem:[#allocation4 + $0x68] sm:$0xff] %vm289_vm1, %v3161_v0  ;;  %297 = vst.msk [vmem:[#allocation4 + $0x78] sm:$0xff] %vm289_vm1, %v3161_v0 }
  0x63   : > { %298 = vst.msk [vmem:[#allocation4 + $0x88] sm:$0xff] %vm289_vm1, %v3161_v0  ;;  %299 = vst.msk [vmem:[#allocation4 + $0x98] sm:$0xff] %vm289_vm1, %v3161_v0 }
  0x64   : > { %300 = vst.msk [vmem:[#allocation4 + $0xa8] sm:$0xff] %vm289_vm1, %v3161_v0  ;;  %301 = vst.msk [vmem:[#allocation4 + $0xb8] sm:$0xff] %vm289_vm1, %v3161_v0 }
  0x65   : > { %302 = vst.msk [vmem:[#allocation4 + $0xc8] sm:$0xff] %vm289_vm1, %v3161_v0  ;;  %303 = vst.msk [vmem:[#allocation4 + $0xd8] sm:$0xff] %vm289_vm1, %v3161_v0 }
  0x66   : > { %304 = vst.msk [vmem:[#allocation4 + $0xe8] sm:$0xff] %vm289_vm1, %v3161_v0  ;;  %305 = vst.msk [vmem:[#allocation4 + $0xf8] sm:$0xff] %vm289_vm1, %v3161_v0 }
  0x67   : > { %306 = vst.msk [vmem:[#allocation4 + $0x108] sm:$0xff] %vm289_vm1, %v3161_v0  ;;  %307 = vst.msk [vmem:[#allocation4 + $0x118] sm:$0xff] %vm289_vm1, %v3161_v0 }
  0x68   : > { %308 = vst.msk [vmem:[#allocation4 + $0x128] sm:$0xff] %vm289_vm1, %v3161_v0  ;;  %309 = vst.msk [vmem:[#allocation4 + $0x138] sm:$0xff] %vm289_vm1, %v3161_v0 }
  0x69   : > { %310 = vst.msk [vmem:[#allocation4 + $0x148] sm:$0xff] %vm289_vm1, %v3161_v0  ;;  %311 = vst.msk [vmem:[#allocation4 + $0x158] sm:$0xff] %vm289_vm1, %v3161_v0 }
  0x6a   : > { %312 = vst.msk [vmem:[#allocation4 + $0x168] sm:$0xff] %vm289_vm1, %v3161_v0  ;;  %313 = vst.msk [vmem:[#allocation4 + $0x178] sm:$0xff] %vm289_vm1, %v3161_v0 }
  0x6b   : > { %314 = vst.msk [vmem:[#allocation4 + $0x188] sm:$0xff] %vm289_vm1, %v3161_v0  ;;  %315 = vst.msk [vmem:[#allocation4 + $0x198] sm:$0xff] %vm289_vm1, %v3161_v0 }
  0x6c   : > { %316 = vst.msk [vmem:[#allocation4 + $0x1a8] sm:$0xff] %vm289_vm1, %v3161_v0  ;;  %317 = vst.msk [vmem:[#allocation4 + $0x1b8] sm:$0xff] %vm289_vm1, %v3161_v0 }
  0x6d   : > { %318 = vst.msk [vmem:[#allocation4 + $0x1c8] sm:$0xff] %vm289_vm1, %v3161_v0  ;;  %319 = vst.msk [vmem:[#allocation4 + $0x1d8] sm:$0xff] %vm289_vm1, %v3161_v0 }
  0x6e   : > { %320 = vst.msk [vmem:[#allocation4 + $0x1e8] sm:$0xff] %vm289_vm1, %v3161_v0  ;;  %321 = vst.msk [vmem:[#allocation4 + $0x1f8] sm:$0xff] %vm289_vm1, %v3161_v0 }
  0x6f   : > { %323 = vst.msk [vmem:[#allocation4 + $0x8] sm:$0xff] %vm322_vm2, %v3162_v1  ;;  %324 = vst.msk [vmem:[#allocation4 + $0x18] sm:$0xff] %vm322_vm2, %v3162_v1 }
  0x70   : > { %325 = vst.msk [vmem:[#allocation4 + $0x28] sm:$0xff] %vm322_vm2, %v3162_v1  ;;  %326 = vst.msk [vmem:[#allocation4 + $0x38] sm:$0xff] %vm322_vm2, %v3162_v1 }
  0x71   : > { %327 = vst.msk [vmem:[#allocation4 + $0x48] sm:$0xff] %vm322_vm2, %v3162_v1  ;;  %328 = vst.msk [vmem:[#allocation4 + $0x58] sm:$0xff] %vm322_vm2, %v3162_v1 }
  0x72   : > { %329 = vst.msk [vmem:[#allocation4 + $0x68] sm:$0xff] %vm322_vm2, %v3162_v1  ;;  %330 = vst.msk [vmem:[#allocation4 + $0x78] sm:$0xff] %vm322_vm2, %v3162_v1 }
  0x73   : > { %331 = vst.msk [vmem:[#allocation4 + $0x88] sm:$0xff] %vm322_vm2, %v3162_v1  ;;  %332 = vst.msk [vmem:[#allocation4 + $0x98] sm:$0xff] %vm322_vm2, %v3162_v1 }
  0x74   : > { %333 = vst.msk [vmem:[#allocation4 + $0xa8] sm:$0xff] %vm322_vm2, %v3162_v1  ;;  %334 = vst.msk [vmem:[#allocation4 + $0xb8] sm:$0xff] %vm322_vm2, %v3162_v1 }
  0x75   : > { %335 = vst.msk [vmem:[#allocation4 + $0xc8] sm:$0xff] %vm322_vm2, %v3162_v1  ;;  %336 = vst.msk [vmem:[#allocation4 + $0xd8] sm:$0xff] %vm322_vm2, %v3162_v1 }
  0x76   : > { %337 = vst.msk [vmem:[#allocation4 + $0xe8] sm:$0xff] %vm322_vm2, %v3162_v1  ;;  %338 = vst.msk [vmem:[#allocation4 + $0xf8] sm:$0xff] %vm322_vm2, %v3162_v1 }
  0x77   : > { %339 = vst.msk [vmem:[#allocation4 + $0x108] sm:$0xff] %vm322_vm2, %v3162_v1  ;;  %340 = vst.msk [vmem:[#allocation4 + $0x118] sm:$0xff] %vm322_vm2, %v3162_v1 }
  0x78   : > { %341 = vst.msk [vmem:[#allocation4 + $0x128] sm:$0xff] %vm322_vm2, %v3162_v1  ;;  %342 = vst.msk [vmem:[#allocation4 + $0x138] sm:$0xff] %vm322_vm2, %v3162_v1 }
  0x79   : > { %343 = vst.msk [vmem:[#allocation4 + $0x148] sm:$0xff] %vm322_vm2, %v3162_v1  ;;  %344 = vst.msk [vmem:[#allocation4 + $0x158] sm:$0xff] %vm322_vm2, %v3162_v1 }
  0x7a   : > { %345 = vst.msk [vmem:[#allocation4 + $0x168] sm:$0xff] %vm322_vm2, %v3162_v1  ;;  %346 = vst.msk [vmem:[#allocation4 + $0x178] sm:$0xff] %vm322_vm2, %v3162_v1 }
  0x7b   : > { %347 = vst.msk [vmem:[#allocation4 + $0x188] sm:$0xff] %vm322_vm2, %v3162_v1  ;;  %348 = vst.msk [vmem:[#allocation4 + $0x198] sm:$0xff] %vm322_vm2, %v3162_v1 }
  0x7c   : > { %349 = vst.msk [vmem:[#allocation4 + $0x1a8] sm:$0xff] %vm322_vm2, %v3162_v1  ;;  %350 = vst.msk [vmem:[#allocation4 + $0x1b8] sm:$0xff] %vm322_vm2, %v3162_v1 }
  0x7d   : > { %351 = vst.msk [vmem:[#allocation4 + $0x1c8] sm:$0xff] %vm322_vm2, %v3162_v1  ;;  %352 = vst.msk [vmem:[#allocation4 + $0x1d8] sm:$0xff] %vm322_vm2, %v3162_v1 }
  0x7e   : > { %353 = vst.msk [vmem:[#allocation4 + $0x1e8] sm:$0xff] %vm322_vm2, %v3162_v1  ;;  %354 = vst.msk [vmem:[#allocation4 + $0x1f8] sm:$0xff] %vm322_vm2, %v3162_v1 }
  0x7f   : > { %389 = vst.msk [vmem:[#allocation2 + $0x28] sm:$0xff] %vm388_vm3, %v355_v2  ;;  %390 = vst.msk [vmem:[#allocation2 + $0x30] sm:$0xff] %vm388_vm3, %v356_v3 }
  0x80   : > { %391 = vst.msk [vmem:[#allocation2 + $0x48] sm:$0xff] %vm388_vm3, %v357_v4  ;;  %392 = vst.msk [vmem:[#allocation2 + $0x50] sm:$0xff] %vm388_vm3, %v358_v5 }
  0x81   : > { %393 = vst.msk [vmem:[#allocation2 + $0x68] sm:$0xff] %vm388_vm3, %v359_v6  ;;  %394 = vst.msk [vmem:[#allocation2 + $0x70] sm:$0xff] %vm388_vm3, %v360_v7 }
  0x82   : > { %395 = vst.msk [vmem:[#allocation2 + $0x88] sm:$0xff] %vm388_vm3, %v361_v8  ;;  %396 = vst.msk [vmem:[#allocation2 + $0x90] sm:$0xff] %vm388_vm3, %v362_v9 }
  0x83   : > { %397 = vst.msk [vmem:[#allocation2 + $0xa8] sm:$0xff] %vm388_vm3, %v363_v10  ;;  %398 = vst.msk [vmem:[#allocation2 + $0xb0] sm:$0xff] %vm388_vm3, %v364_v11 }
  0x84   : > { %399 = vst.msk [vmem:[#allocation2 + $0xc8] sm:$0xff] %vm388_vm3, %v365_v12  ;;  %400 = vst.msk [vmem:[#allocation2 + $0xd0] sm:$0xff] %vm388_vm3, %v366_v13 }
  0x85   : > { %401 = vst.msk [vmem:[#allocation2 + $0xe8] sm:$0xff] %vm388_vm3, %v367_v14  ;;  %402 = vst.msk [vmem:[#allocation2 + $0xf0] sm:$0xff] %vm388_vm3, %v368_v15 }
  0x86   : > { %403 = vst.msk [vmem:[#allocation2 + $0x108] sm:$0xff] %vm388_vm3, %v369_v16  ;;  %404 = vst.msk [vmem:[#allocation2 + $0x110] sm:$0xff] %vm388_vm3, %v370_v17 }
  0x87   : > { %405 = vst.msk [vmem:[#allocation2 + $0x128] sm:$0xff] %vm388_vm3, %v371_v18  ;;  %406 = vst.msk [vmem:[#allocation2 + $0x130] sm:$0xff] %vm388_vm3, %v372_v19 }
  0x88   : > { %407 = vst.msk [vmem:[#allocation2 + $0x148] sm:$0xff] %vm388_vm3, %v373_v20  ;;  %408 = vst.msk [vmem:[#allocation2 + $0x150] sm:$0xff] %vm388_vm3, %v374_v21 }
  0x89   : > { %409 = vst.msk [vmem:[#allocation2 + $0x168] sm:$0xff] %vm388_vm3, %v375_v22  ;;  %410 = vst.msk [vmem:[#allocation2 + $0x170] sm:$0xff] %vm388_vm3, %v376_v23 }
  0x8a   : > { %411 = vst.msk [vmem:[#allocation2 + $0x188] sm:$0xff] %vm388_vm3, %v377_v24  ;;  %412 = vst.msk [vmem:[#allocation2 + $0x190] sm:$0xff] %vm388_vm3, %v378_v25 }
  0x8b   : > { %413 = vst.msk [vmem:[#allocation2 + $0x1a8] sm:$0xff] %vm388_vm3, %v379_v26  ;;  %414 = vst.msk [vmem:[#allocation2 + $0x1b0] sm:$0xff] %vm388_vm3, %v380_v27 }
  0x8c   : > { %415 = vst.msk [vmem:[#allocation2 + $0x1c8] sm:$0xff] %vm388_vm3, %v381_v28  ;;  %416 = vst.msk [vmem:[#allocation2 + $0x1d0] sm:$0xff] %vm388_vm3, %v382_v29 }
  0x8d   : > { %417 = vst.msk [vmem:[#allocation2 + $0x1e8] sm:$0xff] %vm388_vm3, %v383_v30  ;;  %418 = vst.msk [vmem:[#allocation2 + $0x1f0] sm:$0xff] %vm388_vm3, %v384_v31 }
  0x8e   : > { %419 = vst.msk [vmem:[#allocation2 + $0x208] sm:$0xff] %vm388_vm3, %v385_v32  ;;  %420 = vst.msk [vmem:[#allocation2 + $0x210] sm:$0xff] %vm388_vm3, %v386_v33 }
  0x8f LB: >> { %v3625_v34 = vld [vmem:[#allocation2 + $0x28] sm:$0xff]  ;;  %s3163_s13 = smov 16   ;;  %v3630_v36 = vld [vmem:[#allocation2 + $0x30] sm:$0xff]  ;;  %s3164_s14 = smov 32   ;;  %vm658_vm4 = vcmask 261248   ;;  %vm851_vm5 = vcmask 392448   ;;  %s3152_s11 = sphi %s3620_s11, %s426_s11  }
  0x90   : >> { %v498_v35 = vld [vmem:[#allocation2 + $0x8] sm:$0xff]  ;;  %566 = vrot.lane.b32.xlu1 %v3625_v34, %s3163_s13  ;;  %v499_v37 = vld [vmem:[#allocation2 + $0x10] sm:$0xff]  ;;  %s3165_s15 = smov 48   ;;  %s3039_s16 = sshll.u32 %s3152_s11, 5  ;;  %vm1044_vm6 = vcmask 523648   ;;  %vm1237_vm7 = vcmask 654848  }
  0x91   : >> { %562 = vrot.lane.b32.xlu0 %v498_v35, %s3163_s13  ;;  %v3635_v38 = vld [vmem:[#allocation2 + $0x50] sm:$0xff]  ;;  %v3637_v39 = vld [vmem:[#allocation2 + $0x48] sm:$0xff]  ;;  %s3166_s17 = smov 64   ;;  %s429_s18 = scalar_lea.vmem [#allocation5], %s3039_s16  ;;  %vm1430_vm8 = vcmask 786048   ;;  %vm1624_vm9 = vcmask 917248  }
  0x92   : >> { %v3643_v40 = vld [vmem:[#allocation2 + $0x70] sm:$0xff]  ;;  %v3645_v41 = vld [vmem:[#allocation2 + $0x68] sm:$0xff]  ;;  %s3167_s19 = smov 80   ;;  %s3168_s20 = smov 96   ;;  %vm1817_vm10 = vcmask 1048448  }
  0x93   : >> { %v3647_v42 = vld [vmem:[#allocation2 + $0x51] sm:$0xff]  ;;  %v3649_v43 = vld [vmem:[#allocation2 + $0x49] sm:$0xff]  ;;  %s3169_s21 = smov 112   ;;  %s426_s11 = sadd.s32 1, %s3152_s11  }
  0x94   : >> { %568 = vrot.lane.b32.xlu1 %v3630_v36, %s3163_s13  ;;  %v3655_v44 = vld [vmem:[#allocation2 + $0x69] sm:$0xff]  ;;  %1882 = vst.msk [vmem:[#allocation4 + $0x8] sm:$0xff] %vm186_vm0, %v3649_v43  ;;  %1883 = vst.msk [vmem:[#allocation4 + $0x18] sm:$0xff] %vm186_vm0, %v3647_v42  ;;  %v3811_v28 = vld [vmem:[#allocation2 + $0x151] sm:$0xff]  ;;  %p423_p3 = scmp.ge.s32.totalorder %s426_s11, 24  }
  0x95   : >> { %564 = vrot.lane.b32.xlu0 %v499_v37, %s3163_s13  ;;  %v3661_v45 = vld [vmem:[#allocation2 + $0x90] sm:$0xff]  ;;  %v3663_v46 = vld [vmem:[#allocation2 + $0x88] sm:$0xff]  ;;  %1884 = vst.msk [vmem:[#allocation4 + $0x28] sm:$0xff] %vm186_vm0, %v3655_v44  ;;  %1899 = vst.msk [vmem:[#allocation4 + $0x118] sm:$0xff] %vm186_vm0, %v3811_v28  ;;  %s4553_s22 = smov (%p423_p3), 0  }
  0x96   : >> { %v509_v47 = vld [vmem:[#allocation2 + $0xb0] sm:$0xff]  ;;  %v3671_v48 = vld [vmem:[#allocation2 + $0xa8] sm:$0xff] }
  0x97   : >> { %v3673_v49 = vld [vmem:[#allocation2 + $0x127] sm:$0xff]  ;;  %v3686_v54 = vld [vmem:[#allocation2 + $0x2f] sm:$0xff] }
  0x98   : >> { %572 = vrot.lane.b32.xlu1 %v3635_v38, %s3163_s13  ;;  %v3675_v50 = vld [vmem:[#allocation2 + $0x27] sm:$0xff]  ;;  %484 = vst.msk [vmem:[#allocation4 + $0x120] sm:$0xff] %vm186_vm0, %v3673_v49  ;;  %v435_v55 = vld [vmem:[#allocation2 + $0xf] sm:$0xff]  ;;  %469 = vst.msk [vmem:[#allocation4 + $0x30] sm:$0xff] %vm186_vm0, %v3686_v54 }
  0x99   : >> { %570 = vrot.lane.b32.xlu0 %v3637_v39, %s3163_s13  ;;  %468 = vst.msk [vmem:[#allocation4 + $0x20] sm:$0xff] %vm186_vm0, %v3675_v50  ;;  %v434_v51 = vld [vmem:[#allocation2 + $0x7] sm:$0xff]  ;;  %v3688_v56 = vld [vmem:[#allocation2 + $0x12f] sm:$0xff]  ;;  %467 = vst.msk [vmem:[#allocation4 + $0x10] sm:$0xff] %vm186_vm0, %v435_v55 }
  0x9a   : >> { %v3679_v52 = vld [vmem:[#allocation2 + $0x147] sm:$0xff]  ;;  %466 = vst.msk [vmem:[#allocation4] sm:$0xff] %vm186_vm0, %v434_v51  ;;  %v511_v57 = vld [vmem:[#allocation2 + $0xd0] sm:$0xff]  ;;  %485 = vst.msk [vmem:[#allocation4 + $0x130] sm:$0xff] %vm186_vm0, %v3688_v56 }
  0x9b   : >> { %v3681_v53 = vld [vmem:[#allocation2 + $0x47] sm:$0xff]  ;;  %486 = vst.msk [vmem:[#allocation4 + $0x140] sm:$0xff] %vm186_vm0, %v3679_v52  ;;  %v3697_v59 = vld [vmem:[#allocation2 + $0x4f] sm:$0xff] }
  0x9c   : >> { %576 = vrot.lane.b32.xlu1 %v3643_v40, %s3163_s13  ;;  %470 = vst.msk [vmem:[#allocation4 + $0x40] sm:$0xff] %vm186_vm0, %v3681_v53  ;;  %v510_v58 = vld [vmem:[#allocation2 + $0xc8] sm:$0xff]  ;;  %471 = vst.msk [vmem:[#allocation4 + $0x50] sm:$0xff] %vm186_vm0, %v3697_v59  ;;  %v513_v10 = vld [vmem:[#allocation2 + $0xf0] sm:$0xff] }
  0x9d   : >> { %574 = vrot.lane.b32.xlu0 %v3645_v41, %s3163_s13  ;;  %v3699_v60 = vld [vmem:[#allocation2 + $0x6f] sm:$0xff]  ;;  %v3701_v61 = vld [vmem:[#allocation2 + $0x67] sm:$0xff] }
  0x9e   : >> { %473 = vst.msk [vmem:[#allocation4 + $0x70] sm:$0xff] %vm186_vm0, %v3699_v60  ;;  %472 = vst.msk [vmem:[#allocation4 + $0x60] sm:$0xff] %vm186_vm0, %v3701_v61  ;;  %v3714_v62 = vld [vmem:[#allocation2 + $0x8f] sm:$0xff]  ;;  %v3716_v63 = vld [vmem:[#allocation2 + $0x87] sm:$0xff] }
  0x9f   : >> { %v3718_v0 = vld [vmem:[#allocation2 + $0xaf] sm:$0xff]  ;;  %475 = vst.msk [vmem:[#allocation4 + $0x90] sm:$0xff] %vm186_vm0, %v3714_v62  ;;  %474 = vst.msk [vmem:[#allocation4 + $0x80] sm:$0xff] %vm186_vm0, %v3716_v63  ;;  %v3726_v1 = vld [vmem:[#allocation2 + $0xa7] sm:$0xff] }
  0xa0   : >> { %580 = vrot.lane.b32.xlu1 %v3661_v45, %s3163_s13  ;;  %477 = vst.msk [vmem:[#allocation4 + $0xb0] sm:$0xff] %vm186_vm0, %v3718_v0  ;;  %v3728_v2 = vld [vmem:[#allocation2 + $0x14f] sm:$0xff]  ;;  %476 = vst.msk [vmem:[#allocation4 + $0xa0] sm:$0xff] %vm186_vm0, %v3726_v1  ;;  %v3736_v4 = vld [vmem:[#allocation2 + $0xc7] sm:$0xff] }
  0xa1   : >> { %578 = vrot.lane.b32.xlu0 %v3663_v46, %s3163_s13  ;;  %v3730_v3 = vld [vmem:[#allocation2 + $0xcf] sm:$0xff]  ;;  %v3738_v6 = vld [vmem:[#allocation2 + $0xe7] sm:$0xff]  ;;  %487 = vst.msk [vmem:[#allocation4 + $0x150] sm:$0xff] %vm186_vm0, %v3728_v2  ;;  %478 = vst.msk [vmem:[#allocation4 + $0xc0] sm:$0xff] %vm186_vm0, %v3736_v4 }
  0xa2   : >> { %479 = vst.msk [vmem:[#allocation4 + $0xd0] sm:$0xff] %vm186_vm0, %v3730_v3  ;;  %v449_v5 = vld [vmem:[#allocation2 + $0xef] sm:$0xff]  ;;  %4789 = vst [vmem:[#allocation8_spill] sm:$0xff] %v3738_v6  ;;  %v450_v8 = vld [vmem:[#allocation2 + $0x107] sm:$0xff] }
  0xa3   : >> { %481 = vst.msk [vmem:[#allocation4 + $0xf0] sm:$0xff] %vm186_vm0, %v449_v5  ;;  %480 = vst.msk [vmem:[#allocation4 + $0xe0] sm:$0xff] %vm186_vm0, %v3738_v6  ;;  %v451_v7 = vld [vmem:[#allocation2 + $0x10f] sm:$0xff]  ;;  %v3755_v12 = vld [vmem:[#allocation2 + $0x167] sm:$0xff] }
  0xa4   : >> { %584 = vrot.lane.b32.xlu1 %v509_v47, %s3163_s13  ;;  %v3747_v9 = vld [vmem:[#allocation2 + $0x149] sm:$0xff]  ;;  %483 = vst.msk [vmem:[#allocation4 + $0x110] sm:$0xff] %vm186_vm0, %v451_v7  ;;  %482 = vst.msk [vmem:[#allocation4 + $0x100] sm:$0xff] %vm186_vm0, %v450_v8  ;;  %v3849_v5 = vld [vmem:[#allocation2 + $0x31] sm:$0xff] }
  0xa5   : >> { %582 = vrot.lane.b32.xlu0 %v3671_v48, %s3163_s13  ;;  %1898 = vst.msk [vmem:[#allocation4 + $0x108] sm:$0xff] %vm186_vm0, %v3747_v9  ;;  %v512_v11 = vld [vmem:[#allocation2 + $0xe8] sm:$0xff]  ;;  %488 = vst.msk [vmem:[#allocation4 + $0x160] sm:$0xff] %vm186_vm0, %v3755_v12  ;;  %v515_v13 = vld [vmem:[#allocation2 + $0x110] sm:$0xff] }
  0xa6   : >> { %v514_v14 = vld [vmem:[#allocation2 + $0x108] sm:$0xff]  ;;  %v3767_v16 = vld [vmem:[#allocation2 + $0x130] sm:$0xff] }
  0xa7   : >> { %v3761_v15 = vld [vmem:[#allocation2 + $0x16f] sm:$0xff]  ;;  %v3773_v19 = vld [vmem:[#allocation2 + $0x187] sm:$0xff] }
  0xa8   : >> { %588 = vrot.lane.b32.xlu1 %v511_v57, %s3163_s13  ;;  %489 = vst.msk [vmem:[#allocation4 + $0x170] sm:$0xff] %vm186_vm0, %v3761_v15  ;;  %v3769_v17 = vld [vmem:[#allocation2 + $0x128] sm:$0xff]  ;;  %490 = vst.msk [vmem:[#allocation4 + $0x180] sm:$0xff] %vm186_vm0, %v3773_v19  ;;  %v3783_v20 = vld [vmem:[#allocation2 + $0x150] sm:$0xff] }
  0xa9   : >> { %586 = vrot.lane.b32.xlu0 %v510_v58, %s3163_s13  ;;  %v3771_v18 = vld [vmem:[#allocation2 + $0x18f] sm:$0xff]  ;;  %v3789_v23 = vld [vmem:[#allocation2 + $0x1a7] sm:$0xff] }
  0xaa   : >> { %491 = vst.msk [vmem:[#allocation4 + $0x190] sm:$0xff] %vm186_vm0, %v3771_v18  ;;  %v3785_v21 = vld [vmem:[#allocation2 + $0x148] sm:$0xff]  ;;  %492 = vst.msk [vmem:[#allocation4 + $0x1a0] sm:$0xff] %vm186_vm0, %v3789_v23  ;;  %v3799_v24 = vld [vmem:[#allocation2 + $0x170] sm:$0xff] }
  0xab   : >> { %v3787_v22 = vld [vmem:[#allocation2 + $0x1af] sm:$0xff]  ;;  %v3805_v27 = vld [vmem:[#allocation2 + $0x1c7] sm:$0xff] }
  0xac   : >> { %592 = vrot.lane.b32.xlu1 %v513_v10, %s3163_s13  ;;  %493 = vst.msk [vmem:[#allocation4 + $0x1b0] sm:$0xff] %vm186_vm0, %v3787_v22  ;;  %v3801_v25 = vld [vmem:[#allocation2 + $0x168] sm:$0xff]  ;;  %494 = vst.msk [vmem:[#allocation4 + $0x1c0] sm:$0xff] %vm186_vm0, %v3805_v27  ;;  %v3817_v29 = vld [vmem:[#allocation2 + $0x190] sm:$0xff] }
  0xad   : >> { %590 = vrot.lane.b32.xlu0 %v512_v11, %s3163_s13  ;;  %v3803_v26 = vld [vmem:[#allocation2 + $0x1cf] sm:$0xff]  ;;  %v3825_v32 = vld [vmem:[#allocation2 + $0x1e7] sm:$0xff] }
  0xae   : >> { %495 = vst.msk [vmem:[#allocation4 + $0x1d0] sm:$0xff] %vm186_vm0, %v3803_v26  ;;  %v3821_v30 = vld [vmem:[#allocation2 + $0x188] sm:$0xff]  ;;  %4791 = vst [vmem:[#allocation10_spill] sm:$0xff] %v3825_v32  ;;  %v3835_v33 = vld [vmem:[#allocation2 + $0x1b0] sm:$0xff] }
  0xaf   : >> { %v3823_v31 = vld [vmem:[#allocation2 + $0x1ef] sm:$0xff]  ;;  %496 = vst.msk [vmem:[#allocation4 + $0x1e0] sm:$0xff] %vm186_vm0, %v3825_v32 }
  0xb0   : >> { %596 = vrot.lane.b32.xlu1 %v515_v13, %s3163_s13  ;;  %4790 = vst [vmem:[#allocation9_spill] sm:$0xff] %v3823_v31  ;;  %497 = vst.msk [vmem:[#allocation4 + $0x1f0] sm:$0xff] %vm186_vm0, %v3823_v31  ;;  %v3837_v35 = vld [vmem:[#allocation2 + $0x1a8] sm:$0xff]  ;;  %v527_v37 = vld [vmem:[#allocation2 + $0x1d0] sm:$0xff] }
  0xb1   : >> { %594 = vrot.lane.b32.xlu0 %v514_v14, %s3163_s13  ;;  %v526_v47 = vld [vmem:[#allocation2 + $0x1c8] sm:$0xff]  ;;  %v529_v51 = vld [vmem:[#allocation2 + $0x1f0] sm:$0xff] }
  0xb2   : >> { %v528_v55 = vld [vmem:[#allocation2 + $0x1e8] sm:$0xff]  ;;  %v692_v57 = vld [vmem:[#allocation2 + $0x11] sm:$0xff] }
  0xb3   : >> { %v691_v58 = vld [vmem:[#allocation2 + $0x9] sm:$0xff]  ;;  %v3862_v10 = vld [vmem:[#allocation2 + $0x71] sm:$0xff] }
  0xb4   : >> { %600 = vrot.lane.b32.xlu1 %v3767_v16, %s3163_s13  ;;  %v693_v7 = vld [vmem:[#allocation2 + $0x29] sm:$0xff]  ;;  %v3868_v11 = vld [vmem:[#allocation2 + $0x91] sm:$0xff] }
  0xb5   : >> { %598 = vrot.lane.b32.xlu0 %v3769_v17, %s3163_s13  ;;  %v3851_v8 = vld [vmem:[#allocation2 + $0x169] sm:$0xff]  ;;  %v702_v14 = vld [vmem:[#allocation2 + $0xb1] sm:$0xff] }
  0xb6   : >> { %1900 = vst.msk [vmem:[#allocation4 + $0x128] sm:$0xff] %vm186_vm0, %v3851_v8  ;;  %v3870_v13 = vld [vmem:[#allocation2 + $0x89] sm:$0xff]  ;;  %v710_v6 = vld [vmem:[#allocation2 + $0x131] sm:$0xff] }
  0xb7   : >> { %v707_v31 = vld [vmem:[#allocation2 + $0x109] sm:$0xff] }
  0xb8   : >> { %604 = vrot.lane.b32.xlu1 %v3783_v20, %s3163_s13 }
  0xb9   : >> { %602 = vrot.lane.b32.xlu0 %v3785_v21, %s3163_s13 }
  0xbc   : >> { %608 = vrot.lane.b32.xlu1 %v3799_v24, %s3163_s13 }
  0xbd   : >> { %606 = vrot.lane.b32.xlu0 %v3801_v25, %s3163_s13 }
  0xc0   : >> { %612 = vrot.lane.b32.xlu1 %v3817_v29, %s3163_s13 }
  0xc1   : >> { %610 = vrot.lane.b32.xlu0 %v3821_v30, %s3163_s13 }
  0xc4   : >> { %616 = vrot.lane.b32.xlu1 %v3835_v33, %s3163_s13 }
  0xc5   : >> { %614 = vrot.lane.b32.xlu0 %v3837_v35, %s3163_s13 }
  0xc8   : >> { %620 = vrot.lane.b32.xlu1 %v527_v37, %s3163_s13  ;;  %v3876_v37 = vld [vmem:[#allocation2 + $0xa9] sm:$0xff] }
  0xc9   : >> { %618 = vrot.lane.b32.xlu0 %v526_v47, %s3163_s13  ;;  %v704_v47 = vld [vmem:[#allocation2 + $0xd1] sm:$0xff] }
  0xcc   : >> { %624 = vrot.lane.b32.xlu1 %v529_v51, %s3163_s13  ;;  %v703_v51 = vld [vmem:[#allocation2 + $0xc9] sm:$0xff] }
  0xcd   : >> { %622 = vrot.lane.b32.xlu0 %v528_v55, %s3163_s13  ;;  %v3881_v55 = vld [vmem:[#allocation2 + $0x171] sm:$0xff] }
  0xce   : >> { %1901 = vst.msk [vmem:[#allocation4 + $0x138] sm:$0xff] %vm186_vm0, %v3881_v55 }
  0xd0   : >> { %757 = vrot.lane.b32.xlu1 %v692_v57, %s3164_s14  ;;  %v706_v57 = vld [vmem:[#allocation2 + $0xf1] sm:$0xff] }
  0xd1   : >> { %755 = vrot.lane.b32.xlu0 %v691_v58, %s3164_s14  ;;  %v705_v58 = vld [vmem:[#allocation2 + $0xe9] sm:$0xff] }
  0xd4   : >> { %761 = vrot.lane.b32.xlu1 %v3849_v5, %s3164_s14 }
  0xd5   : >> { %759 = vrot.lane.b32.xlu0 %v693_v7, %s3164_s14 }
  0xd8   : >> { %765 = vrot.lane.b32.xlu1 %v3647_v42, %s3164_s14 }
  0xd9   : >> { %763 = vrot.lane.b32.xlu0 %v3649_v43, %s3164_s14 }
  0xdc   : >> { %769 = vrot.lane.b32.xlu1 %v3862_v10, %s3164_s14 }
  0xdd   : >> { %767 = vrot.lane.b32.xlu0 %v3655_v44, %s3164_s14 }
  0xe0   : >> { %773 = vrot.lane.b32.xlu1 %v3868_v11, %s3164_s14 }
  0xe1   : >> { %771 = vrot.lane.b32.xlu0 %v3870_v13, %s3164_s14 }
  0xe4   : >> { %777 = vrot.lane.b32.xlu1 %v702_v14, %s3164_s14  ;;  %v708_v14 = vld [vmem:[#allocation2 + $0x111] sm:$0xff] }
  0xe5   : >> { %775 = vrot.lane.b32.xlu0 %v3876_v37, %s3164_s14 }
  0xe8   : >> { %781 = vrot.lane.b32.xlu1 %v704_v47, %s3164_s14  ;;  %v709_v47 = vld [vmem:[#allocation2 + $0x129] sm:$0xff] }
  0xe9   : >> { %779 = vrot.lane.b32.xlu0 %v703_v51, %s3164_s14  ;;  %v433_v51 = vld [vmem:[%s429_s18 + $0x18] sm:$0xff] }
  0xec   : >> { %785 = vrot.lane.b32.xlu1 %v706_v57, %s3164_s14 }
  0xed   : >> { %783 = vrot.lane.b32.xlu0 %v705_v58, %s3164_s14  ;;  %v430_v58 = vld [vmem:[%s429_s18] sm:$0xff] }
  0xf0   : >> { %789 = vrot.lane.b32.xlu1 %v708_v14, %s3164_s14  ;;  %v432_v14 = vld [vmem:[%s429_s18 + $0x10] sm:$0xff] }
  0xf1   : >> { %787 = vrot.lane.b32.xlu0 %v707_v31, %s3164_s14  ;;  %v431_v31 = vld [vmem:[%s429_s18 + $0x8] sm:$0xff]  ;;  %v3043_v32 = vpack.c.bf16 %v432_v14, %v430_v58  ;;  %v3934_v14 = vld [vmem:[#allocation2 + $0x191] sm:$0xff] }
  0xf2   : >> { %v3041_v57 = vpack.c.bf16 %v433_v51, %v431_v31  ;;  %1903 = vst.msk [vmem:[#allocation4 + $0x158] sm:$0xff] %vm186_vm0, %v3934_v14 }
  0xf4   : >> { %793 = vrot.lane.b32.xlu1 %v710_v6, %s3164_s14  ;;  %3042 = vmatprep.subr.bf16.mxu0 %v3041_v57 }
  0xf5   : >> { %791 = vrot.lane.b32.xlu0 %v709_v47, %s3164_s14  ;;  %3045 = vmatprep.subr.bf16.mxu1 %v3041_v57 }
  0xf6   : >> { %3044 = vmatpush1.bf16.xpose.msra.mxu0 %v3043_v32  ;;  %3046 = vmatpush1.bf16.xpose.msra.mxu1 %v3043_v32 }
  0xf8   : >> { %980 = vrot.lane.b32.xlu1 %v3673_v49, %s3165_s15  ;;  %v3902_v49 = vld [vmem:[#allocation2 + $0x189] sm:$0xff] }
  0xf9   : >> { %948 = vrot.lane.b32.xlu0 %v3675_v50, %s3165_s15  ;;  %1902 = vst.msk [vmem:[#allocation4 + $0x148] sm:$0xff] %vm186_vm0, %v3902_v49 }
  0xfc   : >> { %1173 = vrot.lane.b32.xlu1 %v3769_v17, %s3166_s17  ;;  %v1915_v17 = vld [vmem:[#allocation4 + $0x8] sm:$0xff] }
  0xfd   : >> { %1141 = vrot.lane.b32.xlu0 %v3625_v34, %s3166_s17  ;;  %2042 = vmatprep.mubr.f32.mxu0 %v1915_v17 }
 0x100   : >> { %1366 = vrot.lane.b32.xlu1 %v709_v47, %s3167_s19 }
 0x101   : >> { %1334 = vrot.lane.b32.xlu0 %v693_v7, %s3167_s19  ;;  %v1947_v7 = vld [vmem:[#allocation4 + $0x108] sm:$0xff] }
 0x102   : >> { %v567_v34 = vpop.permute.xlu1 %566  ;;  %2122 = vmatprep.mubr.f32.mxu1 %v1947_v7 }
 0x103   : >> { %v563_v50 = vpop.permute.xlu0 %562  ;;  %661 = vst.msk [vmem:[#allocation4 + $0x20] sm:$0xff] %vm658_vm4, %v567_v34 }
 0x104   : >> { %659 = vst.msk [vmem:[#allocation4] sm:$0xff] %vm658_vm4, %v563_v50  ;;  %1560 = vrot.lane.b32.xlu1 %v3679_v52, %s3168_s20 }
 0x105   : >> { %1528 = vrot.lane.b32.xlu0 %v3681_v53, %s3168_s20 }
 0x106   : >> { %v569_v47 = vpop.permute.xlu1 %568 }
 0x107   : >> { %v565_v31 = vpop.permute.xlu0 %564  ;;  %662 = vst.msk [vmem:[#allocation4 + $0x30] sm:$0xff] %vm658_vm4, %v569_v47 }
 0x108   : >> { %660 = vst.msk [vmem:[#allocation4 + $0x10] sm:$0xff] %vm658_vm4, %v565_v31  ;;  %982 = vrot.lane.b32.xlu1 %v3688_v56, %s3165_s15 }
 0x109   : >> { %950 = vrot.lane.b32.xlu0 %v3686_v54, %s3165_s15 }
 0x10a   : >> { %v573_v32 = vpop.permute.xlu1 %572 }
 0x10b   : >> { %v571_v51 = vpop.permute.xlu0 %570  ;;  %664 = vst.msk [vmem:[#allocation4 + $0x50] sm:$0xff] %vm658_vm4, %v573_v32 }
 0x10c   : >> { %663 = vst.msk [vmem:[#allocation4 + $0x40] sm:$0xff] %vm658_vm4, %v571_v51  ;;  %1753 = vrot.lane.b32.xlu1 %v3785_v21, %s3169_s21 }
 0x10d   : >> { %1721 = vrot.lane.b32.xlu0 %v3637_v39, %s3169_s21 }
 0x10e   : >> { %v577_v57 = vpop.permute.xlu1 %576 }
 0x10f   : >> { %v575_v58 = vpop.permute.xlu0 %574  ;;  %666 = vst.msk [vmem:[#allocation4 + $0x70] sm:$0xff] %vm658_vm4, %v577_v57 }
 0x110   : >> { %665 = vst.msk [vmem:[#allocation4 + $0x60] sm:$0xff] %vm658_vm4, %v575_v58  ;;  %1175 = vrot.lane.b32.xlu1 %v3767_v16, %s3166_s17 }
 0x111   : >> { %1143 = vrot.lane.b32.xlu0 %v3630_v36, %s3166_s17 }
 0x112   : >> { %v581_v54 = vpop.permute.xlu1 %580 }
 0x113   : >> { %v579_v56 = vpop.permute.xlu0 %578  ;;  %668 = vst.msk [vmem:[#allocation4 + $0x90] sm:$0xff] %vm658_vm4, %v581_v54 }
 0x114   : >> { %667 = vst.msk [vmem:[#allocation4 + $0x80] sm:$0xff] %vm658_vm4, %v579_v56  ;;  %1368 = vrot.lane.b32.xlu1 %v710_v6, %s3167_s19 }
 0x115   : >> { %1336 = vrot.lane.b32.xlu0 %v3849_v5, %s3167_s19 }
 0x116   : >> { %v585_v16 = vpop.permute.xlu1 %584 }
 0x117   : >> { %v583_v34 = vpop.permute.xlu0 %582  ;;  %670 = vst.msk [vmem:[#allocation4 + $0xb0] sm:$0xff] %vm658_vm4, %v585_v16  ;;  %v4010_v16 = vld [vmem:[#allocation2 + $0xb1] sm:$0xff] }
 0x118   : >> { %669 = vst.msk [vmem:[#allocation4 + $0xa0] sm:$0xff] %vm658_vm4, %v583_v34  ;;  %1562 = vrot.lane.b32.xlu1 %v3728_v2, %s3168_s20 }
 0x119   : >> { %1530 = vrot.lane.b32.xlu0 %v3697_v59, %s3168_s20  ;;  %1889 = vst.msk [vmem:[#allocation4 + $0x78] sm:$0xff] %vm186_vm0, %v4010_v16 }
 0x11a   : >> { %v589_v36 = vpop.permute.xlu1 %588 }
 0x11b   : >> { %v587_v6 = vpop.permute.xlu0 %586  ;;  %672 = vst.msk [vmem:[#allocation4 + $0xd0] sm:$0xff] %vm658_vm4, %v589_v36 }
 0x11c   : >> { %671 = vst.msk [vmem:[#allocation4 + $0xc0] sm:$0xff] %vm658_vm4, %v587_v6  ;;  %984 = vrot.lane.b32.xlu1 %v3679_v52, %s3165_s15 }
 0x11d   : >> { %952 = vrot.lane.b32.xlu0 %v3681_v53, %s3165_s15 }
 0x11e   : >> { %v593_v5 = vpop.permute.xlu1 %592 }
 0x11f   : >> { %v591_v50 = vpop.permute.xlu0 %590  ;;  %674 = vst.msk [vmem:[#allocation4 + $0xf0] sm:$0xff] %vm658_vm4, %v593_v5 }
 0x120   : >> { %673 = vst.msk [vmem:[#allocation4 + $0xe0] sm:$0xff] %vm658_vm4, %v591_v50  ;;  %1755 = vrot.lane.b32.xlu1 %v3783_v20, %s3169_s21 }
 0x121   : >> { %1723 = vrot.lane.b32.xlu0 %v3635_v38, %s3169_s21 }
 0x122   : >> { %v597_v17 = vpop.permute.xlu1 %596 }
 0x123   : >> { %v595_v7 = vpop.permute.xlu0 %594  ;;  %676 = vst.msk [vmem:[#allocation4 + $0x110] sm:$0xff] %vm658_vm4, %v597_v17 }
 0x124   : >> { %675 = vst.msk [vmem:[#allocation4 + $0x100] sm:$0xff] %vm658_vm4, %v595_v7  ;;  %1177 = vrot.lane.b32.xlu1 %v3785_v21, %s3166_s17  ;;  %v3973_v21 = vld [vmem:[#allocation2 + $0x1a9] sm:$0xff] }
 0x125   : >> { %1145 = vrot.lane.b32.xlu0 %v3637_v39, %s3166_s17  ;;  %1904 = vst.msk [vmem:[#allocation4 + $0x168] sm:$0xff] %vm186_vm0, %v3973_v21 }
 0x126   : >> { %v601_v52 = vpop.permute.xlu1 %600 }
 0x127   : >> { %v599_v53 = vpop.permute.xlu0 %598  ;;  %678 = vst.msk [vmem:[#allocation4 + $0x130] sm:$0xff] %vm658_vm4, %v601_v52  ;;  %v4057_v52 = vld [vmem:[#allocation2 + $0x1c9] sm:$0xff] }
 0x128   : >> { %677 = vst.msk [vmem:[#allocation4 + $0x120] sm:$0xff] %vm658_vm4, %v599_v53  ;;  %1370 = vrot.lane.b32.xlu1 %v3747_v9, %s3167_s19 }
 0x129   : >> { %1338 = vrot.lane.b32.xlu0 %v3649_v43, %s3167_s19  ;;  %1906 = vst.msk [vmem:[#allocation4 + $0x188] sm:$0xff] %vm186_vm0, %v4057_v52 }
 0x12a   : >> { %v605_v47 = vpop.permute.xlu1 %604 }
 0x12b   : >> { %v603_v31 = vpop.permute.xlu0 %602  ;;  %680 = vst.msk [vmem:[#allocation4 + $0x150] sm:$0xff] %vm658_vm4, %v605_v47 }
 0x12c   : >> { %679 = vst.msk [vmem:[#allocation4 + $0x140] sm:$0xff] %vm658_vm4, %v603_v31  ;;  %1564 = vrot.lane.b32.xlu1 %v3755_v12, %s3168_s20 }
 0x12d   : >> { %1532 = vrot.lane.b32.xlu0 %v3701_v61, %s3168_s20 }
 0x12e   : >> { %v609_v39 = vpop.permute.xlu1 %608 }
 0x12f   : >> { %v607_v32 = vpop.permute.xlu0 %606  ;;  %682 = vst.msk [vmem:[#allocation4 + $0x170] sm:$0xff] %vm658_vm4, %v609_v39 }
 0x130   : >> { %681 = vst.msk [vmem:[#allocation4 + $0x160] sm:$0xff] %vm658_vm4, %v607_v32  ;;  %986 = vrot.lane.b32.xlu1 %v3728_v2, %s3165_s15 }
 0x131   : >> { %954 = vrot.lane.b32.xlu0 %v3697_v59, %s3165_s15  ;;  %v1853_v59 = vld [vmem:[#allocation2 + $0x71] sm:$0xff] }
 0x132   : >> { %v613_v43 = vpop.permute.xlu1 %612  ;;  %1885 = vst.msk [vmem:[#allocation4 + $0x38] sm:$0xff] %vm186_vm0, %v1853_v59 }
 0x133   : >> { %v611_v51 = vpop.permute.xlu0 %610  ;;  %684 = vst.msk [vmem:[#allocation4 + $0x190] sm:$0xff] %vm658_vm4, %v613_v43 }
 0x134   : >> { %683 = vst.msk [vmem:[#allocation4 + $0x180] sm:$0xff] %vm658_vm4, %v611_v51  ;;  %1757 = vrot.lane.b32.xlu1 %v3801_v25, %s3169_s21 }
 0x135   : >> { %1725 = vrot.lane.b32.xlu0 %v3645_v41, %s3169_s21 }
 0x136   : >> { %v617_v57 = vpop.permute.xlu1 %616 }
 0x137   : >> { %v615_v58 = vpop.permute.xlu0 %614  ;;  %686 = vst.msk [vmem:[#allocation4 + $0x1b0] sm:$0xff] %vm658_vm4, %v617_v57  ;;  %v4094_v57 = vld [vmem:[#allocation2 + $0xd1] sm:$0xff] }
 0x138   : >> { %685 = vst.msk [vmem:[#allocation4 + $0x1a0] sm:$0xff] %vm658_vm4, %v615_v58  ;;  %1179 = vrot.lane.b32.xlu1 %v3783_v20, %s3166_s17 }
 0x139   : >> { %1147 = vrot.lane.b32.xlu0 %v3635_v38, %s3166_s17  ;;  %v4008_v38 = vld [vmem:[#allocation2 + $0x1b1] sm:$0xff]  ;;  %1891 = vst.msk [vmem:[#allocation4 + $0x98] sm:$0xff] %vm186_vm0, %v4094_v57 }
 0x13a   : >> { %v621_v2 = vpop.permute.xlu1 %620  ;;  %1905 = vst.msk [vmem:[#allocation4 + $0x178] sm:$0xff] %vm186_vm0, %v4008_v38 }
 0x13b   : >> { %v619_v54 = vpop.permute.xlu0 %618  ;;  %688 = vst.msk [vmem:[#allocation4 + $0x1d0] sm:$0xff] %vm658_vm4, %v621_v2 }
 0x13c   : >> { %687 = vst.msk [vmem:[#allocation4 + $0x1c0] sm:$0xff] %vm658_vm4, %v619_v54  ;;  %1372 = vrot.lane.b32.xlu1 %v3811_v28, %s3167_s19 }
 0x13d   : >> { %1340 = vrot.lane.b32.xlu0 %v3647_v42, %s3167_s19 }
 0x13e   : >> { %v625_v56 = vpop.permute.xlu1 %624 }
 0x13f   : >> { %v623_v20 = vpop.permute.xlu0 %622  ;;  %690 = vst.msk [vmem:[#allocation4 + $0x1f0] sm:$0xff] %vm658_vm4, %v625_v56 }
 0x140   : >> { %689 = vst.msk [vmem:[#allocation4 + $0x1e0] sm:$0xff] %vm658_vm4, %v623_v20  ;;  %1534 = vrot.lane.b32.xlu1 %v3699_v60, %s3168_s20 }
 0x141   : >> { %795 = vrot.lane.b32.xlu0 %v3747_v9, %s3164_s14 }
 0x142   : >> { %v758_v42 = vpop.permute.xlu1 %757 }
 0x143   : >> { %v756_v34 = vpop.permute.xlu0 %755  ;;  %853 = vst.msk [vmem:[#allocation4 + $0x10] sm:$0xff] %vm851_vm5, %v758_v42 }
 0x144   : >> { %852 = vst.msk [vmem:[#allocation4] sm:$0xff] %vm851_vm5, %v756_v34  ;;  %956 = vrot.lane.b32.xlu1 %v3701_v61, %s3165_s15  ;;  %v4141_v34 = vld [vmem:[#allocation2 + $0x1e9] sm:$0xff] }
 0x145   : >> { %1566 = vrot.lane.b32.xlu0 %v3761_v15, %s3168_s20  ;;  %1908 = vst.msk [vmem:[#allocation4 + $0x1a8] sm:$0xff] %vm186_vm0, %v4141_v34 }
 0x146   : >> { %v762_v9 = vpop.permute.xlu1 %761 }
 0x147   : >> { %v760_v36 = vpop.permute.xlu0 %759  ;;  %855 = vst.msk [vmem:[#allocation4 + $0x30] sm:$0xff] %vm851_vm5, %v762_v9 }
 0x148   : >> { %854 = vst.msk [vmem:[#allocation4 + $0x20] sm:$0xff] %vm851_vm5, %v760_v36  ;;  %1727 = vrot.lane.b32.xlu1 %v3643_v40, %s3169_s21 }
 0x149   : >> { %988 = vrot.lane.b32.xlu0 %v3755_v12, %s3165_s15  ;;  %v1854_v12 = vld [vmem:[#allocation2 + $0x89] sm:$0xff] }
 0x14a   : >> { %v766_v6 = vpop.permute.xlu1 %765  ;;  %1886 = vst.msk [vmem:[#allocation4 + $0x48] sm:$0xff] %vm186_vm0, %v1854_v12 }
 0x14b   : >> { %v764_v5 = vpop.permute.xlu0 %763  ;;  %857 = vst.msk [vmem:[#allocation4 + $0x50] sm:$0xff] %vm851_vm5, %v766_v6 }
 0x14c   : >> { %856 = vst.msk [vmem:[#allocation4 + $0x40] sm:$0xff] %vm851_vm5, %v764_v5  ;;  %1149 = vrot.lane.b32.xlu1 %v3645_v41, %s3166_s17  ;;  %v4047_v41 = vld [vmem:[#allocation2 + $0xc9] sm:$0xff] }
 0x14d   : >> { %1759 = vrot.lane.b32.xlu0 %v3799_v24, %s3169_s21  ;;  %1890 = vst.msk [vmem:[#allocation4 + $0x88] sm:$0xff] %vm186_vm0, %v4047_v41 }
 0x14e   : >> { %v770_v61 = vpop.permute.xlu1 %769 }
 0x14f   : >> { %v768_v50 = vpop.permute.xlu0 %767  ;;  %859 = vst.msk [vmem:[#allocation4 + $0x70] sm:$0xff] %vm851_vm5, %v770_v61  ;;  %v1949_v61 = vld [vmem:[#allocation4 + $0x118] sm:$0xff] }
 0x150   : >> { %858 = vst.msk [vmem:[#allocation4 + $0x60] sm:$0xff] %vm851_vm5, %v768_v50  ;;  %1342 = vrot.lane.b32.xlu1 %v3655_v44, %s3167_s19 }
 0x151   : >> { %1181 = vrot.lane.b32.xlu0 %v3801_v25, %s3166_s17 }
 0x152   : >> { %v774_v17 = vpop.permute.xlu1 %773 }
 0x153   : >> { %v772_v7 = vpop.permute.xlu0 %771  ;;  %861 = vst.msk [vmem:[#allocation4 + $0x90] sm:$0xff] %vm851_vm5, %v774_v17 }
 0x154   : >> { %860 = vst.msk [vmem:[#allocation4 + $0x80] sm:$0xff] %vm851_vm5, %v772_v7  ;;  %797 = vrot.lane.b32.xlu1 %v3811_v28, %s3164_s14 }
 0x155   : >> { %1374 = vrot.lane.b32.xlu0 %v3851_v8, %s3167_s19 }
 0x156   : >> { %v778_v44 = vpop.permute.xlu1 %777 }
 0x157   : >> { %v776_v25 = vpop.permute.xlu0 %775  ;;  %863 = vst.msk [vmem:[#allocation4 + $0xb0] sm:$0xff] %vm851_vm5, %v778_v44 }
 0x158   : >> { %862 = vst.msk [vmem:[#allocation4 + $0xa0] sm:$0xff] %vm851_vm5, %v776_v25  ;;  %1568 = vrot.lane.b32.xlu1 %v3773_v19, %s3168_s20 }
 0x159   : >> { %1536 = vrot.lane.b32.xlu0 %v3716_v63, %s3168_s20 }
 0x15a   : >> { %v782_v28 = vpop.permute.xlu1 %781 }
 0x15b   : >> { %v780_v53 = vpop.permute.xlu0 %779  ;;  %865 = vst.msk [vmem:[#allocation4 + $0xd0] sm:$0xff] %vm851_vm5, %v782_v28 }
 0x15c   : >> { %864 = vst.msk [vmem:[#allocation4 + $0xc0] sm:$0xff] %vm851_vm5, %v780_v53  ;;  %990 = vrot.lane.b32.xlu1 %v3761_v15, %s3165_s15 }
 0x15d   : >> { %958 = vrot.lane.b32.xlu0 %v3699_v60, %s3165_s15  ;;  %v1855_v60 = vld [vmem:[#allocation2 + $0x91] sm:$0xff] }
 0x15e   : >> { %v786_v47 = vpop.permute.xlu1 %785  ;;  %1887 = vst.msk [vmem:[#allocation4 + $0x58] sm:$0xff] %vm186_vm0, %v1855_v60 }
 0x15f   : >> { %v784_v31 = vpop.permute.xlu0 %783  ;;  %867 = vst.msk [vmem:[#allocation4 + $0xf0] sm:$0xff] %vm851_vm5, %v786_v47 }
 0x160   : >> { %866 = vst.msk [vmem:[#allocation4 + $0xe0] sm:$0xff] %vm851_vm5, %v784_v31  ;;  %1761 = vrot.lane.b32.xlu1 %v3821_v30, %s3169_s21  ;;  %v1951_v31 = vld [vmem:[#allocation4 + $0x128] sm:$0xff] }
 0x161   : >> { %1729 = vrot.lane.b32.xlu0 %v3663_v46, %s3169_s21 }
 0x162   : >> { %v790_v39 = vpop.permute.xlu1 %789 }
 0x163   : >> { %v788_v32 = vpop.permute.xlu0 %787  ;;  %869 = vst.msk [vmem:[#allocation4 + $0x110] sm:$0xff] %vm851_vm5, %v790_v39 }
 0x164   : >> { %868 = vst.msk [vmem:[#allocation4 + $0x100] sm:$0xff] %vm851_vm5, %v788_v32  ;;  %1183 = vrot.lane.b32.xlu1 %v3799_v24, %s3166_s17 }
 0x165   : >> { %1151 = vrot.lane.b32.xlu0 %v3643_v40, %s3166_s17  ;;  %v4092_v40 = vld [vmem:[#allocation2 + $0x1d1] sm:$0xff] }
 0x166   : >> { %v794_v15 = vpop.permute.xlu1 %793  ;;  %1907 = vst.msk [vmem:[#allocation4 + $0x198] sm:$0xff] %vm186_vm0, %v4092_v40 }
 0x167   : >> { %v792_v43 = vpop.permute.xlu0 %791  ;;  %871 = vst.msk [vmem:[#allocation4 + $0x130] sm:$0xff] %vm851_vm5, %v794_v15 }
 0x168   : >> { %870 = vst.msk [vmem:[#allocation4 + $0x120] sm:$0xff] %vm851_vm5, %v792_v43  ;;  %1376 = vrot.lane.b32.xlu1 %v3881_v55, %s3167_s19 }
 0x169   : >> { %1344 = vrot.lane.b32.xlu0 %v3862_v10, %s3167_s19 }
 0x16a   : >> { %v981_v24 = vpop.permute.xlu1 %980 }
 0x16b   : >> { %v949_v51 = vpop.permute.xlu0 %948  ;;  %1061 = vst.msk [vmem:[#allocation4 + $0x100] sm:$0xff] %vm1044_vm6, %v981_v24 }
 0x16c   : >> { %1045 = vst.msk [vmem:[#allocation4] sm:$0xff] %vm1044_vm6, %v949_v51  ;;  %1538 = vrot.lane.b32.xlu1 %v3714_v62, %s3168_s20 }
 0x16d   : >> { %799 = vrot.lane.b32.xlu0 %v3851_v8, %s3164_s14 }
 0x16e   : >> { %v1174_v10 = vpop.permute.xlu1 %1173 }
 0x16f   : >> { %v1142_v58 = vpop.permute.xlu0 %1141  ;;  %1254 = vst.msk [vmem:[#allocation4 + $0x100] sm:$0xff] %vm1237_vm7, %v1174_v10  ;;  %v4214_v10 = vld [vmem:[#allocation2 + $0x109] sm:$0xff] }
 0x170   : >> { %1238 = vst.msk [vmem:[#allocation4] sm:$0xff] %vm1237_vm7, %v1142_v58  ;;  %960 = vrot.lane.b32.xlu1 %v3716_v63, %s3165_s15 }
 0x171   : >> { %1570 = vrot.lane.b32.xlu0 %v3771_v18, %s3168_s20  ;;  %1894 = vst.msk [vmem:[#allocation4 + $0xc8] sm:$0xff] %vm186_vm0, %v4214_v10 }
 0x172   : >> { %v1367_v8 = vpop.permute.xlu1 %1366 }
 0x173   : >> { %v1335_v59 = vpop.permute.xlu0 %1334  ;;  %1447 = vst.msk [vmem:[#allocation4 + $0x100] sm:$0xff] %vm1430_vm8, %v1367_v8 }
 0x174   : >> { %1431 = vst.msk [vmem:[#allocation4] sm:$0xff] %vm1430_vm8, %v1335_v59  ;;  %1731 = vrot.lane.b32.xlu1 %v3661_v45, %s3169_s21  ;;  %v1953_v59 = vld [vmem:[#allocation4 + $0x138] sm:$0xff] }
 0x175   : >> { %992 = vrot.lane.b32.xlu0 %v3773_v19, %s3165_s15  ;;  %v1856_v19 = vld [vmem:[#allocation2 + $0xa9] sm:$0xff] }
 0x176   : >> { %v1561_v2 = vpop.permute.xlu1 %1560  ;;  %1888 = vst.msk [vmem:[#allocation4 + $0x68] sm:$0xff] %vm186_vm0, %v1856_v19 }
 0x177   : >> { %v1529_v54 = vpop.permute.xlu0 %1528  ;;  %1641 = vst.msk [vmem:[#allocation4 + $0x100] sm:$0xff] %vm1624_vm9, %v1561_v2  ;;  %v4224_v2 = vld [vmem:[#allocation2 + $0x209] sm:$0xff] }
 0x178   : >> { %1625 = vst.msk [vmem:[#allocation4] sm:$0xff] %vm1624_vm9, %v1529_v54  ;;  %1153 = vrot.lane.b32.xlu1 %v3663_v46, %s3166_s17  ;;  %v4131_v46 = vld [vmem:[#allocation2 + $0xe9] sm:$0xff] }
 0x179   : >> { %1763 = vrot.lane.b32.xlu0 %v3817_v29, %s3169_s21  ;;  %1892 = vst.msk [vmem:[#allocation4 + $0xa8] sm:$0xff] %vm186_vm0, %v4131_v46  ;;  %1910 = vst.msk [vmem:[#allocation4 + $0x1c8] sm:$0xff] %vm186_vm0, %v4224_v2 }
 0x17a   : >> { %v983_v63 = vpop.permute.xlu1 %982 }
 0x17b   : >> { %v951_v56 = vpop.permute.xlu0 %950  ;;  %1062 = vst.msk [vmem:[#allocation4 + $0x110] sm:$0xff] %vm1044_vm6, %v983_v63  ;;  %v4238_v63 = vld [vmem:[#allocation2 + $0x1c8] sm:$0xff] }
 0x17c   : >> { %1046 = vst.msk [vmem:[#allocation4 + $0x10] sm:$0xff] %vm1044_vm6, %v951_v56  ;;  %1346 = vrot.lane.b32.xlu1 %v3870_v13, %s3167_s19  ;;  %v1665_v56 = vld [vmem:[#allocation2 + $0xc8] sm:$0xff] }
 0x17d   : >> { %1185 = vrot.lane.b32.xlu0 %v3821_v30, %s3166_s17 }
 0x17e   : >> { %v1754_v20 = vpop.permute.xlu1 %1753 }
 0x17f   : >> { %v1722_v42 = vpop.permute.xlu0 %1721  ;;  %1834 = vst.msk [vmem:[#allocation4 + $0x100] sm:$0xff] %vm1817_vm10, %v1754_v20 }
 0x180   : >> { %1818 = vst.msk [vmem:[#allocation4] sm:$0xff] %vm1817_vm10, %v1722_v42  ;;  %801 = vrot.lane.b32.xlu1 %v3881_v55, %s3164_s14  ;;  %v1917_v55 = vld [vmem:[#allocation4 + $0x18] sm:$0xff]  ;;  %v1102_v42 = vld [vmem:[#allocation2 + $0x1b0] sm:$0xff] }
 0x181   : >> { %1378 = vrot.lane.b32.xlu0 %v3902_v49, %s3167_s19 }
 0x182   : >> { %v1176_v30 = vpop.permute.xlu1 %1175 }
 0x183   : >> { %v1144_v13 = vpop.permute.xlu0 %1143  ;;  %1255 = vst.msk [vmem:[#allocation4 + $0x110] sm:$0xff] %vm1237_vm7, %v1176_v30 }
 0x184   : >> { %1239 = vst.msk [vmem:[#allocation4 + $0x10] sm:$0xff] %vm1237_vm7, %v1144_v13  ;;  %1572 = vrot.lane.b32.xlu1 %v3789_v23, %s3168_s20 }
 0x185   : >> { %1540 = vrot.lane.b32.xlu0 %v3726_v1, %s3168_s20 }
 0x186   : >> { %v1369_v9 = vpop.permute.xlu1 %1368  ;;  %v1946_v5 = vld [vmem:[#allocation4 + $0x100] sm:$0xff] }
 0x187   : >> { %v1337_v36 = vpop.permute.xlu0 %1336  ;;  %v1914_v6 = vld [vmem:[#allocation4] sm:$0xff]  ;;  %1448 = vst.msk [vmem:[#allocation4 + $0x110] sm:$0xff] %vm1430_vm8, %v1369_v9  ;;  %2123 = vmatmul.mubr.f32.vlgmr.msra.gmra.mrb[0].mxu1 %v1946_v5 }
 0x188   : >> { %1432 = vst.msk [vmem:[#allocation4 + $0x10] sm:$0xff] %vm1430_vm8, %v1337_v36  ;;  %2043 = vmatmul.mubr.f32.vlgmr.msra.gmra.mrb[0].mxu0 %v1914_v6  ;;  %994 = vrot.lane.b32.xlu1 %v3771_v18, %s3165_s15  ;;  %v1923_v6 = vld [vmem:[#allocation4 + $0x48] sm:$0xff] }
 0x189   : >> { %962 = vrot.lane.b32.xlu0 %v3714_v62, %s3165_s15  ;;  %2047 = vmatprep.mubr.f32.mxu0 %v1917_v55  ;;  %v4258_v5 = vld [vmem:[#allocation2 + $0x211] sm:$0xff] }
 0x18a   : >> { %2127 = vmatprep.mubr.f32.mxu1 %v1949_v61  ;;  %v1563_v50 = vpop.permute.xlu1 %1562  ;;  %v4260_v61 = vld [vmem:[#allocation2 + $0x111] sm:$0xff]  ;;  %1911 = vst.msk [vmem:[#allocation4 + $0x1d8] sm:$0xff] %vm186_vm0, %v4258_v5 }
 0x18b   : >> { %v1531_v12 = vpop.permute.xlu0 %1530  ;;  %1642 = vst.msk [vmem:[#allocation4 + $0x110] sm:$0xff] %vm1624_vm9, %v1563_v50 }
 0x18c   : >> { %1626 = vst.msk [vmem:[#allocation4 + $0x10] sm:$0xff] %vm1624_vm9, %v1531_v12  ;;  %1765 = vrot.lane.b32.xlu1 %v3837_v35, %s3169_s21 }
 0x18d   : >> { %1733 = vrot.lane.b32.xlu0 %v3671_v48, %s3169_s21  ;;  %1895 = vst.msk [vmem:[#allocation4 + $0xd8] sm:$0xff] %vm186_vm0, %v4260_v61 }
 0x18e   : >> { %v985_v17 = vpop.permute.xlu1 %984 }
 0x18f   : >> { %v953_v7 = vpop.permute.xlu0 %952  ;;  %1063 = vst.msk [vmem:[#allocation4 + $0x120] sm:$0xff] %vm1044_vm6, %v985_v17  ;;  %v1955_v17 = vld [vmem:[#allocation4 + $0x148] sm:$0xff] }
 0x190   : >> { %1047 = vst.msk [vmem:[#allocation4 + $0x20] sm:$0xff] %vm1044_vm6, %v953_v7  ;;  %1187 = vrot.lane.b32.xlu1 %v3817_v29, %s3166_s17  ;;  %v4175_v29 = vld [vmem:[#allocation2 + $0x1f1] sm:$0xff] }
 0x191   : >> { %1155 = vrot.lane.b32.xlu0 %v3661_v45, %s3166_s17  ;;  %v4177_v45 = vld [vmem:[#allocation2 + $0xf1] sm:$0xff]  ;;  %1909 = vst.msk [vmem:[#allocation4 + $0x1b8] sm:$0xff] %vm186_vm0, %v4175_v29 }
 0x192   : >> { %v1756_v62 = vpop.permute.xlu1 %1755  ;;  %1893 = vst.msk [vmem:[#allocation4 + $0xb8] sm:$0xff] %vm186_vm0, %v4177_v45 }
 0x193   : >> { %v1724_v18 = vpop.permute.xlu0 %1723  ;;  %1835 = vst.msk [vmem:[#allocation4 + $0x110] sm:$0xff] %vm1817_vm10, %v1756_v62  ;;  %v1682_v62 = vld [vmem:[#allocation2 + $0x1d0] sm:$0xff] }
 0x194   : >> { %1819 = vst.msk [vmem:[#allocation4 + $0x10] sm:$0xff] %vm1817_vm10, %v1724_v18  ;;  %1380 = vrot.lane.b32.xlu1 %v3934_v14, %s3167_s19 }
 0x195   : >> { %1348 = vrot.lane.b32.xlu0 %v3868_v11, %s3167_s19  ;;  %v1919_v11 = vld [vmem:[#allocation4 + $0x28] sm:$0xff] }
 0x196   : >> { %v1178_v48 = vpop.permute.xlu1 %1177 }
 0x197   : >> { %v1146_v44 = vpop.permute.xlu0 %1145  ;;  %1256 = vst.msk [vmem:[#allocation4 + $0x120] sm:$0xff] %vm1237_vm7, %v1178_v48 }
 0x198   : >> { %1240 = vst.msk [vmem:[#allocation4 + $0x20] sm:$0xff] %vm1237_vm7, %v1146_v44  ;;  %1542 = vrot.lane.b32.xlu1 %v3718_v0, %s3168_s20 }
 0x199   : >> { %803 = vrot.lane.b32.xlu0 %v3902_v49, %s3164_s14  ;;  %v4193_v49 = vld [vmem:[#allocation2 + $0xb0] sm:$0xff] }
 0x19a   : >> { %v1371_v25 = vpop.permute.xlu1 %1370  ;;  %v1948_v47 = vld [vmem:[#allocation4 + $0x110] sm:$0xff] }
 0x19b   : >> { %v1339_v28 = vpop.permute.xlu0 %1338  ;;  %v1916_v53 = vld [vmem:[#allocation4 + $0x10] sm:$0xff]  ;;  %1449 = vst.msk [vmem:[#allocation4 + $0x120] sm:$0xff] %vm1430_vm8, %v1371_v25  ;;  %2128 = vmatmul.mubr.f32.gmra.mrb[2].mxu1 %v1948_v47  ;;  %v1925_v25 = vld [vmem:[#allocation4 + $0x58] sm:$0xff] }
 0x19c   : >> { %1433 = vst.msk [vmem:[#allocation4 + $0x20] sm:$0xff] %vm1430_vm8, %v1339_v28  ;;  %2048 = vmatmul.mubr.f32.gmra.mrb[2].mxu0 %v1916_v53  ;;  %964 = vrot.lane.b32.xlu1 %v3726_v1, %s3165_s15  ;;  %v1085_v1 = vld [vmem:[#allocation2 + $0xa8] sm:$0xff] }
 0x19d   : >> { %1574 = vrot.lane.b32.xlu0 %v3787_v22, %s3168_s20  ;;  %2052 = vmatprep.mubr.f32.mxu0 %v1919_v11 }
 0x19e   : >> { %2132 = vmatprep.mubr.f32.mxu1 %v1951_v31  ;;  %v1565_v39 = vpop.permute.xlu1 %1564  ;;  %v1957_v31 = vld [vmem:[#allocation4 + $0x158] sm:$0xff] }
 0x19f   : >> { %v1533_v32 = vpop.permute.xlu0 %1532  ;;  %1643 = vst.msk [vmem:[#allocation4 + $0x120] sm:$0xff] %vm1624_vm9, %v1565_v39  ;;  %v895_v39 = vld [vmem:[#allocation2 + $0xcf] sm:$0xff] }
 0x1a0   : >> { %1627 = vst.msk [vmem:[#allocation4 + $0x20] sm:$0xff] %vm1624_vm9, %v1533_v32  ;;  %1735 = vrot.lane.b32.xlu1 %v4193_v49, %s3169_s21  ;;  %v1864_v32 = vld [vmem:[#allocation2 + $0x129] sm:$0xff] }
 0x1a1   : >> { %996 = vrot.lane.b32.xlu0 %v3789_v23, %s3165_s15  ;;  %1896 = vst.msk [vmem:[#allocation4 + $0xe8] sm:$0xff] %vm186_vm0, %v1864_v32  ;;  %v1493_v32 = vld [vmem:[#allocation2 + $0x20f] sm:$0xff] }
 0x1a2   : >> { %v987_v60 = vpop.permute.xlu1 %986 }
 0x1a3   : >> { %v955_v15 = vpop.permute.xlu0 %954  ;;  %1064 = vst.msk [vmem:[#allocation4 + $0x130] sm:$0xff] %vm1044_vm6, %v987_v60 }
 0x1a4   : >> { %1048 = vst.msk [vmem:[#allocation4 + $0x30] sm:$0xff] %vm1044_vm6, %v955_v15  ;;  %1157 = vrot.lane.b32.xlu1 %v1085_v1, %s3166_s17  ;;  %v1683_v15 = vld [vmem:[#allocation2 + $0x1e8] sm:$0xff] }
 0x1a5   : >> { %1767 = vrot.lane.b32.xlu0 %v3835_v33, %s3169_s21  ;;  %v1921_v33 = vld [vmem:[#allocation4 + $0x38] sm:$0xff] }
 0x1a6   : >> { %v1758_v43 = vpop.permute.xlu1 %1757 }
 0x1a7   : >> { %v1726_v24 = vpop.permute.xlu0 %1725  ;;  %1836 = vst.msk [vmem:[#allocation4 + $0x120] sm:$0xff] %vm1817_vm10, %v1758_v43  ;;  %v1667_v43 = vld [vmem:[#allocation2 + $0xe8] sm:$0xff] }
 0x1a8   : >> { %1820 = vst.msk [vmem:[#allocation4 + $0x20] sm:$0xff] %vm1817_vm10, %v1726_v24  ;;  %1350 = vrot.lane.b32.xlu1 %v3876_v37, %s3167_s19 }
 0x1a9   : >> { %1189 = vrot.lane.b32.xlu0 %v3837_v35, %s3166_s17 }
 0x1aa   : >> { %v1180_v23 = vpop.permute.xlu1 %1179 }
 0x1ab   : >> { %v1148_v51 = vpop.permute.xlu0 %1147  ;;  %1257 = vst.msk [vmem:[#allocation4 + $0x130] sm:$0xff] %vm1237_vm7, %v1180_v23 }
 0x1ac   : >> { %1241 = vst.msk [vmem:[#allocation4 + $0x30] sm:$0xff] %vm1237_vm7, %v1148_v51  ;;  %805 = vrot.lane.b32.xlu1 %v3934_v14, %s3164_s14 }
 0x1ad   : >> { %1382 = vrot.lane.b32.xlu0 %v3973_v21, %s3167_s19 }
 0x1ae   : >> { %v1373_v37 = vpop.permute.xlu1 %1372  ;;  %v1950_v8 = vld [vmem:[#allocation4 + $0x120] sm:$0xff] }
 0x1af   : >> { %v1341_v35 = vpop.permute.xlu0 %1340  ;;  %v1918_v58 = vld [vmem:[#allocation4 + $0x20] sm:$0xff]  ;;  %1450 = vst.msk [vmem:[#allocation4 + $0x130] sm:$0xff] %vm1430_vm8, %v1373_v37  ;;  %2133 = vmatmul.mubr.f32.gmra.mrb[4].mxu1 %v1950_v8 }
 0x1b0   : >> { %1434 = vst.msk [vmem:[#allocation4 + $0x30] sm:$0xff] %vm1430_vm8, %v1341_v35  ;;  %2053 = vmatmul.mubr.f32.gmra.mrb[4].mxu0 %v1918_v58  ;;  %1576 = vrot.lane.b32.xlu1 %v3805_v27, %s3168_s20  ;;  %v4323_v35 = vld [vmem:[#allocation2 + $0xef] sm:$0xff] }
 0x1b1   : >> { %1544 = vrot.lane.b32.xlu0 %v3736_v4, %s3168_s20  ;;  %2057 = vmatprep.mubr.f32.mxu0 %v1921_v33 }
 0x1b2   : >> { %2137 = vmatprep.mubr.f32.mxu1 %v1953_v59  ;;  %v1535_v14 = vpop.permute.xlu1 %1534 }
 0x1b3   : >> { %v796_v54 = vpop.permute.xlu0 %795  ;;  %1628 = vst.msk [vmem:[#allocation4 + $0x30] sm:$0xff] %vm1624_vm9, %v1535_v14  ;;  %v1927_v14 = vld [vmem:[#allocation4 + $0x68] sm:$0xff] }
 0x1b4   : >> { %872 = vst.msk [vmem:[#allocation4 + $0x140] sm:$0xff] %vm851_vm5, %v796_v54  ;;  %998 = vrot.lane.b32.xlu1 %v3787_v22, %s3165_s15  ;;  %v896_v54 = vld [vmem:[#allocation2 + $0xe7] sm:$0xff] }
 0x1b5   : >> { %966 = vrot.lane.b32.xlu0 %v3718_v0, %s3165_s15 }
 0x1b6   : >> { %v957_v19 = vpop.permute.xlu1 %956 }
 0x1b7   : >> { %v1567_v20 = vpop.permute.xlu0 %1566  ;;  %1049 = vst.msk [vmem:[#allocation4 + $0x40] sm:$0xff] %vm1044_vm6, %v957_v19 }
 0x1b8   : >> { %1644 = vst.msk [vmem:[#allocation4 + $0x130] sm:$0xff] %vm1624_vm9, %v1567_v20  ;;  %1769 = vrot.lane.b32.xlu1 %v4238_v63, %s3169_s21  ;;  %v1959_v20 = vld [vmem:[#allocation4 + $0x168] sm:$0xff] }
 0x1b9   : >> { %1737 = vrot.lane.b32.xlu0 %v1665_v56, %s3169_s21 }
 0x1ba   : >> { %v1728_v30 = vpop.permute.xlu1 %1727 }
 0x1bb   : >> { %v989_v22 = vpop.permute.xlu0 %988  ;;  %1821 = vst.msk [vmem:[#allocation4 + $0x30] sm:$0xff] %vm1817_vm10, %v1728_v30 }
 0x1bc   : >> { %1065 = vst.msk [vmem:[#allocation4 + $0x140] sm:$0xff] %vm1044_vm6, %v989_v22  ;;  %1191 = vrot.lane.b32.xlu1 %v1102_v42, %s3166_s17  ;;  %v4794_v42 = vld [vmem:[#allocation9_spill] sm:$0xff] }
 0x1bd   : >> { %1159 = vrot.lane.b32.xlu0 %v4193_v49, %s3166_s17  ;;  %v4792_v49 = vld [vmem:[#allocation10_spill] sm:$0xff] }
 0x1be   : >> { %v1150_v0 = vpop.permute.xlu1 %1149 }
 0x1bf   : >> { %v1760_v13 = vpop.permute.xlu0 %1759  ;;  %1242 = vst.msk [vmem:[#allocation4 + $0x40] sm:$0xff] %vm1237_vm7, %v1150_v0  ;;  %v1684_v0 = vld [vmem:[#allocation2 + $0x1f0] sm:$0xff] }
 0x1c0   : >> { %1837 = vst.msk [vmem:[#allocation4 + $0x130] sm:$0xff] %vm1817_vm10, %v1760_v13  ;;  %1384 = vrot.lane.b32.xlu1 %v4008_v38, %s3167_s19 }
 0x1c1   : >> { %1352 = vrot.lane.b32.xlu0 %v4010_v16, %s3167_s19 }
 0x1c2   : >> { %v1343_v55 = vpop.permute.xlu1 %1342  ;;  %v1920_v36 = vld [vmem:[#allocation4 + $0x30] sm:$0xff] }
 0x1c3   : >> { %v1182_v9 = vpop.permute.xlu0 %1181  ;;  %1435 = vst.msk [vmem:[#allocation4 + $0x40] sm:$0xff] %vm1430_vm8, %v1343_v55  ;;  %2058 = vmatmul.mubr.f32.gmra.mrb[6].mxu0 %v1920_v36 }
 0x1c4   : >> { %1258 = vst.msk [vmem:[#allocation4 + $0x140] sm:$0xff] %vm1237_vm7, %v1182_v9  ;;  %1546 = vrot.lane.b32.xlu1 %v3730_v3, %s3168_s20  ;;  %2062 = vmatprep.mubr.f32.mxu0 %v1923_v6  ;;  %v1666_v3 = vld [vmem:[#allocation2 + $0xd0] sm:$0xff] }
 0x1c5   : >> { %807 = vrot.lane.b32.xlu0 %v3973_v21, %s3164_s14 }
 0x1c6   : >> { %v798_v16 = vpop.permute.xlu1 %797 }
 0x1c7   : >> { %v1375_v50 = vpop.permute.xlu0 %1374  ;;  %v1952_v12 = vld [vmem:[#allocation4 + $0x130] sm:$0xff]  ;;  %873 = vst.msk [vmem:[#allocation4 + $0x150] sm:$0xff] %vm851_vm5, %v798_v16 }
 0x1c8   : >> { %1451 = vst.msk [vmem:[#allocation4 + $0x140] sm:$0xff] %vm1430_vm8, %v1375_v50  ;;  %2138 = vmatmul.mubr.f32.gmra.mrb[6].mxu1 %v1952_v12  ;;  %968 = vrot.lane.b32.xlu1 %v3736_v4, %s3165_s15  ;;  %v4357_v50 = vld [vmem:[#allocation2 + $0x207] sm:$0xff] }
 0x1c9   : >> { %1578 = vrot.lane.b32.xlu0 %v3803_v26, %s3168_s20  ;;  %2142 = vmatprep.mubr.f32.mxu1 %v1955_v17  ;;  %v1476_v12 = vld [vmem:[#allocation2 + $0x107] sm:$0xff] }
 0x1ca   : >> { %v1569_v21 = vpop.permute.xlu1 %1568  ;;  %v1929_v17 = vld [vmem:[#allocation4 + $0x78] sm:$0xff] }
 0x1cb   : >> { %v1537_v7 = vpop.permute.xlu0 %1536  ;;  %1645 = vst.msk [vmem:[#allocation4 + $0x140] sm:$0xff] %vm1624_vm9, %v1569_v21 }
 0x1cc   : >> { %1629 = vst.msk [vmem:[#allocation4 + $0x40] sm:$0xff] %vm1624_vm9, %v1537_v7  ;;  %1739 = vrot.lane.b32.xlu1 %v1666_v3, %s3169_s21 }
 0x1cd   : >> { %1000 = vrot.lane.b32.xlu0 %v3805_v27, %s3165_s15 }
 0x1ce   : >> { %v991_v18 = vpop.permute.xlu1 %990 }
 0x1cf   : >> { %v959_v48 = vpop.permute.xlu0 %958  ;;  %1066 = vst.msk [vmem:[#allocation4 + $0x150] sm:$0xff] %vm1044_vm6, %v991_v18 }
 0x1d0   : >> { %1050 = vst.msk [vmem:[#allocation4 + $0x50] sm:$0xff] %vm1044_vm6, %v959_v48  ;;  %1161 = vrot.lane.b32.xlu1 %v1665_v56, %s3166_s17 }
 0x1d1   : >> { %1771 = vrot.lane.b32.xlu0 %v1682_v62, %s3169_s21 }
 0x1d2   : >> { %v1762_v4 = vpop.permute.xlu1 %1761 }
 0x1d3   : >> { %v1730_v44 = vpop.permute.xlu0 %1729  ;;  %1838 = vst.msk [vmem:[#allocation4 + $0x140] sm:$0xff] %vm1817_vm10, %v1762_v4  ;;  %v1685_v4 = vld [vmem:[#allocation2 + $0x208] sm:$0xff] }
 0x1d4   : >> { %1822 = vst.msk [vmem:[#allocation4 + $0x40] sm:$0xff] %vm1817_vm10, %v1730_v44  ;;  %1354 = vrot.lane.b32.xlu1 %v4047_v41, %s3167_s19  ;;  %v1669_v44 = vld [vmem:[#allocation2 + $0x108] sm:$0xff] }
 0x1d5   : >> { %1193 = vrot.lane.b32.xlu0 %v4238_v63, %s3166_s17 }
 0x1d6   : >> { %v1184_v27 = vpop.permute.xlu1 %1183 }
 0x1d7   : >> { %v1152_v11 = vpop.permute.xlu0 %1151  ;;  %1259 = vst.msk [vmem:[#allocation4 + $0x150] sm:$0xff] %vm1237_vm7, %v1184_v27 }
 0x1d8   : >> { %1243 = vst.msk [vmem:[#allocation4 + $0x50] sm:$0xff] %vm1237_vm7, %v1152_v11  ;;  %809 = vrot.lane.b32.xlu1 %v4008_v38, %s3164_s14  ;;  %v4793_v38 = vld [vmem:[#allocation8_spill] sm:$0xff] }
 0x1d9   : >> { %1386 = vrot.lane.b32.xlu0 %v4057_v52, %s3167_s19 }
 0x1da   : >> { %v1377_v28 = vpop.permute.xlu1 %1376  ;;  %v1954_v41 = vld [vmem:[#allocation4 + $0x140] sm:$0xff] }
 0x1db   : >> { %v1345_v53 = vpop.permute.xlu0 %1344  ;;  %v1922_v47 = vld [vmem:[#allocation4 + $0x40] sm:$0xff]  ;;  %1452 = vst.msk [vmem:[#allocation4 + $0x150] sm:$0xff] %vm1430_vm8, %v1377_v28  ;;  %2143 = vmatmul.mubr.f32.gmra.mrb[8].mxu1 %v1954_v41 }
 0x1dc   : >> { %1436 = vst.msk [vmem:[#allocation4 + $0x50] sm:$0xff] %vm1430_vm8, %v1345_v53  ;;  %2063 = vmatmul.mubr.f32.gmra.mrb[8].mxu0 %v1922_v47  ;;  %1580 = vrot.lane.b32.xlu1 %v4792_v49, %s3168_s20  ;;  %v4383_v41 = vld [vmem:[#allocation2 + $0x10f] sm:$0xff] }
 0x1dd   : >> { %1548 = vrot.lane.b32.xlu0 %v4793_v38, %s3168_s20  ;;  %2067 = vmatprep.mubr.f32.mxu0 %v1925_v25 }
 0x1de   : >> { %2147 = vmatprep.mubr.f32.mxu1 %v1957_v31  ;;  %v1539_v1 = vpop.permute.xlu1 %1538 }
 0x1df   : >> { %v800_v60 = vpop.permute.xlu0 %799  ;;  %1630 = vst.msk [vmem:[#allocation4 + $0x50] sm:$0xff] %vm1624_vm9, %v1539_v1 }
 0x1e0   : >> { %874 = vst.msk [vmem:[#allocation4 + $0x160] sm:$0xff] %vm851_vm5, %v800_v60  ;;  %1002 = vrot.lane.b32.xlu1 %v3803_v26, %s3165_s15 }
 0x1e1   : >> { %970 = vrot.lane.b32.xlu0 %v895_v39, %s3165_s15  ;;  %v1931_v39 = vld [vmem:[#allocation4 + $0x88] sm:$0xff] }
 0x1e2   : >> { %v961_v24 = vpop.permute.xlu1 %960 }
 0x1e3   : >> { %v1571_v23 = vpop.permute.xlu0 %1570  ;;  %1051 = vst.msk [vmem:[#allocation4 + $0x60] sm:$0xff] %vm1044_vm6, %v961_v24 }
 0x1e4   : >> { %1646 = vst.msk [vmem:[#allocation4 + $0x150] sm:$0xff] %vm1624_vm9, %v1571_v23  ;;  %1773 = vrot.lane.b32.xlu1 %v1683_v15, %s3169_s21  ;;  %v1686_v23 = vld [vmem:[#allocation2 + $0x210] sm:$0xff] }
 0x1e5   : >> { %1741 = vrot.lane.b32.xlu0 %v1667_v43, %s3169_s21 }
 0x1e6   : >> { %v1732_v51 = vpop.permute.xlu1 %1731 }
 0x1e7   : >> { %v993_v33 = vpop.permute.xlu0 %992  ;;  %1823 = vst.msk [vmem:[#allocation4 + $0x50] sm:$0xff] %vm1817_vm10, %v1732_v51 }
 0x1e8   : >> { %1067 = vst.msk [vmem:[#allocation4 + $0x160] sm:$0xff] %vm1044_vm6, %v993_v33  ;;  %1195 = vrot.lane.b32.xlu1 %v1682_v62, %s3166_s17  ;;  %v1961_v62 = vld [vmem:[#allocation4 + $0x178] sm:$0xff] }
 0x1e9   : >> { %1163 = vrot.lane.b32.xlu0 %v1666_v3, %s3166_s17 }
 0x1ea   : >> { %v1154_v26 = vpop.permute.xlu1 %1153 }
 0x1eb   : >> { %v1764_v37 = vpop.permute.xlu0 %1763  ;;  %1244 = vst.msk [vmem:[#allocation4 + $0x60] sm:$0xff] %vm1237_vm7, %v1154_v26 }
 0x1ec   : >> { %1839 = vst.msk [vmem:[#allocation4 + $0x150] sm:$0xff] %vm1817_vm10, %v1764_v37  ;;  %1388 = vrot.lane.b32.xlu1 %v4092_v40, %s3167_s19 }
 0x1ed   : >> { %1356 = vrot.lane.b32.xlu0 %v4094_v57, %s3167_s19  ;;  %v1865_v57 = vld [vmem:[#allocation2 + $0x131] sm:$0xff] }
 0x1ee   : >> { %v1347_v58 = vpop.permute.xlu1 %1346  ;;  %v1924_v59 = vld [vmem:[#allocation4 + $0x50] sm:$0xff]  ;;  %1897 = vst.msk [vmem:[#allocation4 + $0xf8] sm:$0xff] %vm186_vm0, %v1865_v57 }
 0x1ef   : >> { %v1186_v8 = vpop.permute.xlu0 %1185  ;;  %1437 = vst.msk [vmem:[#allocation4 + $0x60] sm:$0xff] %vm1430_vm8, %v1347_v58  ;;  %2068 = vmatmul.mubr.f32.gmra.mrb[10].mxu0 %v1924_v59  ;;  %v1494_v59 = vld [vmem:[#allocation2 + $0x227] sm:$0xff] }
 0x1f0   : >> { %1260 = vst.msk [vmem:[#allocation4 + $0x160] sm:$0xff] %vm1237_vm7, %v1186_v8  ;;  %1550 = vrot.lane.b32.xlu1 %v4323_v35, %s3168_s20  ;;  %2072 = vmatprep.mubr.f32.mxu0 %v1927_v14  ;;  %v1880_v8 = vld [vmem:[#allocation2 + $0x229] sm:$0xff] }
 0x1f1   : >> { %811 = vrot.lane.b32.xlu0 %v4057_v52, %s3164_s14  ;;  %v1668_v52 = vld [vmem:[#allocation2 + $0xf0] sm:$0xff]  ;;  %1912 = vst.msk [vmem:[#allocation4 + $0x1e8] sm:$0xff] %vm186_vm0, %v1880_v8  ;;  %v1478_v14 = vld [vmem:[#allocation2 + $0x127] sm:$0xff] }
 0x1f2   : >> { %v802_v63 = vpop.permute.xlu1 %801 }
 0x1f3   : >> { %v1379_v56 = vpop.permute.xlu0 %1378  ;;  %v1956_v19 = vld [vmem:[#allocation4 + $0x150] sm:$0xff]  ;;  %875 = vst.msk [vmem:[#allocation4 + $0x170] sm:$0xff] %vm851_vm5, %v802_v63 }
 0x1f4   : >> { %1453 = vst.msk [vmem:[#allocation4 + $0x160] sm:$0xff] %vm1430_vm8, %v1379_v56  ;;  %2148 = vmatmul.mubr.f32.gmra.mrb[10].mxu1 %v1956_v19  ;;  %972 = vrot.lane.b32.xlu1 %v896_v54, %s3165_s15  ;;  %v1965_v19 = vld [vmem:[#allocation4 + $0x198] sm:$0xff] }
 0x1f5   : >> { %1582 = vrot.lane.b32.xlu0 %v4794_v42, %s3168_s20  ;;  %2152 = vmatprep.mubr.f32.mxu1 %v1959_v20  ;;  %v1687_v20 = vld [vmem:[#allocation2 + $0x228] sm:$0xff] }
 0x1f6   : >> { %v1573_v30 = vpop.permute.xlu1 %1572  ;;  %v1671_v42 = vld [vmem:[#allocation2 + $0x128] sm:$0xff] }
 0x1f7   : >> { %v1541_v22 = vpop.permute.xlu0 %1540  ;;  %1647 = vst.msk [vmem:[#allocation4 + $0x160] sm:$0xff] %vm1624_vm9, %v1573_v30 }
 0x1f8   : >> { %1631 = vst.msk [vmem:[#allocation4 + $0x60] sm:$0xff] %vm1624_vm9, %v1541_v22  ;;  %1743 = vrot.lane.b32.xlu1 %v1668_v52, %s3169_s21 }
 0x1f9   : >> { %1004 = vrot.lane.b32.xlu0 %v4792_v49, %s3165_s15 }
 0x1fa   : >> { %v995_v13 = vpop.permute.xlu1 %994 }
 0x1fb   : >> { %v963_v55 = vpop.permute.xlu0 %962  ;;  %1068 = vst.msk [vmem:[#allocation4 + $0x170] sm:$0xff] %vm1044_vm6, %v995_v13  ;;  %v1881_v13 = vld [vmem:[#allocation2 + $0x231] sm:$0xff] }
 0x1fc   : >> { %1052 = vst.msk [vmem:[#allocation4 + $0x70] sm:$0xff] %vm1044_vm6, %v963_v55  ;;  %1165 = vrot.lane.b32.xlu1 %v1667_v43, %s3166_s17  ;;  %v4395_v43 = vld [vmem:[#allocation2 + $0x110] sm:$0xff] }
 0x1fd   : >> { %1775 = vrot.lane.b32.xlu0 %v1684_v0, %s3169_s21  ;;  %1913 = vst.msk [vmem:[#allocation4 + $0x1f8] sm:$0xff] %vm186_vm0, %v1881_v13 }
 0x1fe   : >> { %v1766_v9 = vpop.permute.xlu1 %1765 }
 0x1ff   : >> { %v1734_v36 = vpop.permute.xlu0 %1733  ;;  %1840 = vst.msk [vmem:[#allocation4 + $0x160] sm:$0xff] %vm1817_vm10, %v1766_v9 }
 0x200   : >> { %1824 = vst.msk [vmem:[#allocation4 + $0x60] sm:$0xff] %vm1817_vm10, %v1734_v36  ;;  %1358 = vrot.lane.b32.xlu1 %v4131_v46, %s3167_s19  ;;  %v1495_v36 = vld [vmem:[#allocation2 + $0x22f] sm:$0xff] }
 0x201   : >> { %1197 = vrot.lane.b32.xlu0 %v1683_v15, %s3166_s17  ;;  %v1963_v15 = vld [vmem:[#allocation4 + $0x188] sm:$0xff] }
 0x202   : >> { %v1188_v6 = vpop.permute.xlu1 %1187 }
 0x203   : >> { %v1156_v16 = vpop.permute.xlu0 %1155  ;;  %1261 = vst.msk [vmem:[#allocation4 + $0x170] sm:$0xff] %vm1237_vm7, %v1188_v6  ;;  %v1479_v6 = vld [vmem:[#allocation2 + $0x12f] sm:$0xff] }
 0x204   : >> { %1245 = vst.msk [vmem:[#allocation4 + $0x70] sm:$0xff] %vm1237_vm7, %v1156_v16  ;;  %813 = vrot.lane.b32.xlu1 %v4092_v40, %s3164_s14  ;;  %v913_v40 = vld [vmem:[#allocation2 + $0x1ef] sm:$0xff] }
 0x205   : >> { %1390 = vrot.lane.b32.xlu0 %v4141_v34, %s3167_s19 }
 0x206   : >> { %v1381_v3 = vpop.permute.xlu1 %1380  ;;  %v1958_v7 = vld [vmem:[#allocation4 + $0x160] sm:$0xff] }
 0x207   : >> { %v1349_v46 = vpop.permute.xlu0 %1348  ;;  %v1926_v21 = vld [vmem:[#allocation4 + $0x60] sm:$0xff]  ;;  %1454 = vst.msk [vmem:[#allocation4 + $0x170] sm:$0xff] %vm1430_vm8, %v1381_v3  ;;  %2153 = vmatmul.mubr.f32.gmra.mrb[12].mxu1 %v1958_v7  ;;  %v1967_v7 = vld [vmem:[#allocation4 + $0x1a8] sm:$0xff] }
 0x208   : >> { %1438 = vst.msk [vmem:[#allocation4 + $0x70] sm:$0xff] %vm1430_vm8, %v1349_v46  ;;  %2073 = vmatmul.mubr.f32.gmra.mrb[12].mxu0 %v1926_v21  ;;  %1584 = vrot.lane.b32.xlu1 %v4357_v50, %s3168_s20  ;;  %v1688_v3 = vld [vmem:[#allocation2 + $0x230] sm:$0xff] }
 0x209   : >> { %1552 = vrot.lane.b32.xlu0 %v1476_v12, %s3168_s20  ;;  %2077 = vmatprep.mubr.f32.mxu0 %v1929_v17  ;;  %v1935_v17 = vld [vmem:[#allocation4 + $0xa8] sm:$0xff] }
 0x20a   : >> { %2157 = vmatprep.mubr.f32.mxu1 %v1961_v62  ;;  %v1543_v18 = vpop.permute.xlu1 %1542 }
 0x20b   : >> { %v804_v48 = vpop.permute.xlu0 %803  ;;  %1632 = vst.msk [vmem:[#allocation4 + $0x70] sm:$0xff] %vm1624_vm9, %v1543_v18 }
 0x20c   : >> { %876 = vst.msk [vmem:[#allocation4 + $0x180] sm:$0xff] %vm851_vm5, %v804_v48  ;;  %1006 = vrot.lane.b32.xlu1 %v913_v40, %s3165_s15 }
 0x20d   : >> { %974 = vrot.lane.b32.xlu0 %v4323_v35, %s3165_s15 }
 0x20e   : >> { %v965_v27 = vpop.permute.xlu1 %964 }
 0x20f   : >> { %v1575_v11 = vpop.permute.xlu0 %1574  ;;  %1053 = vst.msk [vmem:[#allocation4 + $0x80] sm:$0xff] %vm1044_vm6, %v965_v27 }
 0x210   : >> { %1648 = vst.msk [vmem:[#allocation4 + $0x170] sm:$0xff] %vm1624_vm9, %v1575_v11  ;;  %1777 = vrot.lane.b32.xlu1 %v1685_v4, %s3169_s21 }
 0x211   : >> { %1745 = vrot.lane.b32.xlu0 %v1669_v44, %s3169_s21 }
 0x212   : >> { %v1736_v25 = vpop.permute.xlu1 %1735 }
 0x213   : >> { %v997_v28 = vpop.permute.xlu0 %996  ;;  %1825 = vst.msk [vmem:[#allocation4 + $0x70] sm:$0xff] %vm1817_vm10, %v1736_v25 }
 0x214   : >> { %1069 = vst.msk [vmem:[#allocation4 + $0x180] sm:$0xff] %vm1044_vm6, %v997_v28  ;;  %1199 = vrot.lane.b32.xlu1 %v1684_v0, %s3166_s17 }
 0x215   : >> { %1167 = vrot.lane.b32.xlu0 %v1668_v52, %s3166_s17 }
 0x216   : >> { %v1158_v53 = vpop.permute.xlu1 %1157 }
 0x217   : >> { %v1768_v47 = vpop.permute.xlu0 %1767  ;;  %1246 = vst.msk [vmem:[#allocation4 + $0x80] sm:$0xff] %vm1237_vm7, %v1158_v53 }
 0x218   : >> { %1841 = vst.msk [vmem:[#allocation4 + $0x170] sm:$0xff] %vm1817_vm10, %v1768_v47  ;;  %1392 = vrot.lane.b32.xlu1 %v4175_v29, %s3167_s19 }
 0x219   : >> { %1360 = vrot.lane.b32.xlu0 %v4177_v45, %s3167_s19 }
 0x21a   : >> { %v1351_v31 = vpop.permute.xlu1 %1350  ;;  %v1928_v38 = vld [vmem:[#allocation4 + $0x70] sm:$0xff] }
 0x21b   : >> { %v1190_v49 = vpop.permute.xlu0 %1189  ;;  %1439 = vst.msk [vmem:[#allocation4 + $0x80] sm:$0xff] %vm1430_vm8, %v1351_v31  ;;  %2078 = vmatmul.mubr.f32.gmra.mrb[14].mxu0 %v1928_v38  ;;  %v1969_v38 = vld [vmem:[#allocation4 + $0x1b8] sm:$0xff] }
 0x21c   : >> { %1262 = vst.msk [vmem:[#allocation4 + $0x180] sm:$0xff] %vm1237_vm7, %v1190_v49  ;;  %1554 = vrot.lane.b32.xlu1 %v4383_v41, %s3168_s20  ;;  %2082 = vmatprep.mubr.f32.mxu0 %v1931_v39  ;;  %v1937_v49 = vld [vmem:[#allocation4 + $0xb8] sm:$0xff] }
 0x21d   : >> { %815 = vrot.lane.b32.xlu0 %v4141_v34, %s3164_s14 }
 0x21e   : >> { %v806_v45 = vpop.permute.xlu1 %805 }
 0x21f   : >> { %v1383_v1 = vpop.permute.xlu0 %1382  ;;  %v1960_v60 = vld [vmem:[#allocation4 + $0x170] sm:$0xff]  ;;  %877 = vst.msk [vmem:[#allocation4 + $0x190] sm:$0xff] %vm851_vm5, %v806_v45 }
 0x220   : >> { %1455 = vst.msk [vmem:[#allocation4 + $0x180] sm:$0xff] %vm1430_vm8, %v1383_v1  ;;  %2158 = vmatmul.mubr.f32.gmra.mrb[14].mxu1 %v1960_v60  ;;  %976 = vrot.lane.b32.xlu1 %v1476_v12, %s3165_s15 }
 0x221   : >> { %1586 = vrot.lane.b32.xlu0 %v1493_v32, %s3168_s20  ;;  %2162 = vmatprep.mubr.f32.mxu1 %v1963_v15 }
 0x222   : >> { %v1577_v24 = vpop.permute.xlu1 %1576 }
 0x223   : >> { %v1545_v34 = vpop.permute.xlu0 %1544  ;;  %1649 = vst.msk [vmem:[#allocation4 + $0x180] sm:$0xff] %vm1624_vm9, %v1577_v24 }
 0x224   : >> { %1633 = vst.msk [vmem:[#allocation4 + $0x80] sm:$0xff] %vm1624_vm9, %v1545_v34  ;;  %1747 = vrot.lane.b32.xlu1 %v4395_v43, %s3169_s21 }
 0x225   : >> { %1008 = vrot.lane.b32.xlu0 %v4357_v50, %s3165_s15 }
 0x226   : >> { %v999_v51 = vpop.permute.xlu1 %998 }
 0x227   : >> { %v967_v33 = vpop.permute.xlu0 %966  ;;  %1070 = vst.msk [vmem:[#allocation4 + $0x190] sm:$0xff] %vm1044_vm6, %v999_v51 }
 0x228   : >> { %1054 = vst.msk [vmem:[#allocation4 + $0x90] sm:$0xff] %vm1044_vm6, %v967_v33  ;;  %1169 = vrot.lane.b32.xlu1 %v1669_v44, %s3166_s17 }
 0x229   : >> { %1779 = vrot.lane.b32.xlu0 %v1686_v23, %s3169_s21 }
 0x22a   : >> { %v1770_v26 = vpop.permute.xlu1 %1769 }
 0x22b   : >> { %v1738_v37 = vpop.permute.xlu0 %1737  ;;  %1842 = vst.msk [vmem:[#allocation4 + $0x180] sm:$0xff] %vm1817_vm10, %v1770_v26 }
 0x22c   : >> { %1826 = vst.msk [vmem:[#allocation4 + $0x80] sm:$0xff] %vm1817_vm10, %v1738_v37  ;;  %1362 = vrot.lane.b32.xlu1 %v4214_v10, %s3167_s19  ;;  %v1933_v10 = vld [vmem:[#allocation4 + $0x98] sm:$0xff] }
 0x22d   : >> { %1201 = vrot.lane.b32.xlu0 %v1685_v4, %s3166_s17 }
 0x22e   : >> { %v1192_v35 = vpop.permute.xlu1 %1191 }
 0x22f   : >> { %v1160_v58 = vpop.permute.xlu0 %1159  ;;  %1263 = vst.msk [vmem:[#allocation4 + $0x190] sm:$0xff] %vm1237_vm7, %v1192_v35 }
 0x230   : >> { %1247 = vst.msk [vmem:[#allocation4 + $0x90] sm:$0xff] %vm1237_vm7, %v1160_v58  ;;  %817 = vrot.lane.b32.xlu1 %v4175_v29, %s3164_s14 }
 0x231   : >> { %1394 = vrot.lane.b32.xlu0 %v4224_v2, %s3167_s19 }
 0x232   : >> { %v1385_v54 = vpop.permute.xlu1 %1384  ;;  %v1962_v56 = vld [vmem:[#allocation4 + $0x180] sm:$0xff] }
 0x233   : >> { %v1353_v57 = vpop.permute.xlu0 %1352  ;;  %v1930_v63 = vld [vmem:[#allocation4 + $0x80] sm:$0xff]  ;;  %1456 = vst.msk [vmem:[#allocation4 + $0x190] sm:$0xff] %vm1430_vm8, %v1385_v54  ;;  %2163 = vmatmul.mubr.f32.gmra.mrb[16].mxu1 %v1962_v56 }
 0x234   : >> { %1440 = vst.msk [vmem:[#allocation4 + $0x90] sm:$0xff] %vm1430_vm8, %v1353_v57  ;;  %2083 = vmatmul.mubr.f32.gmra.mrb[16].mxu0 %v1930_v63  ;;  %1588 = vrot.lane.b32.xlu1 %v1494_v59, %s3168_s20  ;;  %v1971_v63 = vld [vmem:[#allocation4 + $0x1c8] sm:$0xff] }
 0x235   : >> { %1556 = vrot.lane.b32.xlu0 %v1478_v14, %s3168_s20  ;;  %2087 = vmatprep.mubr.f32.mxu0 %v1933_v10  ;;  %v1939_v14 = vld [vmem:[#allocation4 + $0xc8] sm:$0xff] }
 0x236   : >> { %2167 = vmatprep.mubr.f32.mxu1 %v1965_v19  ;;  %v1547_v29 = vpop.permute.xlu1 %1546 }
 0x237   : >> { %v808_v2 = vpop.permute.xlu0 %807  ;;  %1634 = vst.msk [vmem:[#allocation4 + $0x90] sm:$0xff] %vm1624_vm9, %v1547_v29 }
 0x238   : >> { %878 = vst.msk [vmem:[#allocation4 + $0x1a0] sm:$0xff] %vm851_vm5, %v808_v2  ;;  %1010 = vrot.lane.b32.xlu1 %v1493_v32, %s3165_s15 }
 0x239   : >> { %978 = vrot.lane.b32.xlu0 %v4383_v41, %s3165_s15 }
 0x23a   : >> { %v969_v52 = vpop.permute.xlu1 %968 }
 0x23b   : >> { %v1579_v30 = vpop.permute.xlu0 %1578  ;;  %1055 = vst.msk [vmem:[#allocation4 + $0xa0] sm:$0xff] %vm1044_vm6, %v969_v52 }
 0x23c   : >> { %1650 = vst.msk [vmem:[#allocation4 + $0x190] sm:$0xff] %vm1624_vm9, %v1579_v30  ;;  %1781 = vrot.lane.b32.xlu1 %v1687_v20, %s3169_s21 }
 0x23d   : >> { %1749 = vrot.lane.b32.xlu0 %v1671_v42, %s3169_s21 }
 0x23e   : >> { %v1740_v22 = vpop.permute.xlu1 %1739 }
 0x23f   : >> { %v1001_v0 = vpop.permute.xlu0 %1000  ;;  %1827 = vst.msk [vmem:[#allocation4 + $0x90] sm:$0xff] %vm1817_vm10, %v1740_v22 }
 0x240   : >> { %1071 = vst.msk [vmem:[#allocation4 + $0x1a0] sm:$0xff] %vm1044_vm6, %v1001_v0  ;;  %1203 = vrot.lane.b32.xlu1 %v1686_v23, %s3166_s17 }
 0x241   : >> { %1171 = vrot.lane.b32.xlu0 %v4395_v43, %s3166_s17 }
 0x242   : >> { %v1162_v55 = vpop.permute.xlu1 %1161 }
 0x243   : >> { %v1772_v9 = vpop.permute.xlu0 %1771  ;;  %1248 = vst.msk [vmem:[#allocation4 + $0xa0] sm:$0xff] %vm1237_vm7, %v1162_v55 }
 0x244   : >> { %1843 = vst.msk [vmem:[#allocation4 + $0x190] sm:$0xff] %vm1817_vm10, %v1772_v9  ;;  %1396 = vrot.lane.b32.xlu1 %v4258_v5, %s3167_s19  ;;  %v1672_v5 = vld [vmem:[#allocation2 + $0x130] sm:$0xff] }
 0x245   : >> { %1364 = vrot.lane.b32.xlu0 %v4260_v61, %s3167_s19 }
 0x246   : >> { %v1355_v16 = vpop.permute.xlu1 %1354  ;;  %v1932_v12 = vld [vmem:[#allocation4 + $0x90] sm:$0xff] }
 0x247   : >> { %v1194_v50 = vpop.permute.xlu0 %1193  ;;  %1441 = vst.msk [vmem:[#allocation4 + $0xa0] sm:$0xff] %vm1430_vm8, %v1355_v16  ;;  %2088 = vmatmul.mubr.f32.gmra.mrb[18].mxu0 %v1932_v12  ;;  %v1941_v12 = vld [vmem:[#allocation4 + $0xd8] sm:$0xff] }
 0x248   : >> { %1264 = vst.msk [vmem:[#allocation4 + $0x1a0] sm:$0xff] %vm1237_vm7, %v1194_v50  ;;  %1590 = vrot.lane.b32.xlu1 %v1495_v36, %s3168_s20  ;;  %2092 = vmatprep.mubr.f32.mxu0 %v1935_v17  ;;  %v1973_v17 = vld [vmem:[#allocation4 + $0x1d8] sm:$0xff] }
 0x249   : >> { %1558 = vrot.lane.b32.xlu0 %v1479_v6, %s3168_s20 }
 0x24a   : >> { %v810_v46 = vpop.permute.xlu1 %809 }
 0x24b   : >> { %v1387_v61 = vpop.permute.xlu0 %1386  ;;  %v1964_v21 = vld [vmem:[#allocation4 + $0x190] sm:$0xff]  ;;  %879 = vst.msk [vmem:[#allocation4 + $0x1b0] sm:$0xff] %vm851_vm5, %v810_v46 }
 0x24c   : >> { %1457 = vst.msk [vmem:[#allocation4 + $0x1a0] sm:$0xff] %vm1430_vm8, %v1387_v61  ;;  %2168 = vmatmul.mubr.f32.gmra.mrb[18].mxu1 %v1964_v21  ;;  %1783 = vrot.lane.b32.xlu1 %v1688_v3, %s3169_s21 }
 0x24d   : >> { %1751 = vrot.lane.b32.xlu0 %v1672_v5, %s3169_s21  ;;  %2172 = vmatprep.mubr.f32.mxu1 %v1967_v7 }
 0x24e   : >> { %v1581_v62 = vpop.permute.xlu1 %1580 }
 0x24f   : >> { %v1549_v40 = vpop.permute.xlu0 %1548  ;;  %1651 = vst.msk [vmem:[#allocation4 + $0x1a0] sm:$0xff] %vm1624_vm9, %v1581_v62 }
 0x250   : >> { %1635 = vst.msk [vmem:[#allocation4 + $0xa0] sm:$0xff] %vm1624_vm9, %v1549_v40 }
 0x252   : >> { %v1003_v18 = vpop.permute.xlu1 %1002 }
 0x253   : >> { %v971_v48 = vpop.permute.xlu0 %970  ;;  %1072 = vst.msk [vmem:[#allocation4 + $0x1b0] sm:$0xff] %vm1044_vm6, %v1003_v18 }
 0x254   : >> { %1056 = vst.msk [vmem:[#allocation4 + $0xb0] sm:$0xff] %vm1044_vm6, %v971_v48 }
 0x256   : >> { %v1774_v4 = vpop.permute.xlu1 %1773 }
 0x257   : >> { %v1742_v44 = vpop.permute.xlu0 %1741  ;;  %1844 = vst.msk [vmem:[#allocation4 + $0x1a0] sm:$0xff] %vm1817_vm10, %v1774_v4 }
 0x258   : >> { %1828 = vst.msk [vmem:[#allocation4 + $0xa0] sm:$0xff] %vm1817_vm10, %v1742_v44 }
 0x25a   : >> { %v1196_v27 = vpop.permute.xlu1 %1195  ;;  %v2124_v28 = vpop.f32.mrb[0].mxu1 }
 0x25b   : >> { %v1164_v11 = vpop.permute.xlu0 %1163  ;;  %1265 = vst.msk [vmem:[#allocation4 + $0x1b0] sm:$0xff] %vm1237_vm7, %v1196_v27  ;;  %v2044_v25 = vpop.f32.mrb[0].mxu0  ;;  %v2219_v47 = vmax.f32 %v2124_v28, 0.0 }
 0x25c   : >> { %1249 = vst.msk [vmem:[#allocation4 + $0xb0] sm:$0xff] %vm1237_vm7, %v1164_v11  ;;  %v2203_v53 = vmax.f32 %v2044_v25, 0.0  ;;  %v2046_v41 = vpop.f32.mrb[1].mxu0  ;;  %v2126_v31 = vpop.f32.mrb[1].mxu1 }
 0x25d   : >> { %2251 = vst.msk [vmem:[#allocation2 + $0x128] sm:$0xff] %vm186_vm0, %v2219_v47  ;;  %v1943_v41 = vld [vmem:[#allocation4 + $0xe8] sm:$0xff] }
 0x25e   : >> { %2235 = vst.msk [vmem:[#allocation2 + $0x28] sm:$0xff] %vm186_vm0, %v2203_v53  ;;  %v1389_v39 = vpop.permute.xlu1 %1388  ;;  %v1966_v1 = vld [vmem:[#allocation4 + $0x1a0] sm:$0xff] }
 0x25f   : >> { %v1357_v32 = vpop.permute.xlu0 %1356  ;;  %v1934_v45 = vld [vmem:[#allocation4 + $0xa0] sm:$0xff]  ;;  %1458 = vst.msk [vmem:[#allocation4 + $0x1b0] sm:$0xff] %vm1430_vm8, %v1389_v39  ;;  %2173 = vmatmul.mubr.f32.gmra.mrb[20].mxu1 %v1966_v1  ;;  %v1975_v39 = vld [vmem:[#allocation4 + $0x1e8] sm:$0xff] }
 0x260   : >> { %1442 = vst.msk [vmem:[#allocation4 + $0xb0] sm:$0xff] %vm1430_vm8, %v1357_v32  ;;  %2093 = vmatmul.mubr.f32.gmra.mrb[20].mxu0 %v1934_v45  ;;  %2177 = vmatprep.mubr.f32.mxu1 %v1969_v38 }
 0x261   : >> { %2097 = vmatprep.mubr.f32.mxu0 %v1937_v49 }
 0x262   : >> { %v1551_v60 = vpop.permute.xlu1 %1550 }
 0x263   : >> { %v812_v15 = vpop.permute.xlu0 %811  ;;  %1636 = vst.msk [vmem:[#allocation4 + $0xb0] sm:$0xff] %vm1624_vm9, %v1551_v60 }
 0x264   : >> { %880 = vst.msk [vmem:[#allocation4 + $0x1c0] sm:$0xff] %vm851_vm5, %v812_v15 }
 0x266   : >> { %v973_v43 = vpop.permute.xlu1 %972 }
 0x267   : >> { %v1583_v24 = vpop.permute.xlu0 %1582  ;;  %1057 = vst.msk [vmem:[#allocation4 + $0xc0] sm:$0xff] %vm1044_vm6, %v973_v43 }
 0x268   : >> { %1652 = vst.msk [vmem:[#allocation4 + $0x1b0] sm:$0xff] %vm1624_vm9, %v1583_v24 }
 0x26a   : >> { %v1744_v34 = vpop.permute.xlu1 %1743 }
 0x26b   : >> { %v1005_v23 = vpop.permute.xlu0 %1004  ;;  %1829 = vst.msk [vmem:[#allocation4 + $0xb0] sm:$0xff] %vm1817_vm10, %v1744_v34 }
 0x26c   : >> { %1073 = vst.msk [vmem:[#allocation4 + $0x1c0] sm:$0xff] %vm1044_vm6, %v1005_v23 }
 0x26e   : >> { %v1166_v51 = vpop.permute.xlu1 %1165  ;;  %v2129_v37 = vpop.f32.mrb[2].mxu1 }
 0x26f   : >> { %v1776_v33 = vpop.permute.xlu0 %1775  ;;  %1250 = vst.msk [vmem:[#allocation4 + $0xc0] sm:$0xff] %vm1237_vm7, %v1166_v51  ;;  %v2049_v26 = vpop.f32.mrb[2].mxu0  ;;  %v2220_v58 = vmax.f32 %v2129_v37, 0.0 }
 0x270   : >> { %1845 = vst.msk [vmem:[#allocation4 + $0x1b0] sm:$0xff] %vm1817_vm10, %v1776_v33  ;;  %v2204_v35 = vmax.f32 %v2049_v26, 0.0  ;;  %v2051_v8 = vpop.f32.mrb[3].mxu0  ;;  %v2131_v59 = vpop.f32.mrb[3].mxu1 }
 0x271   : >> { %2252 = vst.msk [vmem:[#allocation2 + $0x130] sm:$0xff] %vm186_vm0, %v2220_v58 }
 0x272   : >> { %2236 = vst.msk [vmem:[#allocation2 + $0x30] sm:$0xff] %vm186_vm0, %v2204_v35  ;;  %v1359_v10 = vpop.permute.xlu1 %1358  ;;  %v1936_v57 = vld [vmem:[#allocation4 + $0xb0] sm:$0xff] }
 0x273   : >> { %v1198_v54 = vpop.permute.xlu0 %1197  ;;  %1443 = vst.msk [vmem:[#allocation4 + $0xc0] sm:$0xff] %vm1430_vm8, %v1359_v10  ;;  %2098 = vmatmul.mubr.f32.gmra.mrb[22].mxu0 %v1936_v57  ;;  %v1977_v10 = vld [vmem:[#allocation4 + $0x1f8] sm:$0xff] }
 0x274   : >> { %1266 = vst.msk [vmem:[#allocation4 + $0x1c0] sm:$0xff] %vm1237_vm7, %v1198_v54  ;;  %2102 = vmatprep.mubr.f32.mxu0 %v1939_v14  ;;  %v1945_v14 = vld [vmem:[#allocation4 + $0xf8] sm:$0xff] }
 0x276   : >> { %v814_v56 = vpop.permute.xlu1 %813 }
 0x277   : >> { %v1391_v19 = vpop.permute.xlu0 %1390  ;;  %v1968_v29 = vld [vmem:[#allocation4 + $0x1b0] sm:$0xff]  ;;  %881 = vst.msk [vmem:[#allocation4 + $0x1d0] sm:$0xff] %vm851_vm5, %v814_v56 }
 0x278   : >> { %1459 = vst.msk [vmem:[#allocation4 + $0x1c0] sm:$0xff] %vm1430_vm8, %v1391_v19  ;;  %2178 = vmatmul.mubr.f32.gmra.mrb[22].mxu1 %v1968_v29 }
 0x279   : >> { %2182 = vmatprep.mubr.f32.mxu1 %v1971_v63 }
 0x27a   : >> { %v1585_v2 = vpop.permute.xlu1 %1584 }
 0x27b   : >> { %v1553_v20 = vpop.permute.xlu0 %1552  ;;  %1653 = vst.msk [vmem:[#allocation4 + $0x1c0] sm:$0xff] %vm1624_vm9, %v1585_v2 }
 0x27c   : >> { %1637 = vst.msk [vmem:[#allocation4 + $0xc0] sm:$0xff] %vm1624_vm9, %v1553_v20 }
 0x27e   : >> { %v1007_v42 = vpop.permute.xlu1 %1006 }
 0x27f   : >> { %v975_v52 = vpop.permute.xlu0 %974  ;;  %1074 = vst.msk [vmem:[#allocation4 + $0x1d0] sm:$0xff] %vm1044_vm6, %v1007_v42 }
 0x280   : >> { %1058 = vst.msk [vmem:[#allocation4 + $0xd0] sm:$0xff] %vm1044_vm6, %v975_v52 }
 0x282   : >> { %v1778_v30 = vpop.permute.xlu1 %1777  ;;  %v2134_v13 = vpop.f32.mrb[4].mxu1 }
 0x283   : >> { %v1746_v22 = vpop.permute.xlu0 %1745  ;;  %1846 = vst.msk [vmem:[#allocation4 + $0x1c0] sm:$0xff] %vm1817_vm10, %v1778_v30  ;;  %v2054_v0 = vpop.f32.mrb[4].mxu0  ;;  %v2221_v9 = vmax.f32 %v2134_v13, 0.0 }
 0x284   : >> { %1830 = vst.msk [vmem:[#allocation4 + $0xc0] sm:$0xff] %vm1817_vm10, %v1746_v22  ;;  %v2205_v55 = vmax.f32 %v2054_v0, 0.0  ;;  %v2056_v36 = vpop.f32.mrb[5].mxu0  ;;  %v2136_v6 = vpop.f32.mrb[5].mxu1 }
 0x285   : >> { %2253 = vst.msk [vmem:[#allocation2 + $0x148] sm:$0xff] %vm186_vm0, %v2221_v9 }
 0x286   : >> { %2237 = vst.msk [vmem:[#allocation2 + $0x48] sm:$0xff] %vm186_vm0, %v2205_v55  ;;  %v1200_v16 = vpop.permute.xlu1 %1199 }
 0x287   : >> { %v1168_v50 = vpop.permute.xlu0 %1167  ;;  %1267 = vst.msk [vmem:[#allocation4 + $0x1d0] sm:$0xff] %vm1237_vm7, %v1200_v16 }
 0x288   : >> { %1251 = vst.msk [vmem:[#allocation4 + $0xd0] sm:$0xff] %vm1237_vm7, %v1168_v50 }
 0x28a   : >> { %v1393_v3 = vpop.permute.xlu1 %1392  ;;  %v1970_v61 = vld [vmem:[#allocation4 + $0x1c0] sm:$0xff] }
 0x28b   : >> { %v1361_v5 = vpop.permute.xlu0 %1360  ;;  %v1938_v46 = vld [vmem:[#allocation4 + $0xc0] sm:$0xff]  ;;  %1460 = vst.msk [vmem:[#allocation4 + $0x1d0] sm:$0xff] %vm1430_vm8, %v1393_v3  ;;  %2183 = vmatmul.mubr.f32.gmra.mrb[24].mxu1 %v1970_v61 }
 0x28c   : >> { %1444 = vst.msk [vmem:[#allocation4 + $0xd0] sm:$0xff] %vm1430_vm8, %v1361_v5  ;;  %2103 = vmatmul.mubr.f32.gmra.mrb[24].mxu0 %v1938_v46  ;;  %2187 = vmatprep.mubr.f32.mxu1 %v1973_v17 }
 0x28d   : >> { %2107 = vmatprep.mubr.f32.mxu0 %v1941_v12 }
 0x28e   : >> { %v1555_v21 = vpop.permute.xlu1 %1554 }
 0x28f   : >> { %v816_v7 = vpop.permute.xlu0 %815  ;;  %1638 = vst.msk [vmem:[#allocation4 + $0xd0] sm:$0xff] %vm1624_vm9, %v1555_v21 }
 0x290   : >> { %882 = vst.msk [vmem:[#allocation4 + $0x1e0] sm:$0xff] %vm851_vm5, %v816_v7 }
 0x292   : >> { %v977_v62 = vpop.permute.xlu1 %976 }
 0x293   : >> { %v1587_v40 = vpop.permute.xlu0 %1586  ;;  %1059 = vst.msk [vmem:[#allocation4 + $0xe0] sm:$0xff] %vm1044_vm6, %v977_v62 }
 0x294   : >> { %1654 = vst.msk [vmem:[#allocation4 + $0x1d0] sm:$0xff] %vm1624_vm9, %v1587_v40 }
 0x296   : >> { %v1748_v18 = vpop.permute.xlu1 %1747  ;;  %v2059_v4 = vpop.f32.mrb[6].mxu0 }
 0x297   : >> { %v1009_v48 = vpop.permute.xlu0 %1008  ;;  %1831 = vst.msk [vmem:[#allocation4 + $0xd0] sm:$0xff] %vm1817_vm10, %v1748_v18  ;;  %v2206_v44 = vmax.f32 %v2059_v4, 0.0  ;;  %v2061_v27 = vpop.f32.mrb[7].mxu0 }
 0x298   : >> { %1075 = vst.msk [vmem:[#allocation4 + $0x1e0] sm:$0xff] %vm1044_vm6, %v1009_v48 }
 0x299   : >> { %2238 = vst.msk [vmem:[#allocation2 + $0x50] sm:$0xff] %vm186_vm0, %v2206_v44 }
 0x29a   : >> { %v1170_v11 = vpop.permute.xlu1 %1169 }
 0x29b   : >> { %v1780_v25 = vpop.permute.xlu0 %1779  ;;  %1252 = vst.msk [vmem:[#allocation4 + $0xe0] sm:$0xff] %vm1237_vm7, %v1170_v11  ;;  %v2139_v28 = vpop.f32.mrb[6].mxu1 }
 0x29c   : >> { %1847 = vst.msk [vmem:[#allocation4 + $0x1d0] sm:$0xff] %vm1817_vm10, %v1780_v25  ;;  %v2222_v53 = vmax.f32 %v2139_v28, 0.0  ;;  %v2141_v47 = vpop.f32.mrb[7].mxu1 }
 0x29e   : >> { %2254 = vst.msk [vmem:[#allocation2 + $0x150] sm:$0xff] %vm186_vm0, %v2222_v53  ;;  %v1363_v31 = vpop.permute.xlu1 %1362  ;;  %v1940_v38 = vld [vmem:[#allocation4 + $0xd0] sm:$0xff] }
 0x29f   : >> { %v1202_v49 = vpop.permute.xlu0 %1201  ;;  %1445 = vst.msk [vmem:[#allocation4 + $0xe0] sm:$0xff] %vm1430_vm8, %v1363_v31  ;;  %2108 = vmatmul.mubr.f32.gmra.mrb[26].mxu0 %v1940_v38 }
 0x2a0   : >> { %1268 = vst.msk [vmem:[#allocation4 + $0x1e0] sm:$0xff] %vm1237_vm7, %v1202_v49  ;;  %2112 = vmatprep.mubr.f32.mxu0 %v1943_v41 }
 0x2a2   : >> { %v818_v32 = vpop.permute.xlu1 %817 }
 0x2a3   : >> { %v1395_v45 = vpop.permute.xlu0 %1394  ;;  %v1972_v1 = vld [vmem:[#allocation4 + $0x1d0] sm:$0xff]  ;;  %883 = vst.msk [vmem:[#allocation4 + $0x1f0] sm:$0xff] %vm851_vm5, %v818_v32 }
 0x2a4   : >> { %1461 = vst.msk [vmem:[#allocation4 + $0x1e0] sm:$0xff] %vm1430_vm8, %v1395_v45  ;;  %2188 = vmatmul.mubr.f32.gmra.mrb[26].mxu1 %v1972_v1 }
 0x2a5   : >> { %2192 = vmatprep.mubr.f32.mxu1 %v1975_v39 }
 0x2a6   : >> { %v1589_v60 = vpop.permute.xlu1 %1588 }
 0x2a7   : >> { %v1557_v15 = vpop.permute.xlu0 %1556  ;;  %1655 = vst.msk [vmem:[#allocation4 + $0x1e0] sm:$0xff] %vm1624_vm9, %v1589_v60 }
 0x2a8   : >> { %1639 = vst.msk [vmem:[#allocation4 + $0xe0] sm:$0xff] %vm1624_vm9, %v1557_v15 }
 0x2aa   : >> { %v1011_v43 = vpop.permute.xlu1 %1010 }
 0x2ab   : >> { %v979_v24 = vpop.permute.xlu0 %978  ;;  %1076 = vst.msk [vmem:[#allocation4 + $0x1f0] sm:$0xff] %vm1044_vm6, %v1011_v43 }
 0x2ac   : >> { %1060 = vst.msk [vmem:[#allocation4 + $0xf0] sm:$0xff] %vm1044_vm6, %v979_v24 }
 0x2ae   : >> { %v1782_v34 = vpop.permute.xlu1 %1781  ;;  %v2144_v33 = vpop.f32.mrb[8].mxu1 }
 0x2af   : >> { %v1750_v23 = vpop.permute.xlu0 %1749  ;;  %1848 = vst.msk [vmem:[#allocation4 + $0x1e0] sm:$0xff] %vm1817_vm10, %v1782_v34  ;;  %v2064_v51 = vpop.f32.mrb[8].mxu0  ;;  %v2223_v37 = vmax.f32 %v2144_v33, 0.0 }
 0x2b0   : >> { %1832 = vst.msk [vmem:[#allocation4 + $0xe0] sm:$0xff] %vm1817_vm10, %v1750_v23  ;;  %v2207_v26 = vmax.f32 %v2064_v51, 0.0  ;;  %v2066_v35 = vpop.f32.mrb[9].mxu0  ;;  %v2146_v58 = vpop.f32.mrb[9].mxu1 }
 0x2b1   : >> { %2255 = vst.msk [vmem:[#allocation2 + $0x168] sm:$0xff] %vm186_vm0, %v2223_v37 }
 0x2b2   : >> { %2239 = vst.msk [vmem:[#allocation2 + $0x68] sm:$0xff] %vm186_vm0, %v2207_v26  ;;  %v1204_v8 = vpop.permute.xlu1 %1203 }
 0x2b3   : >> { %v1172_v59 = vpop.permute.xlu0 %1171  ;;  %1269 = vst.msk [vmem:[#allocation4 + $0x1f0] sm:$0xff] %vm1237_vm7, %v1204_v8 }
 0x2b4   : >> { %1253 = vst.msk [vmem:[#allocation4 + $0xf0] sm:$0xff] %vm1237_vm7, %v1172_v59 }
 0x2b6   : >> { %v1397_v54 = vpop.permute.xlu1 %1396  ;;  %v1974_v56 = vld [vmem:[#allocation4 + $0x1e0] sm:$0xff] }
 0x2b7   : >> { %v1365_v57 = vpop.permute.xlu0 %1364  ;;  %v1942_v63 = vld [vmem:[#allocation4 + $0xe0] sm:$0xff]  ;;  %1462 = vst.msk [vmem:[#allocation4 + $0x1f0] sm:$0xff] %vm1430_vm8, %v1397_v54  ;;  %2193 = vmatmul.mubr.f32.gmra.mrb[28].mxu1 %v1974_v56 }
 0x2b8   : >> { %1446 = vst.msk [vmem:[#allocation4 + $0xf0] sm:$0xff] %vm1430_vm8, %v1365_v57  ;;  %2113 = vmatmul.mubr.f32.gmra.mrb[28].mxu0 %v1942_v63  ;;  %2197 = vmatprep.mubr.f32.mxu1 %v1977_v10 }
 0x2b9   : >> { %2117 = vmatprep.mubr.f32.mxu0 %v1945_v14 }
 0x2ba   : >> { %v1591_v19 = vpop.permute.xlu1 %1590 }
 0x2bb   : >> { %v1559_v29 = vpop.permute.xlu0 %1558  ;;  %1656 = vst.msk [vmem:[#allocation4 + $0x1f0] sm:$0xff] %vm1624_vm9, %v1591_v19 }
 0x2bc   : >> { %1640 = vst.msk [vmem:[#allocation4 + $0xf0] sm:$0xff] %vm1624_vm9, %v1559_v29 }
 0x2be   : >> { %v1784_v2 = vpop.permute.xlu1 %1783 }
 0x2bf   : >> { %v1752_v20 = vpop.permute.xlu0 %1751  ;;  %1849 = vst.msk [vmem:[#allocation4 + $0x1f0] sm:$0xff] %vm1817_vm10, %v1784_v2 }
 0x2c0   : >> { %1833 = vst.msk [vmem:[#allocation4 + $0xf0] sm:$0xff] %vm1817_vm10, %v1752_v20 }
 0x2c2   : >> { %v2069_v42 = vpop.f32.mrb[10].mxu0 }
 0x2c3   : >> { %v2208_v52 = vmax.f32 %v2069_v42, 0.0  ;;  %v2071_v30 = vpop.f32.mrb[11].mxu0 }
 0x2c5   : >> { %2240 = vst.msk [vmem:[#allocation2 + $0x70] sm:$0xff] %vm186_vm0, %v2208_v52 }
 0x2c6   : >> { %v1976_v13 = vld [vmem:[#allocation4 + $0x1f0] sm:$0xff] }
 0x2c7   : >> { %v2149_v22 = vpop.f32.mrb[10].mxu1  ;;  %v1944_v0 = vld [vmem:[#allocation4 + $0xf0] sm:$0xff]  ;;  %2198 = vmatmul.mubr.f32.gmra.mrb[30].mxu1 %v1976_v13  ;;  %v2284_v13 = vld [vmem:[#allocation2 + $0x29] ss:$2 sm:$0xff] (%p423_p3) }
 0x2c8   : >> { %v2224_v55 = vmax.f32 %v2149_v22, 0.0  ;;  %2118 = vmatmul.mubr.f32.gmra.mrb[30].mxu0 %v1944_v0  ;;  %v2151_v9 = vpop.f32.mrb[11].mxu1  ;;  %v2268_v0 = vld [vmem:[#allocation2 + $0x28] ss:$2 sm:$0xff] (%p423_p3) }
 0x2c9   : > { %v2317_v9 = vld [vmem:[#allocation2 + $0x49] ss:$2 sm:$0xff] (%p423_p3) }
 0x2ca   : >> { %2256 = vst.msk [vmem:[#allocation2 + $0x170] sm:$0xff] %vm186_vm0, %v2224_v55  ;;  %v2301_v55 = vld [vmem:[#allocation2 + $0x48] ss:$2 sm:$0xff] (%p423_p3) }
 0x2da   : >> { %v2154_v6 = vpop.f32.mrb[12].mxu1 }
 0x2db   : >> { %v2074_v36 = vpop.f32.mrb[12].mxu0  ;;  %v2225_v50 = vmax.f32 %v2154_v6, 0.0  ;;  %v2156_v17 = vpop.f32.mrb[13].mxu1  ;;  %v2270_v6 = vld [vmem:[#allocation2 + $0x68] ss:$2 sm:$0xff] (%p423_p3) }
 0x2dc   : >> { %v2209_v16 = vmax.f32 %v2074_v36, 0.0  ;;  %v2076_v12 = vpop.f32.mrb[13].mxu0  ;;  %v2332_v36 = vmax.f32 (%p423_p3), %v2268_v0, %v2284_v13 }
 0x2dd   : >> { %2257 = vst.msk [vmem:[#allocation2 + $0x188] sm:$0xff] %vm186_vm0, %v2225_v50  ;;  %v2340_v50 = vmax.f32 (%p423_p3), %v2301_v55, %v2317_v9 }
 0x2de   : >> { %2241 = vst.msk [vmem:[#allocation2 + $0x88] sm:$0xff] %vm186_vm0, %v2209_v16  ;;  %v2286_v16 = vld [vmem:[#allocation2 + $0x69] ss:$2 sm:$0xff] (%p423_p3) }
 0x2ee   : >> { %v2079_v3 = vpop.f32.mrb[14].mxu0 }
 0x2ef   : >> { %v2210_v5 = vmax.f32 %v2079_v3, 0.0  ;;  %v2081_v46 = vpop.f32.mrb[15].mxu0  ;;  %v2333_v3 = vmax.f32 (%p423_p3), %v2270_v6, %v2286_v16 }
 0x2f1   : >> { %2242 = vst.msk [vmem:[#allocation2 + $0x90] sm:$0xff] %vm186_vm0, %v2210_v5 }
 0x2f3   : >> { %v2159_v61 = vpop.f32.mrb[14].mxu1 }
 0x2f4   : >> { %v2226_v21 = vmax.f32 %v2159_v61, 0.0  ;;  %v2161_v7 = vpop.f32.mrb[15].mxu1 }
 0x2f6   : >> { %2258 = vst.msk [vmem:[#allocation2 + $0x190] sm:$0xff] %vm186_vm0, %v2226_v21 }
 0x2f8   : > { %v2303_v12 = vld [vmem:[#allocation2 + $0x88] ss:$2 sm:$0xff] (%p423_p3)  ;;  %v2319_v17 = vld [vmem:[#allocation2 + $0x89] ss:$2 sm:$0xff] (%p423_p3) }
 0x2f9   : > { %v2341_v46 = vmax.f32 (%p423_p3), %v2303_v12, %v2319_v17 }
 0x306   : >> { %v2164_v40 = vpop.f32.mrb[16].mxu1 }
 0x307   : >> { %v2084_v62 = vpop.f32.mrb[16].mxu0  ;;  %v2227_v48 = vmax.f32 %v2164_v40, 0.0  ;;  %v2166_v44 = vpop.f32.mrb[17].mxu1 }
 0x308   : >> { %v2211_v18 = vmax.f32 %v2084_v62, 0.0  ;;  %v2086_v4 = vpop.f32.mrb[17].mxu0  ;;  %v2348_v62 = vmax.f32 (%p423_p3), %v2332_v36, %v2340_v50 }
 0x309   : >> { %2259 = vst.msk [vmem:[#allocation2 + $0x1a8] sm:$0xff] %vm186_vm0, %v2227_v48 }
 0x30a   : >> { %2243 = vst.msk [vmem:[#allocation2 + $0xa8] sm:$0xff] %vm186_vm0, %v2211_v18  ;;  %2357 = vst.msk [vmem:[#allocation3 + $0x20] sm:$0xff] (%p423_p3), %vm186_vm0, %v2348_v62 }
 0x31a   : >> { %v2089_v27 = vpop.f32.mrb[18].mxu0 }
 0x31b   : >> { %v2212_v11 = vmax.f32 %v2089_v27, 0.0  ;;  %v2091_v25 = vpop.f32.mrb[19].mxu0  ;;  %v2349_v27 = vmax.f32 (%p423_p3), %v2333_v3, %v2341_v46 }
 0x31d   : >> { %2244 = vst.msk [vmem:[#allocation2 + $0xb0] sm:$0xff] %vm186_vm0, %v2212_v11  ;;  %2358 = vst.msk [vmem:[#allocation3 + $0x38] sm:$0xff] (%p423_p3), %vm186_vm0, %v2349_v27 }
 0x31f   : >> { %v2169_v28 = vpop.f32.mrb[18].mxu1 }
 0x320   : >> { %v2228_v53 = vmax.f32 %v2169_v28, 0.0  ;;  %v2171_v47 = vpop.f32.mrb[19].mxu1  ;;  %v2276_v28 = vld [vmem:[#allocation2 + $0x128] ss:$2 sm:$0xff] (%p423_p3) }
 0x322   : >> { %2260 = vst.msk [vmem:[#allocation2 + $0x1b0] sm:$0xff] %vm186_vm0, %v2228_v53  ;;  %v2292_v53 = vld [vmem:[#allocation2 + $0x129] ss:$2 sm:$0xff] (%p423_p3) }
 0x324   : > { %v2272_v5 = vld [vmem:[#allocation2 + $0xa8] ss:$2 sm:$0xff] (%p423_p3)  ;;  %v2288_v61 = vld [vmem:[#allocation2 + $0xa9] ss:$2 sm:$0xff] (%p423_p3) }
 0x325   : > { %v2334_v40 = vmax.f32 (%p423_p3), %v2272_v5, %v2288_v61 }
 0x332   : >> { %v2174_v31 = vpop.f32.mrb[20].mxu1 }
 0x333   : >> { %v2094_v41 = vpop.f32.mrb[20].mxu0  ;;  %v2229_v38 = vmax.f32 %v2174_v31, 0.0  ;;  %v2176_v32 = vpop.f32.mrb[21].mxu1  ;;  %v2309_v31 = vld [vmem:[#allocation2 + $0x148] ss:$2 sm:$0xff] (%p423_p3) }
 0x334   : >> { %v2213_v49 = vmax.f32 %v2094_v41, 0.0  ;;  %v2096_v39 = vpop.f32.mrb[21].mxu0 }
 0x335   : >> { %2261 = vst.msk [vmem:[#allocation2 + $0x1c8] sm:$0xff] %vm186_vm0, %v2229_v38  ;;  %v2336_v38 = vmax.f32 (%p423_p3), %v2276_v28, %v2292_v53  ;;  %v2278_v39 = vld [vmem:[#allocation2 + $0x168] ss:$2 sm:$0xff] (%p423_p3) }
 0x336   : >> { %2245 = vst.msk [vmem:[#allocation2 + $0xc8] sm:$0xff] %vm186_vm0, %v2213_v49  ;;  %v2325_v49 = vld [vmem:[#allocation2 + $0x149] ss:$2 sm:$0xff] (%p423_p3) }
 0x337   : > { %v2344_v32 = vmax.f32 (%p423_p3), %v2309_v31, %v2325_v49 }
 0x346   : >> { %v2099_v45 = vpop.f32.mrb[22].mxu0 }
 0x347   : >> { %v2214_v1 = vmax.f32 %v2099_v45, 0.0  ;;  %v2101_v60 = vpop.f32.mrb[23].mxu0  ;;  %v2294_v45 = vld [vmem:[#allocation2 + $0x169] ss:$2 sm:$0xff] (%p423_p3) }
 0x348   : > { %v2327_v60 = vld [vmem:[#allocation2 + $0x189] ss:$2 sm:$0xff] (%p423_p3) }
 0x349   : >> { %2246 = vst.msk [vmem:[#allocation2 + $0xd0] sm:$0xff] %vm186_vm0, %v2214_v1  ;;  %v2311_v1 = vld [vmem:[#allocation2 + $0x188] ss:$2 sm:$0xff] (%p423_p3) }
 0x34b   : >> { %v2179_v15 = vpop.f32.mrb[22].mxu1 }
 0x34c   : >> { %v2230_v43 = vmax.f32 %v2179_v15, 0.0  ;;  %v2181_v24 = vpop.f32.mrb[23].mxu1 }
 0x34d   : > { %v2345_v24 = vmax.f32 (%p423_p3), %v2311_v1, %v2327_v60 }
 0x34e   : >> { %2262 = vst.msk [vmem:[#allocation2 + $0x1d0] sm:$0xff] %vm186_vm0, %v2230_v43  ;;  %v2337_v43 = vmax.f32 (%p423_p3), %v2278_v39, %v2294_v45 }
 0x350   : > { %v2305_v21 = vld [vmem:[#allocation2 + $0xc8] ss:$2 sm:$0xff] (%p423_p3)  ;;  %v2321_v7 = vld [vmem:[#allocation2 + $0xc9] ss:$2 sm:$0xff] (%p423_p3) }
 0x351   : > { %v2342_v18 = vmax.f32 (%p423_p3), %v2305_v21, %v2321_v7 }
 0x353   : > { %v2350_v47 = vmax.f32 (%p423_p3), %v2334_v40, %v2342_v18 }
 0x355   : > { %2359 = vst.msk [vmem:[#allocation3 + $0x50] sm:$0xff] (%p423_p3), %vm186_vm0, %v2350_v47 }
 0x35e   : >> { %v2184_v23 = vpop.f32.mrb[24].mxu1 }
 0x35f   : >> { %v2104_v34 = vpop.f32.mrb[24].mxu0  ;;  %v2231_v33 = vmax.f32 %v2184_v23, 0.0  ;;  %v2186_v37 = vpop.f32.mrb[25].mxu1  ;;  %v2296_v23 = vld [vmem:[#allocation2 + $0x1a9] ss:$2 sm:$0xff] (%p423_p3) }
 0x360   : >> { %v2215_v51 = vmax.f32 %v2104_v34, 0.0  ;;  %v2106_v26 = vpop.f32.mrb[25].mxu0  ;;  %v2280_v34 = vld [vmem:[#allocation2 + $0x1a8] ss:$2 sm:$0xff] (%p423_p3) }
 0x361   : >> { %2263 = vst.msk [vmem:[#allocation2 + $0x1e8] sm:$0xff] %vm186_vm0, %v2231_v33  ;;  %v2352_v33 = vmax.f32 (%p423_p3), %v2336_v38, %v2344_v32  ;;  %v2329_v26 = vld [vmem:[#allocation2 + $0x1c9] ss:$2 sm:$0xff] (%p423_p3)  ;;  %v2338_v37 = vmax.f32 (%p423_p3), %v2280_v34, %v2296_v23 }
 0x362   : >> { %2247 = vst.msk [vmem:[#allocation2 + $0xe8] sm:$0xff] %vm186_vm0, %v2215_v51  ;;  %v2313_v51 = vld [vmem:[#allocation2 + $0x1c8] ss:$2 sm:$0xff] (%p423_p3) }
 0x363   : > { %2361 = vst.msk [vmem:[#allocation3 + $0x80] sm:$0xff] (%p423_p3), %vm186_vm0, %v2352_v33 }
 0x372   : >> { %v2109_v35 = vpop.f32.mrb[26].mxu0 }
 0x373   : >> { %v2216_v58 = vmax.f32 %v2109_v35, 0.0  ;;  %v2111_v8 = vpop.f32.mrb[27].mxu0 }
 0x374   : > { %v2353_v8 = vmax.f32 (%p423_p3), %v2337_v43, %v2345_v24 }
 0x375   : >> { %2248 = vst.msk [vmem:[#allocation2 + $0xf0] sm:$0xff] %vm186_vm0, %v2216_v58 }
 0x376   : > { %2362 = vst.msk [vmem:[#allocation3 + $0x98] sm:$0xff] (%p423_p3), %vm186_vm0, %v2353_v8 }
 0x377   : >> { %v2189_v59 = vpop.f32.mrb[26].mxu1 }
 0x378   : >> { %v2232_v14 = vmax.f32 %v2189_v59, 0.0  ;;  %v2191_v10 = vpop.f32.mrb[27].mxu1  ;;  %v2346_v59 = vmax.f32 (%p423_p3), %v2313_v51, %v2329_v26 }
 0x37a   : >> { %2264 = vst.msk [vmem:[#allocation2 + $0x1f0] sm:$0xff] %vm186_vm0, %v2232_v14 }
 0x37c   : > { %v2274_v48 = vld [vmem:[#allocation2 + $0xe8] ss:$2 sm:$0xff] (%p423_p3)  ;;  %v2290_v4 = vld [vmem:[#allocation2 + $0xe9] ss:$2 sm:$0xff] (%p423_p3) }
 0x37d   : > { %v2335_v25 = vmax.f32 (%p423_p3), %v2274_v48, %v2290_v4 }
 0x381   : > { %v2282_v35 = vld [vmem:[#allocation2 + $0x1e8] ss:$2 sm:$0xff] (%p423_p3)  ;;  %v2298_v58 = vld [vmem:[#allocation2 + $0x1e9] ss:$2 sm:$0xff] (%p423_p3) }
 0x38a   : >> { %v2194_v57 = vpop.f32.mrb[28].mxu1 }
 0x38b   : >> { %v2114_v54 = vpop.f32.mrb[28].mxu0  ;;  %v2233_v56 = vmax.f32 %v2194_v57, 0.0  ;;  %v2196_v29 = vpop.f32.mrb[29].mxu1 }
 0x38c   : >> { %v2217_v63 = vmax.f32 %v2114_v54, 0.0  ;;  %v2116_v19 = vpop.f32.mrb[29].mxu0  ;;  %v2339_v54 = vmax.f32 (%p423_p3), %v2282_v35, %v2298_v58 }
 0x38d   : >> { %2265 = vst.msk [vmem:[#allocation2 + $0x208] sm:$0xff] %vm186_vm0, %v2233_v56 }
 0x38e   : >> { %2249 = vst.msk [vmem:[#allocation2 + $0x108] sm:$0xff] %vm186_vm0, %v2217_v63  ;;  %v2354_v63 = vmax.f32 (%p423_p3), %v2338_v37, %v2346_v59 }
 0x390   : > { %2363 = vst.msk [vmem:[#allocation3 + $0xb0] sm:$0xff] (%p423_p3), %vm186_vm0, %v2354_v63 }
 0x398   : > { %425 = sbr.rel (!%p423_p3) target bundleno = 143 (0x8f), region = 120 }
 0x39a   : >> { %v2199_v20 = vpop.f32.mrb[30].mxu1 }
 0x39b   : >> { %v2119_v2 = vpop.f32.mrb[30].mxu0  ;;  %v2234_v52 = vmax.f32 %v2199_v20, 0.0  ;;  %v2201_v22 = vpop.f32.mrb[31].mxu1 }
 0x39c   : >> { %v2218_v42 = vmax.f32 %v2119_v2, 0.0  ;;  %v2121_v30 = vpop.f32.mrb[31].mxu0 }
 0x39d   : >> { %2266 = vst.msk [vmem:[#allocation2 + $0x210] sm:$0xff] %vm186_vm0, %v2234_v52 }
 0x39e   : >> { %2250 = vst.msk [vmem:[#allocation2 + $0x110] sm:$0xff] %vm186_vm0, %v2218_v42 }
 0x3a4   : > { %v2315_v14 = vld [vmem:[#allocation2 + $0x208] ss:$2 sm:$0xff]  ;;  %v2331_v10 = vld [vmem:[#allocation2 + $0x209] ss:$2 sm:$0xff] }
 0x3a5   : > { %v2307_v44 = vld [vmem:[#allocation2 + $0x108] ss:$2 sm:$0xff]  ;;  %v2323_v11 = vld [vmem:[#allocation2 + $0x109] ss:$2 sm:$0xff]  ;;  %v2347_v57 = vmax.f32 %v2315_v14, %v2331_v10 }
 0x3a6   : > { %v2343_v41 = vmax.f32 %v2307_v44, %v2323_v11 }
 0x3a7   : > { %v2355_v56 = vmax.f32 %v2339_v54, %v2347_v57 }
 0x3a8   : > { %v2351_v15 = vmax.f32 %v2335_v25, %v2343_v41 }
 0x3a9   : > { %2364 = vst.msk [vmem:[#allocation3 + $0xc8] sm:$0xff] %vm186_vm0, %v2355_v56 }
 0x3aa   : > { %2360 = vst.msk [vmem:[#allocation3 + $0x68] sm:$0xff] %vm186_vm0, %v2351_v15 }
 0x3ab LB: >> { %v2441_v19 = vld [vmem:[#allocation3 + $0x9] sm:$0xff]  ;;  %s3170_s23 = smov 32   ;;  %s3171_s24 = smov 16   ;;  %v4562_v20 = vld [vmem:[#allocation3 + $0x7f] sm:$0xff]  ;;  %v2642_v22 = vld [vmem:[#allocation3 + $0x97] sm:$0xff]  ;;  %vm2881_vm11 = vcmask 64512   ;;  %s3156_s22 = sphi %s4553_s22, %s2370_s22  }
 0x3ac   : >> { %v2392_v29 = vld [vmem:[#allocation3 + $0x8] sm:$0xff]  ;;  %2457 = vrot.lane.b32.xlu1 %v2441_v19, %s3170_s23  ;;  %v2490_v42 = vld [vmem:[#allocation3 + $0x1f] sm:$0xff]  ;;  %2389 = vst.msk [vmem:[#allocation4 + $0x50] sm:$0xff] %vm186_vm0, %v4562_v20  ;;  %v2638_v0 = vld [vmem:[#allocation3 + $0x37] sm:$0xff]  ;;  %s3172_s25 = smov 48   ;;  %s3173_s26 = smov 64  }
 0x3ad   : >> { %2408 = vrot.lane.b32.xlu0 %v2392_v29, %s3171_s24  ;;  %v2592_v30 = vld [vmem:[#allocation3 + $0x81] sm:$0xff]  ;;  %2385 = vst.msk [vmem:[#allocation4 + $0x10] sm:$0xff] %vm186_vm0, %v2490_v42  ;;  %v4572_v13 = vld [vmem:[#allocation3 + $0x99] sm:$0xff]  ;;  %2390 = vst.msk [vmem:[#allocation4 + $0x60] sm:$0xff] %vm186_vm0, %v2642_v22  ;;  %s3174_s27 = smov 80   ;;  %s3040_s28 = sshll.u32 %s3156_s22, 4 }
 0x3ae   : >> { %2747 = vst.msk [vmem:[#allocation4 + $0x38] sm:$0xff] %vm186_vm0, %v2592_v30  ;;  %2386 = vst.msk [vmem:[#allocation4 + $0x20] sm:$0xff] %vm186_vm0, %v2638_v0  ;;  %v2589_v55 = vld [vmem:[#allocation3 + $0x39] sm:$0xff]  ;;  %v4580_v9 = vld [vmem:[#allocation3 + $0xaf] sm:$0xff]  ;;  %s2373_s4 = scalar_lea.vmem %s4776_s2, %s3040_s28  ;;  %s3175_s5 = smov 96  }
 0x3af   : >> { %v4582_v36 = vld [vmem:[#allocation3 + $0x4f] sm:$0xff]  ;;  %2748 = vst.msk [vmem:[#allocation4 + $0x48] sm:$0xff] %vm186_vm0, %v4572_v13  ;;  %2744 = vst.msk [vmem:[#allocation4 + $0x8] sm:$0xff] %vm186_vm0, %v2589_v55  ;;  %v2376_v17 = vld [vmem:[#allocation3 + $0x7] sm:$0xff]  ;;  %s3176_s6 = smov 112   ;;  %s2370_s22 = sadd.s32 1, %s3156_s22  }
 0x3b0   : >> { %v4586_v6 = vld [vmem:[#allocation3 + $0xb1] sm:$0xff]  ;;  %2391 = vst.msk [vmem:[#allocation4 + $0x70] sm:$0xff] %vm186_vm0, %v4580_v9  ;;  %2387 = vst.msk [vmem:[#allocation4 + $0x30] sm:$0xff] %vm186_vm0, %v4582_v36  ;;  %v4599_v12 = vld [vmem:[#allocation3 + $0xc9] sm:$0xff]  ;;  %p2367_p5 = scmp.ge.s32.totalorder %s2370_s22, 12  }
 0x3b1   : >> { %v4558_v2 = vld [vmem:[#allocation3 + $0x69] sm:$0xff]  ;;  %v4593_v16 = vld [vmem:[#allocation3 + $0x51] sm:$0xff]  ;;  %2749 = vst.msk [vmem:[#allocation4 + $0x58] sm:$0xff] %vm186_vm0, %v4586_v6  ;;  %2750 = vst.msk [vmem:[#allocation4 + $0x68] sm:$0xff] %vm186_vm0, %v4599_v12 }
 0x3b2   : >> { %2746 = vst.msk [vmem:[#allocation4 + $0x28] sm:$0xff] %vm186_vm0, %v4558_v2  ;;  %v4566_v52 = vld [vmem:[#allocation3 + $0x68] sm:$0xff]  ;;  %2465 = vrot.lane.b32.xlu1 %v4558_v2, %s3170_s23  ;;  %2745 = vst.msk [vmem:[#allocation4 + $0x18] sm:$0xff] %vm186_vm0, %v4593_v16  ;;  %v4610_v3 = vld [vmem:[#allocation3 + $0x80] sm:$0xff] }
 0x3b3   : >> { %2416 = vrot.lane.b32.xlu0 %v4566_v52, %s3171_s24  ;;  %v4595_v50 = vld [vmem:[#allocation3 + $0x67] sm:$0xff]  ;;  %2384 = vst.msk [vmem:[#allocation4] sm:$0xff] %vm186_vm0, %v2376_v17  ;;  %v2691_v40 = vld [vmem:[#allocation3 + $0x98] sm:$0xff]  ;;  %v2692_v48 = vld [vmem:[#allocation3 + $0xb0] sm:$0xff] }
 0x3b4   : >> { %2388 = vst.msk [vmem:[#allocation4 + $0x40] sm:$0xff] %vm186_vm0, %v4595_v50  ;;  %v2539_v5 = vld [vmem:[#allocation3 + $0x20] sm:$0xff]  ;;  %v2375_v61 = vld [vmem:[%s2373_s4 + $0x8] sm:$0xff]  ;;  %v2687_v18 = vld [vmem:[#allocation3 + $0x38] sm:$0xff] }
 0x3b5   : >> { %v2588_v46 = vld [vmem:[#allocation3 + $0x21] sm:$0xff]  ;;  %2768 = vmatprep.subr.mxu0 %v2375_v61  ;;  %3047 = vmatprep.subr.mxu1 %v2375_v61  ;;  %v2688_v4 = vld [vmem:[#allocation3 + $0x50] sm:$0xff] }
 0x3b6   : >> { %2514 = vrot.lane.b32.xlu1 %v4562_v20, %s3172_s25  ;;  %v2374_v21 = vld [vmem:[%s2373_s4] sm:$0xff]  ;;  %v2753_v7 = vld [vmem:[#allocation4 + $0x8] sm:$0xff]  ;;  %v2693_v27 = vld [vmem:[#allocation3 + $0xc8] sm:$0xff] }
 0x3b7   : >> { %2506 = vrot.lane.b32.xlu0 %v2490_v42, %s3172_s25  ;;  %v2761_v62 = vld [vmem:[#allocation4 + $0x48] sm:$0xff]  ;;  %2769 = vmatpush1.xpose.msra.mxu0 %v2374_v21  ;;  %v2644_v44 = vld [vmem:[#allocation3 + $0xc7] sm:$0xff] }
 0x3b8   : >> { %3048 = vmatpush1.xpose.msra.mxu1 %v2374_v21  ;;  %2832 = vmatprep.mubr.f32.mxu0 %v2753_v7  ;;  %v2743_v11 = vld [vmem:[#allocation3 + $0xe1] sm:$0xff] }
 0x3b9   : >> { %2852 = vmatprep.mubr.f32.mxu1 %v2761_v62  ;;  %2751 = vst.msk [vmem:[#allocation4 + $0x78] sm:$0xff] %vm186_vm0, %v2743_v11  ;;  %v2645_v25 = vld [vmem:[#allocation3 + $0xdf] sm:$0xff]  ;;  %v2755_v8 = vld [vmem:[#allocation4 + $0x18] sm:$0xff] }
 0x3ba   : >> { %2563 = vrot.lane.b32.xlu1 %v4610_v3, %s3173_s26  ;;  %v2694_v28 = vld [vmem:[#allocation3 + $0xe0] sm:$0xff]  ;;  %v2763_v59 = vld [vmem:[#allocation4 + $0x58] sm:$0xff] }
 0x3bb   : >> { %2555 = vrot.lane.b32.xlu0 %v2539_v5, %s3173_s26 }
 0x3be   : >> { %2418 = vrot.lane.b32.xlu1 %v4610_v3, %s3171_s24 }
 0x3bf   : >> { %2410 = vrot.lane.b32.xlu0 %v2539_v5, %s3171_s24 }
 0x3c2   : >> { %2612 = vrot.lane.b32.xlu1 %v2592_v30, %s3174_s27 }
 0x3c3   : >> { %2604 = vrot.lane.b32.xlu0 %v2588_v46, %s3174_s27 }
 0x3c6   : >> { %2467 = vrot.lane.b32.xlu1 %v2592_v30, %s3170_s23 }
 0x3c7   : >> { %2459 = vrot.lane.b32.xlu0 %v2588_v46, %s3170_s23 }
 0x3ca   : >> { %2662 = vrot.lane.b32.xlu1 %v2642_v22, %s3175_s5 }
 0x3cb   : >> { %2654 = vrot.lane.b32.xlu0 %v2638_v0, %s3175_s5 }
 0x3ce   : >> { %2516 = vrot.lane.b32.xlu1 %v2642_v22, %s3172_s25 }
 0x3cf   : >> { %2508 = vrot.lane.b32.xlu0 %v2638_v0, %s3172_s25 }
 0x3d2   : >> { %2711 = vrot.lane.b32.xlu1 %v2691_v40, %s3176_s6 }
 0x3d3   : >> { %2703 = vrot.lane.b32.xlu0 %v2687_v18, %s3176_s6 }
 0x3d6   : >> { %2565 = vrot.lane.b32.xlu1 %v2691_v40, %s3173_s26 }
 0x3d7   : >> { %2557 = vrot.lane.b32.xlu0 %v2687_v18, %s3173_s26 }
 0x3da   : >> { %2420 = vrot.lane.b32.xlu1 %v2691_v40, %s3171_s24 }
 0x3db   : >> { %2412 = vrot.lane.b32.xlu0 %v2687_v18, %s3171_s24 }
 0x3de   : >> { %2614 = vrot.lane.b32.xlu1 %v4572_v13, %s3174_s27 }
 0x3df   : >> { %2606 = vrot.lane.b32.xlu0 %v2589_v55, %s3174_s27 }
 0x3e2   : >> { %2469 = vrot.lane.b32.xlu1 %v4572_v13, %s3170_s23 }
 0x3e3   : >> { %2461 = vrot.lane.b32.xlu0 %v2589_v55, %s3170_s23  ;;  %v2757_v55 = vld [vmem:[#allocation4 + $0x28] sm:$0xff] }
 0x3e6   : >> { %2664 = vrot.lane.b32.xlu1 %v4580_v9, %s3175_s5 }
 0x3e7   : >> { %2656 = vrot.lane.b32.xlu0 %v4582_v36, %s3175_s5 }
 0x3ea   : >> { %2518 = vrot.lane.b32.xlu1 %v4580_v9, %s3172_s25  ;;  %v2765_v9 = vld [vmem:[#allocation4 + $0x68] sm:$0xff] }
 0x3eb   : >> { %2510 = vrot.lane.b32.xlu0 %v4582_v36, %s3172_s25 }
 0x3ee   : >> { %2713 = vrot.lane.b32.xlu1 %v2692_v48, %s3176_s6 }
 0x3ef   : >> { %2705 = vrot.lane.b32.xlu0 %v2688_v4, %s3176_s6 }
 0x3f2   : >> { %2567 = vrot.lane.b32.xlu1 %v2692_v48, %s3173_s26 }
 0x3f3   : >> { %2559 = vrot.lane.b32.xlu0 %v2688_v4, %s3173_s26 }
 0x3f6   : >> { %2422 = vrot.lane.b32.xlu1 %v2692_v48, %s3171_s24 }
 0x3f7   : >> { %2414 = vrot.lane.b32.xlu0 %v2688_v4, %s3171_s24  ;;  %v2759_v4 = vld [vmem:[#allocation4 + $0x38] sm:$0xff] }
 0x3fa   : >> { %2616 = vrot.lane.b32.xlu1 %v4586_v6, %s3174_s27 }
 0x3fb   : >> { %2608 = vrot.lane.b32.xlu0 %v4593_v16, %s3174_s27 }
 0x3fe   : >> { %2471 = vrot.lane.b32.xlu1 %v4586_v6, %s3170_s23 }
 0x3ff   : >> { %2463 = vrot.lane.b32.xlu0 %v4593_v16, %s3170_s23 }
 0x402   : >> { %2666 = vrot.lane.b32.xlu1 %v2644_v44, %s3175_s5 }
 0x403   : >> { %2658 = vrot.lane.b32.xlu0 %v4595_v50, %s3175_s5 }
 0x406   : >> { %2520 = vrot.lane.b32.xlu1 %v2644_v44, %s3172_s25  ;;  %v2767_v44 = vld [vmem:[#allocation4 + $0x78] sm:$0xff] }
 0x407   : >> { %2512 = vrot.lane.b32.xlu0 %v4595_v50, %s3172_s25 }
 0x40a   : >> { %2715 = vrot.lane.b32.xlu1 %v2693_v27, %s3176_s6 }
 0x40b   : >> { %2707 = vrot.lane.b32.xlu0 %v4566_v52, %s3176_s6 }
 0x40e   : >> { %2569 = vrot.lane.b32.xlu1 %v2693_v27, %s3173_s26 }
 0x40f   : >> { %2561 = vrot.lane.b32.xlu0 %v4566_v52, %s3173_s26 }
 0x412   : >> { %2618 = vrot.lane.b32.xlu1 %v4599_v12, %s3174_s27 }
 0x413   : >> { %2610 = vrot.lane.b32.xlu0 %v4558_v2, %s3174_s27 }
 0x416   : >> { %2668 = vrot.lane.b32.xlu1 %v2645_v25, %s3175_s5 }
 0x417   : >> { %2660 = vrot.lane.b32.xlu0 %v4562_v20, %s3175_s5 }
 0x41a   : >> { %2717 = vrot.lane.b32.xlu1 %v2694_v28, %s3176_s6 }
 0x41b   : >> { %2709 = vrot.lane.b32.xlu0 %v4610_v3, %s3176_s6 }
 0x41e   : >> { %v2458_v53 = vpop.permute.xlu1 %2457 }
 0x41f   : >> { %v2409_v47 = vpop.permute.xlu0 %2408 }
 0x420   : >> { %2433 = vst.msk [vmem:[#allocation4] sm:$0xff] %vm658_vm4, %v2409_v47 }
 0x421   : >> { %2482 = vst.msk [vmem:[#allocation4] sm:$0xff] %vm851_vm5, %v2458_v53 }
 0x424   : >> { %v2466_v41 = vpop.permute.xlu1 %2465 }
 0x425   : >> { %v2417_v31 = vpop.permute.xlu0 %2416 }
 0x426   : >> { %2437 = vst.msk [vmem:[#allocation4 + $0x40] sm:$0xff] %vm658_vm4, %v2417_v31 }
 0x427   : >> { %2486 = vst.msk [vmem:[#allocation4 + $0x40] sm:$0xff] %vm851_vm5, %v2466_v41 }
 0x428   : >> { %v2515_v49 = vpop.permute.xlu1 %2514 }
 0x429   : >> { %v2507_v38 = vpop.permute.xlu0 %2506  ;;  %2535 = vst.msk [vmem:[#allocation4 + $0x40] sm:$0xff] %vm1044_vm6, %v2515_v49 }
 0x42a   : >> { %2531 = vst.msk [vmem:[#allocation4] sm:$0xff] %vm1044_vm6, %v2507_v38 }
 0x42c   : >> { %v2564_v39 = vpop.permute.xlu1 %2563 }
 0x42d   : >> { %v2556_v32 = vpop.permute.xlu0 %2555  ;;  %2584 = vst.msk [vmem:[#allocation4 + $0x40] sm:$0xff] %vm1237_vm7, %v2564_v39 }
 0x42e   : >> { %2580 = vst.msk [vmem:[#allocation4] sm:$0xff] %vm1237_vm7, %v2556_v32 }
 0x430   : >> { %v2419_v45 = vpop.permute.xlu1 %2418 }
 0x431   : >> { %v2411_v1 = vpop.permute.xlu0 %2410  ;;  %2438 = vst.msk [vmem:[#allocation4 + $0x50] sm:$0xff] %vm658_vm4, %v2419_v45 }
 0x432   : >> { %2434 = vst.msk [vmem:[#allocation4 + $0x10] sm:$0xff] %vm658_vm4, %v2411_v1 }
 0x434   : >> { %v2613_v60 = vpop.permute.xlu1 %2612 }
 0x435   : >> { %v2605_v15 = vpop.permute.xlu0 %2604  ;;  %2633 = vst.msk [vmem:[#allocation4 + $0x40] sm:$0xff] %vm1430_vm8, %v2613_v60 }
 0x436   : >> { %2629 = vst.msk [vmem:[#allocation4] sm:$0xff] %vm1430_vm8, %v2605_v15 }
 0x438   : >> { %v2468_v43 = vpop.permute.xlu1 %2467 }
 0x439   : >> { %v2460_v24 = vpop.permute.xlu0 %2459  ;;  %2487 = vst.msk [vmem:[#allocation4 + $0x50] sm:$0xff] %vm851_vm5, %v2468_v43 }
 0x43a   : >> { %2483 = vst.msk [vmem:[#allocation4 + $0x10] sm:$0xff] %vm851_vm5, %v2460_v24 }
 0x43c   : >> { %v2663_v34 = vpop.permute.xlu1 %2662 }
 0x43d   : >> { %v2655_v23 = vpop.permute.xlu0 %2654  ;;  %2683 = vst.msk [vmem:[#allocation4 + $0x40] sm:$0xff] %vm1624_vm9, %v2663_v34 }
 0x43e   : >> { %2679 = vst.msk [vmem:[#allocation4] sm:$0xff] %vm1624_vm9, %v2655_v23 }
 0x440   : >> { %v2517_v51 = vpop.permute.xlu1 %2516 }
 0x441   : >> { %v2509_v33 = vpop.permute.xlu0 %2508  ;;  %2536 = vst.msk [vmem:[#allocation4 + $0x50] sm:$0xff] %vm1044_vm6, %v2517_v51 }
 0x442   : >> { %2532 = vst.msk [vmem:[#allocation4 + $0x10] sm:$0xff] %vm1044_vm6, %v2509_v33 }
 0x444   : >> { %v2712_v26 = vpop.permute.xlu1 %2711 }
 0x445   : >> { %v2704_v37 = vpop.permute.xlu0 %2703  ;;  %2732 = vst.msk [vmem:[#allocation4 + $0x40] sm:$0xff] %vm1817_vm10, %v2712_v26 }
 0x446   : >> { %2728 = vst.msk [vmem:[#allocation4] sm:$0xff] %vm1817_vm10, %v2704_v37 }
 0x448   : >> { %v2566_v35 = vpop.permute.xlu1 %2565 }
 0x449   : >> { %v2558_v58 = vpop.permute.xlu0 %2557  ;;  %2585 = vst.msk [vmem:[#allocation4 + $0x50] sm:$0xff] %vm1237_vm7, %v2566_v35 }
 0x44a   : >> { %2581 = vst.msk [vmem:[#allocation4 + $0x10] sm:$0xff] %vm1237_vm7, %v2558_v58 }
 0x44c   : >> { %v2421_v14 = vpop.permute.xlu1 %2420  ;;  %v2760_v57 = vld [vmem:[#allocation4 + $0x40] sm:$0xff] }
 0x44d   : >> { %v2413_v10 = vpop.permute.xlu0 %2412  ;;  %v2752_v54 = vld [vmem:[#allocation4] sm:$0xff]  ;;  %2439 = vst.msk [vmem:[#allocation4 + $0x60] sm:$0xff] %vm658_vm4, %v2421_v14  ;;  %2853 = vmatmul.mubr.f32.vlgmr.msra.gmra.mrb[0].mxu1 %v2760_v57 }
 0x44e   : >> { %2435 = vst.msk [vmem:[#allocation4 + $0x20] sm:$0xff] %vm658_vm4, %v2413_v10  ;;  %2833 = vmatmul.mubr.f32.vlgmr.msra.gmra.mrb[0].mxu0 %v2752_v54  ;;  %2857 = vmatprep.mubr.f32.mxu1 %v2763_v59 }
 0x44f   : >> { %2837 = vmatprep.mubr.f32.mxu0 %v2755_v8 }
 0x450   : >> { %v2615_v63 = vpop.permute.xlu1 %2614 }
 0x451   : >> { %v2607_v56 = vpop.permute.xlu0 %2606  ;;  %2634 = vst.msk [vmem:[#allocation4 + $0x50] sm:$0xff] %vm1430_vm8, %v2615_v63 }
 0x452   : >> { %2630 = vst.msk [vmem:[#allocation4 + $0x10] sm:$0xff] %vm1430_vm8, %v2607_v56 }
 0x454   : >> { %v2470_v19 = vpop.permute.xlu1 %2469 }
 0x455   : >> { %v2462_v29 = vpop.permute.xlu0 %2461  ;;  %2488 = vst.msk [vmem:[#allocation4 + $0x60] sm:$0xff] %vm851_vm5, %v2470_v19 }
 0x456   : >> { %2484 = vst.msk [vmem:[#allocation4 + $0x20] sm:$0xff] %vm851_vm5, %v2462_v29 }
 0x458   : >> { %v2665_v2 = vpop.permute.xlu1 %2664 }
 0x459   : >> { %v2657_v20 = vpop.permute.xlu0 %2656  ;;  %2684 = vst.msk [vmem:[#allocation4 + $0x50] sm:$0xff] %vm1624_vm9, %v2665_v2 }
 0x45a   : >> { %2680 = vst.msk [vmem:[#allocation4 + $0x10] sm:$0xff] %vm1624_vm9, %v2657_v20 }
 0x45c   : >> { %v2519_v42 = vpop.permute.xlu1 %2518 }
 0x45d   : >> { %v2511_v52 = vpop.permute.xlu0 %2510  ;;  %2537 = vst.msk [vmem:[#allocation4 + $0x60] sm:$0xff] %vm1044_vm6, %v2519_v42 }
 0x45e   : >> { %2533 = vst.msk [vmem:[#allocation4 + $0x20] sm:$0xff] %vm1044_vm6, %v2511_v52 }
 0x460   : >> { %v2714_v30 = vpop.permute.xlu1 %2713 }
 0x461   : >> { %v2706_v22 = vpop.permute.xlu0 %2705  ;;  %2733 = vst.msk [vmem:[#allocation4 + $0x50] sm:$0xff] %vm1817_vm10, %v2714_v30 }
 0x462   : >> { %2729 = vst.msk [vmem:[#allocation4 + $0x10] sm:$0xff] %vm1817_vm10, %v2706_v22 }
 0x464   : >> { %v2568_v0 = vpop.permute.xlu1 %2567 }
 0x465   : >> { %v2560_v13 = vpop.permute.xlu0 %2559  ;;  %2586 = vst.msk [vmem:[#allocation4 + $0x60] sm:$0xff] %vm1237_vm7, %v2568_v0 }
 0x466   : >> { %2582 = vst.msk [vmem:[#allocation4 + $0x20] sm:$0xff] %vm1237_vm7, %v2560_v13 }
 0x468   : >> { %v2423_v36 = vpop.permute.xlu1 %2422  ;;  %v2762_v50 = vld [vmem:[#allocation4 + $0x50] sm:$0xff] }
 0x469   : >> { %v2415_v6 = vpop.permute.xlu0 %2414  ;;  %v2754_v16 = vld [vmem:[#allocation4 + $0x10] sm:$0xff]  ;;  %2440 = vst.msk [vmem:[#allocation4 + $0x70] sm:$0xff] %vm658_vm4, %v2423_v36  ;;  %2858 = vmatmul.mubr.f32.gmra.mrb[2].mxu1 %v2762_v50 }
 0x46a   : >> { %2436 = vst.msk [vmem:[#allocation4 + $0x30] sm:$0xff] %vm658_vm4, %v2415_v6  ;;  %2838 = vmatmul.mubr.f32.gmra.mrb[2].mxu0 %v2754_v16  ;;  %2862 = vmatprep.mubr.f32.mxu1 %v2765_v9 }
 0x46b   : >> { %2842 = vmatprep.mubr.f32.mxu0 %v2757_v55 }
 0x46c   : >> { %v2617_v12 = vpop.permute.xlu1 %2616 }
 0x46d   : >> { %v2609_v17 = vpop.permute.xlu0 %2608  ;;  %2635 = vst.msk [vmem:[#allocation4 + $0x60] sm:$0xff] %vm1430_vm8, %v2617_v12 }
 0x46e   : >> { %2631 = vst.msk [vmem:[#allocation4 + $0x20] sm:$0xff] %vm1430_vm8, %v2609_v17 }
 0x470   : >> { %v2472_v3 = vpop.permute.xlu1 %2471 }
 0x471   : >> { %v2464_v5 = vpop.permute.xlu0 %2463  ;;  %2489 = vst.msk [vmem:[#allocation4 + $0x70] sm:$0xff] %vm851_vm5, %v2472_v3 }
 0x472   : >> { %2485 = vst.msk [vmem:[#allocation4 + $0x30] sm:$0xff] %vm851_vm5, %v2464_v5 }
 0x474   : >> { %v2667_v46 = vpop.permute.xlu1 %2666 }
 0x475   : >> { %v2659_v61 = vpop.permute.xlu0 %2658  ;;  %2685 = vst.msk [vmem:[#allocation4 + $0x60] sm:$0xff] %vm1624_vm9, %v2667_v46 }
 0x476   : >> { %2681 = vst.msk [vmem:[#allocation4 + $0x20] sm:$0xff] %vm1624_vm9, %v2659_v61 }
 0x478   : >> { %v2521_v21 = vpop.permute.xlu1 %2520 }
 0x479   : >> { %v2513_v7 = vpop.permute.xlu0 %2512  ;;  %2538 = vst.msk [vmem:[#allocation4 + $0x70] sm:$0xff] %vm1044_vm6, %v2521_v21 }
 0x47a   : >> { %2534 = vst.msk [vmem:[#allocation4 + $0x30] sm:$0xff] %vm1044_vm6, %v2513_v7 }
 0x47c   : >> { %v2716_v62 = vpop.permute.xlu1 %2715 }
 0x47d   : >> { %v2708_v40 = vpop.permute.xlu0 %2707  ;;  %2734 = vst.msk [vmem:[#allocation4 + $0x60] sm:$0xff] %vm1817_vm10, %v2716_v62 }
 0x47e   : >> { %2730 = vst.msk [vmem:[#allocation4 + $0x20] sm:$0xff] %vm1817_vm10, %v2708_v40 }
 0x480   : >> { %v2570_v18 = vpop.permute.xlu1 %2569 }
 0x481   : >> { %v2562_v48 = vpop.permute.xlu0 %2561  ;;  %2587 = vst.msk [vmem:[#allocation4 + $0x70] sm:$0xff] %vm1237_vm7, %v2570_v18 }
 0x482   : >> { %2583 = vst.msk [vmem:[#allocation4 + $0x30] sm:$0xff] %vm1237_vm7, %v2562_v48 }
 0x484   : >> { %v2619_v27 = vpop.permute.xlu1 %2618  ;;  %v2764_v28 = vld [vmem:[#allocation4 + $0x60] sm:$0xff] }
 0x485   : >> { %v2611_v11 = vpop.permute.xlu0 %2610  ;;  %v2756_v25 = vld [vmem:[#allocation4 + $0x20] sm:$0xff]  ;;  %2636 = vst.msk [vmem:[#allocation4 + $0x70] sm:$0xff] %vm1430_vm8, %v2619_v27  ;;  %2863 = vmatmul.mubr.f32.gmra.mrb[4].mxu1 %v2764_v28 }
 0x486   : >> { %2632 = vst.msk [vmem:[#allocation4 + $0x30] sm:$0xff] %vm1430_vm8, %v2611_v11  ;;  %2843 = vmatmul.mubr.f32.gmra.mrb[4].mxu0 %v2756_v25  ;;  %2867 = vmatprep.mubr.f32.mxu1 %v2767_v44 }
 0x487   : >> { %2847 = vmatprep.mubr.f32.mxu0 %v2759_v4 }
 0x488   : >> { %v2669_v53 = vpop.permute.xlu1 %2668 }
 0x489   : >> { %v2661_v47 = vpop.permute.xlu0 %2660  ;;  %2686 = vst.msk [vmem:[#allocation4 + $0x70] sm:$0xff] %vm1624_vm9, %v2669_v53 }
 0x48a   : >> { %2682 = vst.msk [vmem:[#allocation4 + $0x30] sm:$0xff] %vm1624_vm9, %v2661_v47 }
 0x48c   : >> { %v2718_v41 = vpop.permute.xlu1 %2717 }
 0x48d   : >> { %v2710_v31 = vpop.permute.xlu0 %2709  ;;  %2735 = vst.msk [vmem:[#allocation4 + $0x70] sm:$0xff] %vm1817_vm10, %v2718_v41 }
 0x48e   : >> { %2731 = vst.msk [vmem:[#allocation4 + $0x30] sm:$0xff] %vm1817_vm10, %v2710_v31 }
 0x494   : >> { %v2766_v38 = vld [vmem:[#allocation4 + $0x70] sm:$0xff] }
 0x495   : >> { %v2758_v49 = vld [vmem:[#allocation4 + $0x30] sm:$0xff]  ;;  %2868 = vmatmul.mubr.f32.gmra.mrb[6].mxu1 %v2766_v38 }
 0x496   : >> { %2848 = vmatmul.mubr.f32.gmra.mrb[6].mxu0 %v2758_v49 }
 0x520   : >> { %v2854_v32 = vpop.f32.mrb[0].mxu1 }
 0x521   : >> { %v2834_v39 = vpop.f32.mrb[0].mxu0  ;;  %v2877_v1 = vmax.f32 %v2854_v32, 0.0  ;;  %v2856_v15 = vpop.f32.mrb[1].mxu1 }
 0x522   : >> { %v2873_v45 = vmax.f32 %v2834_v39, 0.0  ;;  %v2836_v60 = vpop.f32.mrb[1].mxu0 }
 0x523   : >> { %2886 = vst.msk [vmem:[#allocation3 + $0x80] sm:$0xff] %vm2881_vm11, %v2877_v1 }
 0x524   : >> { %2882 = vst.msk [vmem:[#allocation3 + $0x20] sm:$0xff] %vm2881_vm11, %v2873_v45 }
 0x52a   : > { %v2894_v42 = vld [vmem:[#allocation3 + $0x80] sm:$0xff] (%p2367_p5) }
 0x52b   : > { %v2890_v19 = vld [vmem:[#allocation3 + $0x20] sm:$0xff] (%p2367_p5)  ;;  %2903 = vst.msk [vmem:[%s3554_s10 + $0x20] sm:$0xff] (%p2367_p5), %vm2881_vm11, %v2894_v42 }
 0x52c   : > { %2899 = vst.msk [vmem:[%s3554_s10] sm:$0xff] (%p2367_p5), %vm2881_vm11, %v2890_v19 }
 0x53c   : >> { %v2859_v24 = vpop.f32.mrb[2].mxu1 }
 0x53d   : >> { %v2839_v43 = vpop.f32.mrb[2].mxu0  ;;  %v2878_v23 = vmax.f32 %v2859_v24, 0.0  ;;  %v2861_v33 = vpop.f32.mrb[3].mxu1 }
 0x53e   : >> { %v2874_v34 = vmax.f32 %v2839_v43, 0.0  ;;  %v2841_v51 = vpop.f32.mrb[3].mxu0 }
 0x53f   : >> { %2887 = vst.msk [vmem:[#allocation3 + $0x98] sm:$0xff] %vm2881_vm11, %v2878_v23 }
 0x540   : >> { %2883 = vst.msk [vmem:[#allocation3 + $0x38] sm:$0xff] %vm2881_vm11, %v2874_v34 }
 0x546   : > { %v2895_v52 = vld [vmem:[#allocation3 + $0x98] sm:$0xff] (%p2367_p5) }
 0x547   : > { %v2891_v29 = vld [vmem:[#allocation3 + $0x38] sm:$0xff] (%p2367_p5)  ;;  %2904 = vst.msk [vmem:[%s3554_s10 + $0x28] sm:$0xff] (%p2367_p5), %vm2881_vm11, %v2895_v52 }
 0x548   : > { %2900 = vst.msk [vmem:[%s3554_s10 + $0x8] sm:$0xff] (%p2367_p5), %vm2881_vm11, %v2891_v29 }
 0x558   : >> { %v2864_v37 = vpop.f32.mrb[4].mxu1 }
 0x559   : >> { %v2844_v26 = vpop.f32.mrb[4].mxu0  ;;  %v2879_v58 = vmax.f32 %v2864_v37, 0.0  ;;  %v2866_v59 = vpop.f32.mrb[5].mxu1 }
 0x55a   : >> { %v2875_v35 = vmax.f32 %v2844_v26, 0.0  ;;  %v2846_v8 = vpop.f32.mrb[5].mxu0 }
 0x55b   : >> { %2888 = vst.msk [vmem:[#allocation3 + $0xb0] sm:$0xff] %vm2881_vm11, %v2879_v58 }
 0x55c   : >> { %2884 = vst.msk [vmem:[#allocation3 + $0x50] sm:$0xff] %vm2881_vm11, %v2875_v35 }
 0x562   : > { %v2896_v30 = vld [vmem:[#allocation3 + $0xb0] sm:$0xff] (%p2367_p5) }
 0x563   : > { %v2892_v2 = vld [vmem:[#allocation3 + $0x50] sm:$0xff] (%p2367_p5)  ;;  %2905 = vst.msk [vmem:[%s3554_s10 + $0x30] sm:$0xff] (%p2367_p5), %vm2881_vm11, %v2896_v30 }
 0x564   : > { %2901 = vst.msk [vmem:[%s3554_s10 + $0x10] sm:$0xff] (%p2367_p5), %vm2881_vm11, %v2892_v2 }
 0x566   : > { %2369 = sbr.rel (!%p2367_p5) target bundleno = 939 (0x3ab), region = 131 }
 0x568   : >> { %v2869_v10 = vpop.f32.mrb[6].mxu1 }
 0x569   : >> { %v2849_v14 = vpop.f32.mrb[6].mxu0  ;;  %v2880_v57 = vmax.f32 %v2869_v10, 0.0  ;;  %v2871_v56 = vpop.f32.mrb[7].mxu1 }
 0x56a   : >> { %v2876_v54 = vmax.f32 %v2849_v14, 0.0  ;;  %v2851_v63 = vpop.f32.mrb[7].mxu0 }
 0x56b   : >> { %2889 = vst.msk [vmem:[#allocation3 + $0xc8] sm:$0xff] %vm2881_vm11, %v2880_v57 }
 0x56c   : >> { %2885 = vst.msk [vmem:[#allocation3 + $0x68] sm:$0xff] %vm2881_vm11, %v2876_v54 }
 0x572   : > { %v2897_v22 = vld [vmem:[#allocation3 + $0xc8] sm:$0xff] }
 0x573   : > { %v2893_v20 = vld [vmem:[#allocation3 + $0x68] sm:$0xff]  ;;  %2906 = vst.msk [vmem:[%s3554_s10 + $0x38] sm:$0xff] %vm2881_vm11, %v2897_v22 }
 0x574   : > { %2902 = vst.msk [vmem:[%s3554_s10 + $0x18] sm:$0xff] %vm2881_vm11, %v2893_v20 }
 0x575 PF: > { %s14_s12 = sadd.s32 1, %s3148_s12  }
 0x576   : > { %p11_p9 = scmp.ge.s32.totalorder %s14_s12, 4  }
 0x578   :  { %13 = sbr.rel (!%p11_p9) target bundleno = 1 (0x1), region = 142 }
 0x57f   :  { %2928 = vsyncpa [#allocation6], 1 }
 0x580   :  { %2930 = vsyncpa [#allocation6 + $0x1], 1 }

</bundles_post_ra>
